<compile_context>
chip_gen: v6e
topology: v6e:2x2x1
jax: 0.10.0
libtpu: 0.0.40
codegen_flags: <defaults>
</compile_context>

<pallas_src>
import jax
import jax.numpy as jnp
from jax import lax
from jax.experimental import pallas as pl
from jax.experimental.pallas import tpu as pltpu

HIDDEN = 50   # logical hidden size (PyTorch)
HP = 128      # hidden padded to one 128-lane slab per gate


def lstm_kernel(xw0_ref, w_hh0_ref, w_ih1_ref, w_hh1_ref, b1_ref,
                w_lin_ref, b_lin_ref, out_ref):
    T = xw0_ref.shape[0]
    Bp = out_ref.shape[0]
    Hp = HP

    w_hh0 = w_hh0_ref[...]   # (Hp, 4*Hp)  bf16
    w_ih1 = w_ih1_ref[...]   # (Hp, 4*Hp)  bf16
    w_hh1 = w_hh1_ref[...]   # (Hp, 4*Hp)  bf16
    b1 = b1_ref[...]         # (1, 4*Hp)   f32

    h0 = jnp.zeros((Bp, Hp), jnp.float32)
    c0 = jnp.zeros((Bp, Hp), jnp.float32)
    h1 = jnp.zeros((Bp, Hp), jnp.float32)
    c1 = jnp.zeros((Bp, Hp), jnp.float32)

    def cell(gates, c_prev):
        # gate order (i, f, o, g): one sigmoid over a contiguous 3*Hp slab, one tanh over Hp
        sig = jax.nn.sigmoid(gates[:, :3 * Hp])
        g = jnp.tanh(gates[:, 3 * Hp:])
        i = sig[:, 0 * Hp:1 * Hp]
        f = sig[:, 1 * Hp:2 * Hp]
        o = sig[:, 2 * Hp:3 * Hp]
        c_new = f * c_prev + i * g
        h_new = o * jnp.tanh(c_new)
        return h_new, c_new

    # h1_{t-1} @ W_hh1 + b1 contribution; h1_{-1} == 0, so it starts as just the bias.
    hh1 = b1

    # Fully unrolled static time loop (T small & static); all indexing is static / leading-axis.
    for t in range(T):
        # layer 0: precomputed input projection (already includes b0) + recurrent matmul
        gates0 = xw0_ref[t] + jnp.dot(h0.astype(jnp.bfloat16), w_hh0,
                                      preferred_element_type=jnp.float32)
        h0, c0 = cell(gates0, c0)

        # layer 1: only h0_t @ W_ih1 is on the serial chain; the h1_{t-1} half (hh1) was
        # produced at the end of the previous step.
        gates1 = hh1 + jnp.dot(h0.astype(jnp.bfloat16), w_ih1,
                               preferred_element_type=jnp.float32)
        h1, c1 = cell(gates1, c1)

        if t + 1 < T:
            # off the critical path of the next step's layer-0 recurrence
            hh1 = b1 + jnp.dot(h1.astype(jnp.bfloat16), w_hh1,
                               preferred_element_type=jnp.float32)

    # Final Linear(50,1), folded in: one off-critical-path matmul; lane-dense (Bp, 128) store.
    out_ref[...] = (jnp.dot(h1, w_lin_ref[...], preferred_element_type=jnp.float32)
                    + b_lin_ref[...])


def prepare_params(params):
    """One-off weight prep (hoisted out of the per-call path).

    Gate reorder (i,f,g,o)->(i,f,o,g), transpose to (in, gate), zero-pad each gate to 128 lanes,
    sum the two bias vectors per layer, cast the recurrent MXU operands to bf16, and pad the
    final Linear(50,1) to a lane-dense (Hp, 128) matrix.
    """
    H, Hp = HIDDEN, HP
    (w_ih0, w_hh0, b_ih0, b_hh0,
     w_ih1, w_hh1, b_ih1, b_hh1, w_lin, b_lin) = params

    def prep_gate_matrix(w, in_dim_pad, dtype):
        wi, wf, wg, wo = jnp.split(w, 4, axis=0)                  # each (H, in_dim)
        cols = []
        for gw in (wi, wf, wo, wg):                               # reorder to (i, f, o, g)
            gwT = gw.T                                            # (in_dim, H)
            gwT = jnp.pad(gwT, ((0, in_dim_pad - gwT.shape[0]), (0, Hp - H)))
            cols.append(gwT)
        return jnp.concatenate(cols, axis=1).astype(dtype)        # (in_dim_pad, 4*Hp)

    def prep_gate_bias(b):
        bi, bf_, bg, bo = jnp.split(b, 4)
        parts = [jnp.pad(v, (0, Hp - H)) for v in (bi, bf_, bo, bg)]
        return jnp.concatenate(parts)[None, :]                    # (1, 4*Hp) f32

    w_ih0_p = prep_gate_matrix(w_ih0, 1, jnp.float32)             # (1, 4*Hp), used outside kernel
    w_hh0_bf = prep_gate_matrix(w_hh0, Hp, jnp.bfloat16)          # (Hp, 4*Hp)
    w_ih1_bf = prep_gate_matrix(w_ih1, Hp, jnp.bfloat16)          # (Hp, 4*Hp)
    w_hh1_bf = prep_gate_matrix(w_hh1, Hp, jnp.bfloat16)          # (Hp, 4*Hp)
    b0_p = prep_gate_bias(b_ih0 + b_hh0)                          # (1, 4*Hp)
    b1_p = prep_gate_bias(b_ih1 + b_hh1)                          # (1, 4*Hp)
    w_lin_p = jnp.pad(w_lin.T, ((0, Hp - H), (0, 128 - w_lin.shape[0])))   # (Hp, 128)
    b_lin_p = jnp.pad(b_lin, (0, 128 - b_lin.shape[0]))[None, :]           # (1, 128)
    return (w_ih0_p, b0_p, w_hh0_bf, w_ih1_bf, w_hh1_bf, b1_p, w_lin_p, b_lin_p)


def lstm_forecaster(x, prepped):
    """x: (B, T, 1) float32 (batch_first, like PyTorch). Returns (B, 1). Intended to be jitted."""
    B, T, IN = x.shape
    assert IN == 1
    Bp = max(16, ((B + 15) // 16) * 16)   # >=16: bf16 sublane packing for the h operands

    (w_ih0_p, b0_p, w_hh0_bf, w_ih1_bf, w_hh1_bf, b1_p, w_lin_p, b_lin_p) = prepped

    # Precompute the layer-0 input projection for the whole sequence (off the recurrence):
    # (T, B, 1) * (1, 1, 4*Hp) + (1, 1, 4*Hp) -> (T, B, 4*Hp); pad batch to Bp.
    x_tb = jnp.transpose(x, (1, 0, 2))                       # (T, B, 1)
    xw0 = x_tb * w_ih0_p[None] + b0_p[None]                  # (T, B, 4*Hp)
    xw0 = jnp.pad(xw0, ((0, 0), (0, Bp - B), (0, 0)))        # (T, Bp, 4*Hp)

    out = pl.pallas_call(
        lstm_kernel,
        out_shape=jax.ShapeDtypeStruct((Bp, HP), jnp.float32),
        in_specs=[pl.BlockSpec(memory_space=pltpu.MemorySpace.VMEM)] * 7,
        out_specs=pl.BlockSpec(memory_space=pltpu.MemorySpace.VMEM),
    )(xw0, w_hh0_bf, w_ih1_bf, w_hh1_bf, b1_p, w_lin_p, b_lin_p)

    return out[:B, :1]


def lstm_ref(x, params):
    """Pure-JAX reference mirroring torch.nn.LSTM(1, 50, 2, batch_first=True) + Linear(50,1)."""
    (w_ih0, w_hh0, b_ih0, b_hh0,
     w_ih1, w_hh1, b_ih1, b_hh1, w_lin, b_lin) = params
    B = x.shape[0]
    H = HIDDEN

    def cell(x_t, h, c, w_ih, w_hh, b_ih, b_hh):
        gates = x_t @ w_ih.T + b_ih + h @ w_hh.T + b_hh
        i, f, g, o = jnp.split(gates, 4, axis=-1)
        c = jax.nn.sigmoid(f) * c + jax.nn.sigmoid(i) * jnp.tanh(g)
        h = jax.nn.sigmoid(o) * jnp.tanh(c)
        return h, c

    def step(carry, x_t):
        h0, c0, h1, c1 = carry
        h0, c0 = cell(x_t, h0, c0, w_ih0, w_hh0, b_ih0, b_hh0)
        h1, c1 = cell(h0, h1, c1, w_ih1, w_hh1, b_ih1, b_hh1)
        return (h0, c0, h1, c1), None

    z = jnp.zeros((B, H), jnp.float32)
    (h0, c0, h1, c1), _ = lax.scan(step, (z, z, z, z), jnp.transpose(x, (1, 0, 2)))
    return h1 @ w_lin.T + b_lin


def init_params(key):
    H = HIDDEN
    k = 1.0 / jnp.sqrt(jnp.float32(H))
    keys = jax.random.split(key, 10)
    u = lambda kk, shape: jax.random.uniform(kk, shape, jnp.float32, -k, k)
    w_ih0 = u(keys[0], (4 * H, 1))
    w_hh0 = u(keys[1], (4 * H, H))
    b_ih0 = u(keys[2], (4 * H,))
    b_hh0 = u(keys[3], (4 * H,))
    w_ih1 = u(keys[4], (4 * H, H))
    w_hh1 = u(keys[5], (4 * H, H))
    b_ih1 = u(keys[6], (4 * H,))
    b_hh1 = u(keys[7], (4 * H,))
    w_lin = u(keys[8], (1, H))
    b_lin = u(keys[9], (1,))
    return (w_ih0, w_hh0, b_ih0, b_hh0,
            w_ih1, w_hh1, b_ih1, b_hh1, w_lin, b_lin)


if __name__ == "__main__":
    key = jax.random.PRNGKey(0)
    k_x, k_p = jax.random.split(key)
    B, T = 2, 8
    x = jax.random.normal(k_x, (B, T, 1), jnp.float32)
    params = init_params(k_p)

    prepped = prepare_params(params)          # one-off weight prep, outside the per-call path
    forecast = jax.jit(lstm_forecaster)       # single jitted per-call path

    out = jax.block_until_ready(forecast(x, prepped))
    ref = jax.block_until_ready(lstm_ref(x, params))

    assert out.shape == (B, 1)
    # bf16 MXU operands (f32 accumulation) -> slightly looser-than-f32 tolerance
    assert jnp.allclose(out, ref, atol=2e-3, rtol=2e-3), (out, ref)
    print("KERNEL_OK")
</pallas_src>

<mosaic_0001>
module attributes {stable_mosaic.version = 11 : i64} {
  func.func @lstm_kernel(%arg0: memref<8x16x512xf32, #tpu.memory_space<vmem>>, %arg1: memref<128x512xbf16, #tpu.memory_space<vmem>>, %arg2: memref<128x512xbf16, #tpu.memory_space<vmem>>, %arg3: memref<128x512xbf16, #tpu.memory_space<vmem>>, %arg4: memref<1x512xf32, #tpu.memory_space<vmem>>, %arg5: memref<128x128xf32, #tpu.memory_space<vmem>>, %arg6: memref<1x128xf32, #tpu.memory_space<vmem>>, %arg7: memref<16x128xf32, #tpu.memory_space<vmem>>) attributes {dimension_semantics = [], scalar_prefetch = 0 : i64, scratch_operands = 0 : i64, tpu.core_type = #tpu.core_type<tc>} {
    %c0 = arith.constant 0 : index
    %c0_0 = arith.constant 0 : index
    %0 = vector.load %arg1[%c0, %c0_0] : memref<128x512xbf16, #tpu.memory_space<vmem>>, vector<128x512xbf16>
    %c0_1 = arith.constant 0 : index
    %c0_2 = arith.constant 0 : index
    %1 = vector.load %arg2[%c0_1, %c0_2] : memref<128x512xbf16, #tpu.memory_space<vmem>>, vector<128x512xbf16>
    %c0_3 = arith.constant 0 : index
    %c0_4 = arith.constant 0 : index
    %2 = vector.load %arg3[%c0_3, %c0_4] : memref<128x512xbf16, #tpu.memory_space<vmem>>, vector<128x512xbf16>
    %c0_5 = arith.constant 0 : index
    %c0_6 = arith.constant 0 : index
    %3 = vector.load %arg4[%c0_5, %c0_6] : memref<1x512xf32, #tpu.memory_space<vmem>>, vector<1x512xf32>
    %cst = arith.constant 0.000000e+00 : f32
    %4 = vector.broadcast %cst : f32 to vector<16x128xf32>
    %cst_7 = arith.constant 0.000000e+00 : f32
    %5 = vector.broadcast %cst_7 : f32 to vector<16x128xf32>
    %cst_8 = arith.constant 0.000000e+00 : f32
    %6 = vector.broadcast %cst_8 : f32 to vector<16x128xf32>
    %c0_9 = arith.constant 0 : index
    %c0_10 = arith.constant 0 : index
    %c0_11 = arith.constant 0 : index
    %7 = vector.load %arg0[%c0_9, %c0_10, %c0_11] : memref<8x16x512xf32, #tpu.memory_space<vmem>>, vector<1x16x512xf32>
    %8 = vector.shape_cast %7 : vector<1x16x512xf32> to vector<16x512xf32>
    %9 = arith.truncf %4 : vector<16x128xf32> to vector<16x128xbf16>
    %cst_12 = arith.constant dense<0.000000e+00> : vector<16x512xf32>
    %10 = tpu.matmul %9, %0, %cst_12 {dimension_numbers = #tpu.dot_dimension_numbers<[1], [0], [0], [1], [0, 0, 1, 1], [], []>} : vector<16x128xbf16>, vector<128x512xbf16>, vector<16x512xf32> -> vector<16x512xf32>
    %11 = arith.addf %8, %10 : vector<16x512xf32>
    %12 = vector.extract_strided_slice %11 {offsets = [0, 0], sizes = [16, 384], strides = [1, 1]} : vector<16x512xf32> to vector<16x384xf32>
    %13 = arith.negf %12 : vector<16x384xf32>
    %14 = math.exp %13 : vector<16x384xf32>
    %cst_13 = arith.constant 1.000000e+00 : f32
    %15 = vector.broadcast %cst_13 : f32 to vector<16x384xf32>
    %16 = arith.addf %15, %14 : vector<16x384xf32>
    %17 = arith.divf %15, %16 : vector<16x384xf32>
    %18 = vector.extract_strided_slice %11 {offsets = [0, 384], sizes = [16, 128], strides = [1, 1]} : vector<16x512xf32> to vector<16x128xf32>
    %19 = math.tanh %18 : vector<16x128xf32>
    %20 = vector.extract_strided_slice %17 {offsets = [0, 0], sizes = [16, 128], strides = [1, 1]} : vector<16x384xf32> to vector<16x128xf32>
    %21 = vector.extract_strided_slice %17 {offsets = [0, 128], sizes = [16, 128], strides = [1, 1]} : vector<16x384xf32> to vector<16x128xf32>
    %22 = vector.extract_strided_slice %17 {offsets = [0, 256], sizes = [16, 128], strides = [1, 1]} : vector<16x384xf32> to vector<16x128xf32>
    %23 = arith.mulf %21, %5 : vector<16x128xf32>
    %24 = arith.mulf %20, %19 : vector<16x128xf32>
    %25 = arith.addf %23, %24 : vector<16x128xf32>
    %26 = math.tanh %25 : vector<16x128xf32>
    %27 = arith.mulf %22, %26 : vector<16x128xf32>
    %28 = arith.truncf %27 : vector<16x128xf32> to vector<16x128xbf16>
    %cst_14 = arith.constant dense<0.000000e+00> : vector<16x512xf32>
    %29 = tpu.matmul %28, %1, %cst_14 {dimension_numbers = #tpu.dot_dimension_numbers<[1], [0], [0], [1], [0, 0, 1, 1], [], []>} : vector<16x128xbf16>, vector<128x512xbf16>, vector<16x512xf32> -> vector<16x512xf32>
    %30 = vector.broadcast %3 : vector<1x512xf32> to vector<16x512xf32>
    %31 = arith.addf %30, %29 : vector<16x512xf32>
    %32 = vector.extract_strided_slice %31 {offsets = [0, 0], sizes = [16, 384], strides = [1, 1]} : vector<16x512xf32> to vector<16x384xf32>
    %33 = arith.negf %32 : vector<16x384xf32>
    %34 = math.exp %33 : vector<16x384xf32>
    %cst_15 = arith.constant 1.000000e+00 : f32
    %35 = vector.broadcast %cst_15 : f32 to vector<16x384xf32>
    %36 = arith.addf %35, %34 : vector<16x384xf32>
    %37 = arith.divf %35, %36 : vector<16x384xf32>
    %38 = vector.extract_strided_slice %31 {offsets = [0, 384], sizes = [16, 128], strides = [1, 1]} : vector<16x512xf32> to vector<16x128xf32>
    %39 = math.tanh %38 : vector<16x128xf32>
    %40 = vector.extract_strided_slice %37 {offsets = [0, 0], sizes = [16, 128], strides = [1, 1]} : vector<16x384xf32> to vector<16x128xf32>
    %41 = vector.extract_strided_slice %37 {offsets = [0, 128], sizes = [16, 128], strides = [1, 1]} : vector<16x384xf32> to vector<16x128xf32>
    %42 = vector.extract_strided_slice %37 {offsets = [0, 256], sizes = [16, 128], strides = [1, 1]} : vector<16x384xf32> to vector<16x128xf32>
    %43 = arith.mulf %41, %6 : vector<16x128xf32>
    %44 = arith.mulf %40, %39 : vector<16x128xf32>
    %45 = arith.addf %43, %44 : vector<16x128xf32>
    %46 = math.tanh %45 : vector<16x128xf32>
    %47 = arith.mulf %42, %46 : vector<16x128xf32>
    %48 = arith.truncf %47 : vector<16x128xf32> to vector<16x128xbf16>
    %cst_16 = arith.constant dense<0.000000e+00> : vector<16x512xf32>
    %49 = tpu.matmul %48, %2, %cst_16 {dimension_numbers = #tpu.dot_dimension_numbers<[1], [0], [0], [1], [0, 0, 1, 1], [], []>} : vector<16x128xbf16>, vector<128x512xbf16>, vector<16x512xf32> -> vector<16x512xf32>
    %50 = vector.broadcast %3 : vector<1x512xf32> to vector<16x512xf32>
    %51 = arith.addf %50, %49 : vector<16x512xf32>
    %c1 = arith.constant 1 : index
    %c0_17 = arith.constant 0 : index
    %c0_18 = arith.constant 0 : index
    %52 = vector.load %arg0[%c1, %c0_17, %c0_18] : memref<8x16x512xf32, #tpu.memory_space<vmem>>, vector<1x16x512xf32>
    %53 = vector.shape_cast %52 : vector<1x16x512xf32> to vector<16x512xf32>
    %54 = arith.truncf %27 : vector<16x128xf32> to vector<16x128xbf16>
    %cst_19 = arith.constant dense<0.000000e+00> : vector<16x512xf32>
    %55 = tpu.matmul %54, %0, %cst_19 {dimension_numbers = #tpu.dot_dimension_numbers<[1], [0], [0], [1], [0, 0, 1, 1], [], []>} : vector<16x128xbf16>, vector<128x512xbf16>, vector<16x512xf32> -> vector<16x512xf32>
    %56 = arith.addf %53, %55 : vector<16x512xf32>
    %57 = vector.extract_strided_slice %56 {offsets = [0, 0], sizes = [16, 384], strides = [1, 1]} : vector<16x512xf32> to vector<16x384xf32>
    %58 = arith.negf %57 : vector<16x384xf32>
    %59 = math.exp %58 : vector<16x384xf32>
    %cst_20 = arith.constant 1.000000e+00 : f32
    %60 = vector.broadcast %cst_20 : f32 to vector<16x384xf32>
    %61 = arith.addf %60, %59 : vector<16x384xf32>
    %62 = arith.divf %60, %61 : vector<16x384xf32>
    %63 = vector.extract_strided_slice %56 {offsets = [0, 384], sizes = [16, 128], strides = [1, 1]} : vector<16x512xf32> to vector<16x128xf32>
    %64 = math.tanh %63 : vector<16x128xf32>
    %65 = vector.extract_strided_slice %62 {offsets = [0, 0], sizes = [16, 128], strides = [1, 1]} : vector<16x384xf32> to vector<16x128xf32>
    %66 = vector.extract_strided_slice %62 {offsets = [0, 128], sizes = [16, 128], strides = [1, 1]} : vector<16x384xf32> to vector<16x128xf32>
    %67 = vector.extract_strided_slice %62 {offsets = [0, 256], sizes = [16, 128], strides = [1, 1]} : vector<16x384xf32> to vector<16x128xf32>
    %68 = arith.mulf %66, %25 : vector<16x128xf32>
    %69 = arith.mulf %65, %64 : vector<16x128xf32>
    %70 = arith.addf %68, %69 : vector<16x128xf32>
    %71 = math.tanh %70 : vector<16x128xf32>
    %72 = arith.mulf %67, %71 : vector<16x128xf32>
    %73 = arith.truncf %72 : vector<16x128xf32> to vector<16x128xbf16>
    %cst_21 = arith.constant dense<0.000000e+00> : vector<16x512xf32>
    %74 = tpu.matmul %73, %1, %cst_21 {dimension_numbers = #tpu.dot_dimension_numbers<[1], [0], [0], [1], [0, 0, 1, 1], [], []>} : vector<16x128xbf16>, vector<128x512xbf16>, vector<16x512xf32> -> vector<16x512xf32>
    %75 = arith.addf %51, %74 : vector<16x512xf32>
    %76 = vector.extract_strided_slice %75 {offsets = [0, 0], sizes = [16, 384], strides = [1, 1]} : vector<16x512xf32> to vector<16x384xf32>
    %77 = arith.negf %76 : vector<16x384xf32>
    %78 = math.exp %77 : vector<16x384xf32>
    %cst_22 = arith.constant 1.000000e+00 : f32
    %79 = vector.broadcast %cst_22 : f32 to vector<16x384xf32>
    %80 = arith.addf %79, %78 : vector<16x384xf32>
    %81 = arith.divf %79, %80 : vector<16x384xf32>
    %82 = vector.extract_strided_slice %75 {offsets = [0, 384], sizes = [16, 128], strides = [1, 1]} : vector<16x512xf32> to vector<16x128xf32>
    %83 = math.tanh %82 : vector<16x128xf32>
    %84 = vector.extract_strided_slice %81 {offsets = [0, 0], sizes = [16, 128], strides = [1, 1]} : vector<16x384xf32> to vector<16x128xf32>
    %85 = vector.extract_strided_slice %81 {offsets = [0, 128], sizes = [16, 128], strides = [1, 1]} : vector<16x384xf32> to vector<16x128xf32>
    %86 = vector.extract_strided_slice %81 {offsets = [0, 256], sizes = [16, 128], strides = [1, 1]} : vector<16x384xf32> to vector<16x128xf32>
    %87 = arith.mulf %85, %45 : vector<16x128xf32>
    %88 = arith.mulf %84, %83 : vector<16x128xf32>
    %89 = arith.addf %87, %88 : vector<16x128xf32>
    %90 = math.tanh %89 : vector<16x128xf32>
    %91 = arith.mulf %86, %90 : vector<16x128xf32>
    %92 = arith.truncf %91 : vector<16x128xf32> to vector<16x128xbf16>
    %cst_23 = arith.constant dense<0.000000e+00> : vector<16x512xf32>
    %93 = tpu.matmul %92, %2, %cst_23 {dimension_numbers = #tpu.dot_dimension_numbers<[1], [0], [0], [1], [0, 0, 1, 1], [], []>} : vector<16x128xbf16>, vector<128x512xbf16>, vector<16x512xf32> -> vector<16x512xf32>
    %94 = vector.broadcast %3 : vector<1x512xf32> to vector<16x512xf32>
    %95 = arith.addf %94, %93 : vector<16x512xf32>
    %c2 = arith.constant 2 : index
    %c0_24 = arith.constant 0 : index
    %c0_25 = arith.constant 0 : index
    %96 = vector.load %arg0[%c2, %c0_24, %c0_25] : memref<8x16x512xf32, #tpu.memory_space<vmem>>, vector<1x16x512xf32>
    %97 = vector.shape_cast %96 : vector<1x16x512xf32> to vector<16x512xf32>
    %98 = arith.truncf %72 : vector<16x128xf32> to vector<16x128xbf16>
    %cst_26 = arith.constant dense<0.000000e+00> : vector<16x512xf32>
    %99 = tpu.matmul %98, %0, %cst_26 {dimension_numbers = #tpu.dot_dimension_numbers<[1], [0], [0], [1], [0, 0, 1, 1], [], []>} : vector<16x128xbf16>, vector<128x512xbf16>, vector<16x512xf32> -> vector<16x512xf32>
    %100 = arith.addf %97, %99 : vector<16x512xf32>
    %101 = vector.extract_strided_slice %100 {offsets = [0, 0], sizes = [16, 384], strides = [1, 1]} : vector<16x512xf32> to vector<16x384xf32>
    %102 = arith.negf %101 : vector<16x384xf32>
    %103 = math.exp %102 : vector<16x384xf32>
    %cst_27 = arith.constant 1.000000e+00 : f32
    %104 = vector.broadcast %cst_27 : f32 to vector<16x384xf32>
    %105 = arith.addf %104, %103 : vector<16x384xf32>
    %106 = arith.divf %104, %105 : vector<16x384xf32>
    %107 = vector.extract_strided_slice %100 {offsets = [0, 384], sizes = [16, 128], strides = [1, 1]} : vector<16x512xf32> to vector<16x128xf32>
    %108 = math.tanh %107 : vector<16x128xf32>
    %109 = vector.extract_strided_slice %106 {offsets = [0, 0], sizes = [16, 128], strides = [1, 1]} : vector<16x384xf32> to vector<16x128xf32>
    %110 = vector.extract_strided_slice %106 {offsets = [0, 128], sizes = [16, 128], strides = [1, 1]} : vector<16x384xf32> to vector<16x128xf32>
    %111 = vector.extract_strided_slice %106 {offsets = [0, 256], sizes = [16, 128], strides = [1, 1]} : vector<16x384xf32> to vector<16x128xf32>
    %112 = arith.mulf %110, %70 : vector<16x128xf32>
    %113 = arith.mulf %109, %108 : vector<16x128xf32>
    %114 = arith.addf %112, %113 : vector<16x128xf32>
    %115 = math.tanh %114 : vector<16x128xf32>
    %116 = arith.mulf %111, %115 : vector<16x128xf32>
    %117 = arith.truncf %116 : vector<16x128xf32> to vector<16x128xbf16>
    %cst_28 = arith.constant dense<0.000000e+00> : vector<16x512xf32>
    %118 = tpu.matmul %117, %1, %cst_28 {dimension_numbers = #tpu.dot_dimension_numbers<[1], [0], [0], [1], [0, 0, 1, 1], [], []>} : vector<16x128xbf16>, vector<128x512xbf16>, vector<16x512xf32> -> vector<16x512xf32>
    %119 = arith.addf %95, %118 : vector<16x512xf32>
    %120 = vector.extract_strided_slice %119 {offsets = [0, 0], sizes = [16, 384], strides = [1, 1]} : vector<16x512xf32> to vector<16x384xf32>
    %121 = arith.negf %120 : vector<16x384xf32>
    %122 = math.exp %121 : vector<16x384xf32>
    %cst_29 = arith.constant 1.000000e+00 : f32
    %123 = vector.broadcast %cst_29 : f32 to vector<16x384xf32>
    %124 = arith.addf %123, %122 : vector<16x384xf32>
    %125 = arith.divf %123, %124 : vector<16x384xf32>
    %126 = vector.extract_strided_slice %119 {offsets = [0, 384], sizes = [16, 128], strides = [1, 1]} : vector<16x512xf32> to vector<16x128xf32>
    %127 = math.tanh %126 : vector<16x128xf32>
    %128 = vector.extract_strided_slice %125 {offsets = [0, 0], sizes = [16, 128], strides = [1, 1]} : vector<16x384xf32> to vector<16x128xf32>
    %129 = vector.extract_strided_slice %125 {offsets = [0, 128], sizes = [16, 128], strides = [1, 1]} : vector<16x384xf32> to vector<16x128xf32>
    %130 = vector.extract_strided_slice %125 {offsets = [0, 256], sizes = [16, 128], strides = [1, 1]} : vector<16x384xf32> to vector<16x128xf32>
    %131 = arith.mulf %129, %89 : vector<16x128xf32>
    %132 = arith.mulf %128, %127 : vector<16x128xf32>
    %133 = arith.addf %131, %132 : vector<16x128xf32>
    %134 = math.tanh %133 : vector<16x128xf32>
    %135 = arith.mulf %130, %134 : vector<16x128xf32>
    %136 = arith.truncf %135 : vector<16x128xf32> to vector<16x128xbf16>
    %cst_30 = arith.constant dense<0.000000e+00> : vector<16x512xf32>
    %137 = tpu.matmul %136, %2, %cst_30 {dimension_numbers = #tpu.dot_dimension_numbers<[1], [0], [0], [1], [0, 0, 1, 1], [], []>} : vector<16x128xbf16>, vector<128x512xbf16>, vector<16x512xf32> -> vector<16x512xf32>
    %138 = vector.broadcast %3 : vector<1x512xf32> to vector<16x512xf32>
    %139 = arith.addf %138, %137 : vector<16x512xf32>
    %c3 = arith.constant 3 : index
    %c0_31 = arith.constant 0 : index
    %c0_32 = arith.constant 0 : index
    %140 = vector.load %arg0[%c3, %c0_31, %c0_32] : memref<8x16x512xf32, #tpu.memory_space<vmem>>, vector<1x16x512xf32>
    %141 = vector.shape_cast %140 : vector<1x16x512xf32> to vector<16x512xf32>
    %142 = arith.truncf %116 : vector<16x128xf32> to vector<16x128xbf16>
    %cst_33 = arith.constant dense<0.000000e+00> : vector<16x512xf32>
    %143 = tpu.matmul %142, %0, %cst_33 {dimension_numbers = #tpu.dot_dimension_numbers<[1], [0], [0], [1], [0, 0, 1, 1], [], []>} : vector<16x128xbf16>, vector<128x512xbf16>, vector<16x512xf32> -> vector<16x512xf32>
    %144 = arith.addf %141, %143 : vector<16x512xf32>
    %145 = vector.extract_strided_slice %144 {offsets = [0, 0], sizes = [16, 384], strides = [1, 1]} : vector<16x512xf32> to vector<16x384xf32>
    %146 = arith.negf %145 : vector<16x384xf32>
    %147 = math.exp %146 : vector<16x384xf32>
    %cst_34 = arith.constant 1.000000e+00 : f32
    %148 = vector.broadcast %cst_34 : f32 to vector<16x384xf32>
    %149 = arith.addf %148, %147 : vector<16x384xf32>
    %150 = arith.divf %148, %149 : vector<16x384xf32>
    %151 = vector.extract_strided_slice %144 {offsets = [0, 384], sizes = [16, 128], strides = [1, 1]} : vector<16x512xf32> to vector<16x128xf32>
    %152 = math.tanh %151 : vector<16x128xf32>
    %153 = vector.extract_strided_slice %150 {offsets = [0, 0], sizes = [16, 128], strides = [1, 1]} : vector<16x384xf32> to vector<16x128xf32>
    %154 = vector.extract_strided_slice %150 {offsets = [0, 128], sizes = [16, 128], strides = [1, 1]} : vector<16x384xf32> to vector<16x128xf32>
    %155 = vector.extract_strided_slice %150 {offsets = [0, 256], sizes = [16, 128], strides = [1, 1]} : vector<16x384xf32> to vector<16x128xf32>
    %156 = arith.mulf %154, %114 : vector<16x128xf32>
    %157 = arith.mulf %153, %152 : vector<16x128xf32>
    %158 = arith.addf %156, %157 : vector<16x128xf32>
    %159 = math.tanh %158 : vector<16x128xf32>
    %160 = arith.mulf %155, %159 : vector<16x128xf32>
    %161 = arith.truncf %160 : vector<16x128xf32> to vector<16x128xbf16>
    %cst_35 = arith.constant dense<0.000000e+00> : vector<16x512xf32>
    %162 = tpu.matmul %161, %1, %cst_35 {dimension_numbers = #tpu.dot_dimension_numbers<[1], [0], [0], [1], [0, 0, 1, 1], [], []>} : vector<16x128xbf16>, vector<128x512xbf16>, vector<16x512xf32> -> vector<16x512xf32>
    %163 = arith.addf %139, %162 : vector<16x512xf32>
    %164 = vector.extract_strided_slice %163 {offsets = [0, 0], sizes = [16, 384], strides = [1, 1]} : vector<16x512xf32> to vector<16x384xf32>
    %165 = arith.negf %164 : vector<16x384xf32>
    %166 = math.exp %165 : vector<16x384xf32>
    %cst_36 = arith.constant 1.000000e+00 : f32
    %167 = vector.broadcast %cst_36 : f32 to vector<16x384xf32>
    %168 = arith.addf %167, %166 : vector<16x384xf32>
    %169 = arith.divf %167, %168 : vector<16x384xf32>
    %170 = vector.extract_strided_slice %163 {offsets = [0, 384], sizes = [16, 128], strides = [1, 1]} : vector<16x512xf32> to vector<16x128xf32>
    %171 = math.tanh %170 : vector<16x128xf32>
    %172 = vector.extract_strided_slice %169 {offsets = [0, 0], sizes = [16, 128], strides = [1, 1]} : vector<16x384xf32> to vector<16x128xf32>
    %173 = vector.extract_strided_slice %169 {offsets = [0, 128], sizes = [16, 128], strides = [1, 1]} : vector<16x384xf32> to vector<16x128xf32>
    %174 = vector.extract_strided_slice %169 {offsets = [0, 256], sizes = [16, 128], strides = [1, 1]} : vector<16x384xf32> to vector<16x128xf32>
    %175 = arith.mulf %173, %133 : vector<16x128xf32>
    %176 = arith.mulf %172, %171 : vector<16x128xf32>
    %177 = arith.addf %175, %176 : vector<16x128xf32>
    %178 = math.tanh %177 : vector<16x128xf32>
    %179 = arith.mulf %174, %178 : vector<16x128xf32>
    %180 = arith.truncf %179 : vector<16x128xf32> to vector<16x128xbf16>
    %cst_37 = arith.constant dense<0.000000e+00> : vector<16x512xf32>
    %181 = tpu.matmul %180, %2, %cst_37 {dimension_numbers = #tpu.dot_dimension_numbers<[1], [0], [0], [1], [0, 0, 1, 1], [], []>} : vector<16x128xbf16>, vector<128x512xbf16>, vector<16x512xf32> -> vector<16x512xf32>
    %182 = vector.broadcast %3 : vector<1x512xf32> to vector<16x512xf32>
    %183 = arith.addf %182, %181 : vector<16x512xf32>
    %c4 = arith.constant 4 : index
    %c0_38 = arith.constant 0 : index
    %c0_39 = arith.constant 0 : index
    %184 = vector.load %arg0[%c4, %c0_38, %c0_39] : memref<8x16x512xf32, #tpu.memory_space<vmem>>, vector<1x16x512xf32>
    %185 = vector.shape_cast %184 : vector<1x16x512xf32> to vector<16x512xf32>
    %186 = arith.truncf %160 : vector<16x128xf32> to vector<16x128xbf16>
    %cst_40 = arith.constant dense<0.000000e+00> : vector<16x512xf32>
    %187 = tpu.matmul %186, %0, %cst_40 {dimension_numbers = #tpu.dot_dimension_numbers<[1], [0], [0], [1], [0, 0, 1, 1], [], []>} : vector<16x128xbf16>, vector<128x512xbf16>, vector<16x512xf32> -> vector<16x512xf32>
    %188 = arith.addf %185, %187 : vector<16x512xf32>
    %189 = vector.extract_strided_slice %188 {offsets = [0, 0], sizes = [16, 384], strides = [1, 1]} : vector<16x512xf32> to vector<16x384xf32>
    %190 = arith.negf %189 : vector<16x384xf32>
    %191 = math.exp %190 : vector<16x384xf32>
    %cst_41 = arith.constant 1.000000e+00 : f32
    %192 = vector.broadcast %cst_41 : f32 to vector<16x384xf32>
    %193 = arith.addf %192, %191 : vector<16x384xf32>
    %194 = arith.divf %192, %193 : vector<16x384xf32>
    %195 = vector.extract_strided_slice %188 {offsets = [0, 384], sizes = [16, 128], strides = [1, 1]} : vector<16x512xf32> to vector<16x128xf32>
    %196 = math.tanh %195 : vector<16x128xf32>
    %197 = vector.extract_strided_slice %194 {offsets = [0, 0], sizes = [16, 128], strides = [1, 1]} : vector<16x384xf32> to vector<16x128xf32>
    %198 = vector.extract_strided_slice %194 {offsets = [0, 128], sizes = [16, 128], strides = [1, 1]} : vector<16x384xf32> to vector<16x128xf32>
    %199 = vector.extract_strided_slice %194 {offsets = [0, 256], sizes = [16, 128], strides = [1, 1]} : vector<16x384xf32> to vector<16x128xf32>
    %200 = arith.mulf %198, %158 : vector<16x128xf32>
    %201 = arith.mulf %197, %196 : vector<16x128xf32>
    %202 = arith.addf %200, %201 : vector<16x128xf32>
    %203 = math.tanh %202 : vector<16x128xf32>
    %204 = arith.mulf %199, %203 : vector<16x128xf32>
    %205 = arith.truncf %204 : vector<16x128xf32> to vector<16x128xbf16>
    %cst_42 = arith.constant dense<0.000000e+00> : vector<16x512xf32>
    %206 = tpu.matmul %205, %1, %cst_42 {dimension_numbers = #tpu.dot_dimension_numbers<[1], [0], [0], [1], [0, 0, 1, 1], [], []>} : vector<16x128xbf16>, vector<128x512xbf16>, vector<16x512xf32> -> vector<16x512xf32>
    %207 = arith.addf %183, %206 : vector<16x512xf32>
    %208 = vector.extract_strided_slice %207 {offsets = [0, 0], sizes = [16, 384], strides = [1, 1]} : vector<16x512xf32> to vector<16x384xf32>
    %209 = arith.negf %208 : vector<16x384xf32>
    %210 = math.exp %209 : vector<16x384xf32>
    %cst_43 = arith.constant 1.000000e+00 : f32
    %211 = vector.broadcast %cst_43 : f32 to vector<16x384xf32>
    %212 = arith.addf %211, %210 : vector<16x384xf32>
    %213 = arith.divf %211, %212 : vector<16x384xf32>
    %214 = vector.extract_strided_slice %207 {offsets = [0, 384], sizes = [16, 128], strides = [1, 1]} : vector<16x512xf32> to vector<16x128xf32>
    %215 = math.tanh %214 : vector<16x128xf32>
    %216 = vector.extract_strided_slice %213 {offsets = [0, 0], sizes = [16, 128], strides = [1, 1]} : vector<16x384xf32> to vector<16x128xf32>
    %217 = vector.extract_strided_slice %213 {offsets = [0, 128], sizes = [16, 128], strides = [1, 1]} : vector<16x384xf32> to vector<16x128xf32>
    %218 = vector.extract_strided_slice %213 {offsets = [0, 256], sizes = [16, 128], strides = [1, 1]} : vector<16x384xf32> to vector<16x128xf32>
    %219 = arith.mulf %217, %177 : vector<16x128xf32>
    %220 = arith.mulf %216, %215 : vector<16x128xf32>
    %221 = arith.addf %219, %220 : vector<16x128xf32>
    %222 = math.tanh %221 : vector<16x128xf32>
    %223 = arith.mulf %218, %222 : vector<16x128xf32>
    %224 = arith.truncf %223 : vector<16x128xf32> to vector<16x128xbf16>
    %cst_44 = arith.constant dense<0.000000e+00> : vector<16x512xf32>
    %225 = tpu.matmul %224, %2, %cst_44 {dimension_numbers = #tpu.dot_dimension_numbers<[1], [0], [0], [1], [0, 0, 1, 1], [], []>} : vector<16x128xbf16>, vector<128x512xbf16>, vector<16x512xf32> -> vector<16x512xf32>
    %226 = vector.broadcast %3 : vector<1x512xf32> to vector<16x512xf32>
    %227 = arith.addf %226, %225 : vector<16x512xf32>
    %c5 = arith.constant 5 : index
    %c0_45 = arith.constant 0 : index
    %c0_46 = arith.constant 0 : index
    %228 = vector.load %arg0[%c5, %c0_45, %c0_46] : memref<8x16x512xf32, #tpu.memory_space<vmem>>, vector<1x16x512xf32>
    %229 = vector.shape_cast %228 : vector<1x16x512xf32> to vector<16x512xf32>
    %230 = arith.truncf %204 : vector<16x128xf32> to vector<16x128xbf16>
    %cst_47 = arith.constant dense<0.000000e+00> : vector<16x512xf32>
    %231 = tpu.matmul %230, %0, %cst_47 {dimension_numbers = #tpu.dot_dimension_numbers<[1], [0], [0], [1], [0, 0, 1, 1], [], []>} : vector<16x128xbf16>, vector<128x512xbf16>, vector<16x512xf32> -> vector<16x512xf32>
    %232 = arith.addf %229, %231 : vector<16x512xf32>
    %233 = vector.extract_strided_slice %232 {offsets = [0, 0], sizes = [16, 384], strides = [1, 1]} : vector<16x512xf32> to vector<16x384xf32>
    %234 = arith.negf %233 : vector<16x384xf32>
    %235 = math.exp %234 : vector<16x384xf32>
    %cst_48 = arith.constant 1.000000e+00 : f32
    %236 = vector.broadcast %cst_48 : f32 to vector<16x384xf32>
    %237 = arith.addf %236, %235 : vector<16x384xf32>
    %238 = arith.divf %236, %237 : vector<16x384xf32>
    %239 = vector.extract_strided_slice %232 {offsets = [0, 384], sizes = [16, 128], strides = [1, 1]} : vector<16x512xf32> to vector<16x128xf32>
    %240 = math.tanh %239 : vector<16x128xf32>
    %241 = vector.extract_strided_slice %238 {offsets = [0, 0], sizes = [16, 128], strides = [1, 1]} : vector<16x384xf32> to vector<16x128xf32>
    %242 = vector.extract_strided_slice %238 {offsets = [0, 128], sizes = [16, 128], strides = [1, 1]} : vector<16x384xf32> to vector<16x128xf32>
    %243 = vector.extract_strided_slice %238 {offsets = [0, 256], sizes = [16, 128], strides = [1, 1]} : vector<16x384xf32> to vector<16x128xf32>
    %244 = arith.mulf %242, %202 : vector<16x128xf32>
    %245 = arith.mulf %241, %240 : vector<16x128xf32>
    %246 = arith.addf %244, %245 : vector<16x128xf32>
    %247 = math.tanh %246 : vector<16x128xf32>
    %248 = arith.mulf %243, %247 : vector<16x128xf32>
    %249 = arith.truncf %248 : vector<16x128xf32> to vector<16x128xbf16>
    %cst_49 = arith.constant dense<0.000000e+00> : vector<16x512xf32>
    %250 = tpu.matmul %249, %1, %cst_49 {dimension_numbers = #tpu.dot_dimension_numbers<[1], [0], [0], [1], [0, 0, 1, 1], [], []>} : vector<16x128xbf16>, vector<128x512xbf16>, vector<16x512xf32> -> vector<16x512xf32>
    %251 = arith.addf %227, %250 : vector<16x512xf32>
    %252 = vector.extract_strided_slice %251 {offsets = [0, 0], sizes = [16, 384], strides = [1, 1]} : vector<16x512xf32> to vector<16x384xf32>
    %253 = arith.negf %252 : vector<16x384xf32>
    %254 = math.exp %253 : vector<16x384xf32>
    %cst_50 = arith.constant 1.000000e+00 : f32
    %255 = vector.broadcast %cst_50 : f32 to vector<16x384xf32>
    %256 = arith.addf %255, %254 : vector<16x384xf32>
    %257 = arith.divf %255, %256 : vector<16x384xf32>
    %258 = vector.extract_strided_slice %251 {offsets = [0, 384], sizes = [16, 128], strides = [1, 1]} : vector<16x512xf32> to vector<16x128xf32>
    %259 = math.tanh %258 : vector<16x128xf32>
    %260 = vector.extract_strided_slice %257 {offsets = [0, 0], sizes = [16, 128], strides = [1, 1]} : vector<16x384xf32> to vector<16x128xf32>
    %261 = vector.extract_strided_slice %257 {offsets = [0, 128], sizes = [16, 128], strides = [1, 1]} : vector<16x384xf32> to vector<16x128xf32>
    %262 = vector.extract_strided_slice %257 {offsets = [0, 256], sizes = [16, 128], strides = [1, 1]} : vector<16x384xf32> to vector<16x128xf32>
    %263 = arith.mulf %261, %221 : vector<16x128xf32>
    %264 = arith.mulf %260, %259 : vector<16x128xf32>
    %265 = arith.addf %263, %264 : vector<16x128xf32>
    %266 = math.tanh %265 : vector<16x128xf32>
    %267 = arith.mulf %262, %266 : vector<16x128xf32>
    %268 = arith.truncf %267 : vector<16x128xf32> to vector<16x128xbf16>
    %cst_51 = arith.constant dense<0.000000e+00> : vector<16x512xf32>
    %269 = tpu.matmul %268, %2, %cst_51 {dimension_numbers = #tpu.dot_dimension_numbers<[1], [0], [0], [1], [0, 0, 1, 1], [], []>} : vector<16x128xbf16>, vector<128x512xbf16>, vector<16x512xf32> -> vector<16x512xf32>
    %270 = vector.broadcast %3 : vector<1x512xf32> to vector<16x512xf32>
    %271 = arith.addf %270, %269 : vector<16x512xf32>
    %c6 = arith.constant 6 : index
    %c0_52 = arith.constant 0 : index
    %c0_53 = arith.constant 0 : index
    %272 = vector.load %arg0[%c6, %c0_52, %c0_53] : memref<8x16x512xf32, #tpu.memory_space<vmem>>, vector<1x16x512xf32>
    %273 = vector.shape_cast %272 : vector<1x16x512xf32> to vector<16x512xf32>
    %274 = arith.truncf %248 : vector<16x128xf32> to vector<16x128xbf16>
    %cst_54 = arith.constant dense<0.000000e+00> : vector<16x512xf32>
    %275 = tpu.matmul %274, %0, %cst_54 {dimension_numbers = #tpu.dot_dimension_numbers<[1], [0], [0], [1], [0, 0, 1, 1], [], []>} : vector<16x128xbf16>, vector<128x512xbf16>, vector<16x512xf32> -> vector<16x512xf32>
    %276 = arith.addf %273, %275 : vector<16x512xf32>
    %277 = vector.extract_strided_slice %276 {offsets = [0, 0], sizes = [16, 384], strides = [1, 1]} : vector<16x512xf32> to vector<16x384xf32>
    %278 = arith.negf %277 : vector<16x384xf32>
    %279 = math.exp %278 : vector<16x384xf32>
    %cst_55 = arith.constant 1.000000e+00 : f32
    %280 = vector.broadcast %cst_55 : f32 to vector<16x384xf32>
    %281 = arith.addf %280, %279 : vector<16x384xf32>
    %282 = arith.divf %280, %281 : vector<16x384xf32>
    %283 = vector.extract_strided_slice %276 {offsets = [0, 384], sizes = [16, 128], strides = [1, 1]} : vector<16x512xf32> to vector<16x128xf32>
    %284 = math.tanh %283 : vector<16x128xf32>
    %285 = vector.extract_strided_slice %282 {offsets = [0, 0], sizes = [16, 128], strides = [1, 1]} : vector<16x384xf32> to vector<16x128xf32>
    %286 = vector.extract_strided_slice %282 {offsets = [0, 128], sizes = [16, 128], strides = [1, 1]} : vector<16x384xf32> to vector<16x128xf32>
    %287 = vector.extract_strided_slice %282 {offsets = [0, 256], sizes = [16, 128], strides = [1, 1]} : vector<16x384xf32> to vector<16x128xf32>
    %288 = arith.mulf %286, %246 : vector<16x128xf32>
    %289 = arith.mulf %285, %284 : vector<16x128xf32>
    %290 = arith.addf %288, %289 : vector<16x128xf32>
    %291 = math.tanh %290 : vector<16x128xf32>
    %292 = arith.mulf %287, %291 : vector<16x128xf32>
    %293 = arith.truncf %292 : vector<16x128xf32> to vector<16x128xbf16>
    %cst_56 = arith.constant dense<0.000000e+00> : vector<16x512xf32>
    %294 = tpu.matmul %293, %1, %cst_56 {dimension_numbers = #tpu.dot_dimension_numbers<[1], [0], [0], [1], [0, 0, 1, 1], [], []>} : vector<16x128xbf16>, vector<128x512xbf16>, vector<16x512xf32> -> vector<16x512xf32>
    %295 = arith.addf %271, %294 : vector<16x512xf32>
    %296 = vector.extract_strided_slice %295 {offsets = [0, 0], sizes = [16, 384], strides = [1, 1]} : vector<16x512xf32> to vector<16x384xf32>
    %297 = arith.negf %296 : vector<16x384xf32>
    %298 = math.exp %297 : vector<16x384xf32>
    %cst_57 = arith.constant 1.000000e+00 : f32
    %299 = vector.broadcast %cst_57 : f32 to vector<16x384xf32>
    %300 = arith.addf %299, %298 : vector<16x384xf32>
    %301 = arith.divf %299, %300 : vector<16x384xf32>
    %302 = vector.extract_strided_slice %295 {offsets = [0, 384], sizes = [16, 128], strides = [1, 1]} : vector<16x512xf32> to vector<16x128xf32>
    %303 = math.tanh %302 : vector<16x128xf32>
    %304 = vector.extract_strided_slice %301 {offsets = [0, 0], sizes = [16, 128], strides = [1, 1]} : vector<16x384xf32> to vector<16x128xf32>
    %305 = vector.extract_strided_slice %301 {offsets = [0, 128], sizes = [16, 128], strides = [1, 1]} : vector<16x384xf32> to vector<16x128xf32>
    %306 = vector.extract_strided_slice %301 {offsets = [0, 256], sizes = [16, 128], strides = [1, 1]} : vector<16x384xf32> to vector<16x128xf32>
    %307 = arith.mulf %305, %265 : vector<16x128xf32>
    %308 = arith.mulf %304, %303 : vector<16x128xf32>
    %309 = arith.addf %307, %308 : vector<16x128xf32>
    %310 = math.tanh %309 : vector<16x128xf32>
    %311 = arith.mulf %306, %310 : vector<16x128xf32>
    %312 = arith.truncf %311 : vector<16x128xf32> to vector<16x128xbf16>
    %cst_58 = arith.constant dense<0.000000e+00> : vector<16x512xf32>
    %313 = tpu.matmul %312, %2, %cst_58 {dimension_numbers = #tpu.dot_dimension_numbers<[1], [0], [0], [1], [0, 0, 1, 1], [], []>} : vector<16x128xbf16>, vector<128x512xbf16>, vector<16x512xf32> -> vector<16x512xf32>
    %314 = vector.broadcast %3 : vector<1x512xf32> to vector<16x512xf32>
    %315 = arith.addf %314, %313 : vector<16x512xf32>
    %c7 = arith.constant 7 : index
    %c0_59 = arith.constant 0 : index
    %c0_60 = arith.constant 0 : index
    %316 = vector.load %arg0[%c7, %c0_59, %c0_60] : memref<8x16x512xf32, #tpu.memory_space<vmem>>, vector<1x16x512xf32>
    %317 = vector.shape_cast %316 : vector<1x16x512xf32> to vector<16x512xf32>
    %318 = arith.truncf %292 : vector<16x128xf32> to vector<16x128xbf16>
    %cst_61 = arith.constant dense<0.000000e+00> : vector<16x512xf32>
    %319 = tpu.matmul %318, %0, %cst_61 {dimension_numbers = #tpu.dot_dimension_numbers<[1], [0], [0], [1], [0, 0, 1, 1], [], []>} : vector<16x128xbf16>, vector<128x512xbf16>, vector<16x512xf32> -> vector<16x512xf32>
    %320 = arith.addf %317, %319 : vector<16x512xf32>
    %321 = vector.extract_strided_slice %320 {offsets = [0, 0], sizes = [16, 384], strides = [1, 1]} : vector<16x512xf32> to vector<16x384xf32>
    %322 = arith.negf %321 : vector<16x384xf32>
    %323 = math.exp %322 : vector<16x384xf32>
    %cst_62 = arith.constant 1.000000e+00 : f32
    %324 = vector.broadcast %cst_62 : f32 to vector<16x384xf32>
    %325 = arith.addf %324, %323 : vector<16x384xf32>
    %326 = arith.divf %324, %325 : vector<16x384xf32>
    %327 = vector.extract_strided_slice %320 {offsets = [0, 384], sizes = [16, 128], strides = [1, 1]} : vector<16x512xf32> to vector<16x128xf32>
    %328 = math.tanh %327 : vector<16x128xf32>
    %329 = vector.extract_strided_slice %326 {offsets = [0, 0], sizes = [16, 128], strides = [1, 1]} : vector<16x384xf32> to vector<16x128xf32>
    %330 = vector.extract_strided_slice %326 {offsets = [0, 128], sizes = [16, 128], strides = [1, 1]} : vector<16x384xf32> to vector<16x128xf32>
    %331 = vector.extract_strided_slice %326 {offsets = [0, 256], sizes = [16, 128], strides = [1, 1]} : vector<16x384xf32> to vector<16x128xf32>
    %332 = arith.mulf %330, %290 : vector<16x128xf32>
    %333 = arith.mulf %329, %328 : vector<16x128xf32>
    %334 = arith.addf %332, %333 : vector<16x128xf32>
    %335 = math.tanh %334 : vector<16x128xf32>
    %336 = arith.mulf %331, %335 : vector<16x128xf32>
    %337 = arith.truncf %336 : vector<16x128xf32> to vector<16x128xbf16>
    %cst_63 = arith.constant dense<0.000000e+00> : vector<16x512xf32>
    %338 = tpu.matmul %337, %1, %cst_63 {dimension_numbers = #tpu.dot_dimension_numbers<[1], [0], [0], [1], [0, 0, 1, 1], [], []>} : vector<16x128xbf16>, vector<128x512xbf16>, vector<16x512xf32> -> vector<16x512xf32>
    %339 = arith.addf %315, %338 : vector<16x512xf32>
    %340 = vector.extract_strided_slice %339 {offsets = [0, 0], sizes = [16, 384], strides = [1, 1]} : vector<16x512xf32> to vector<16x384xf32>
    %341 = arith.negf %340 : vector<16x384xf32>
    %342 = math.exp %341 : vector<16x384xf32>
    %cst_64 = arith.constant 1.000000e+00 : f32
    %343 = vector.broadcast %cst_64 : f32 to vector<16x384xf32>
    %344 = arith.addf %343, %342 : vector<16x384xf32>
    %345 = arith.divf %343, %344 : vector<16x384xf32>
    %346 = vector.extract_strided_slice %339 {offsets = [0, 384], sizes = [16, 128], strides = [1, 1]} : vector<16x512xf32> to vector<16x128xf32>
    %347 = math.tanh %346 : vector<16x128xf32>
    %348 = vector.extract_strided_slice %345 {offsets = [0, 0], sizes = [16, 128], strides = [1, 1]} : vector<16x384xf32> to vector<16x128xf32>
    %349 = vector.extract_strided_slice %345 {offsets = [0, 128], sizes = [16, 128], strides = [1, 1]} : vector<16x384xf32> to vector<16x128xf32>
    %350 = vector.extract_strided_slice %345 {offsets = [0, 256], sizes = [16, 128], strides = [1, 1]} : vector<16x384xf32> to vector<16x128xf32>
    %351 = arith.mulf %349, %309 : vector<16x128xf32>
    %352 = arith.mulf %348, %347 : vector<16x128xf32>
    %353 = arith.addf %351, %352 : vector<16x128xf32>
    %354 = math.tanh %353 : vector<16x128xf32>
    %355 = arith.mulf %350, %354 : vector<16x128xf32>
    %c0_65 = arith.constant 0 : index
    %c0_66 = arith.constant 0 : index
    %356 = vector.load %arg5[%c0_65, %c0_66] : memref<128x128xf32, #tpu.memory_space<vmem>>, vector<128x128xf32>
    %cst_67 = arith.constant dense<0.000000e+00> : vector<16x128xf32>
    %357 = tpu.matmul %355, %356, %cst_67 {dimension_numbers = #tpu.dot_dimension_numbers<[1], [0], [0], [1], [0, 0, 1, 1], [], []>} : vector<16x128xf32>, vector<128x128xf32>, vector<16x128xf32> -> vector<16x128xf32>
    %c0_68 = arith.constant 0 : index
    %c0_69 = arith.constant 0 : index
    %358 = vector.load %arg6[%c0_68, %c0_69] : memref<1x128xf32, #tpu.memory_space<vmem>>, vector<1x128xf32>
    %359 = vector.broadcast %358 : vector<1x128xf32> to vector<16x128xf32>
    %360 = arith.addf %357, %359 : vector<16x128xf32>
    %c0_70 = arith.constant 0 : index
    %c0_71 = arith.constant 0 : index
    %361 = vector.load %arg7[%c0_70, %c0_71] : memref<16x128xf32, #tpu.memory_space<vmem>>, vector<16x128xf32>
    tpu.vector_store %arg7[%c0_70, %c0_71], %360 {strides = array<i32>} : memref<16x128xf32, #tpu.memory_space<vmem>>, vector<16x128xf32>,
    return
  }
}

</mosaic_0001>

<bundles_post_ra>
// kernel: lstm_forecaster.1
= control target key start
LH: loop header
LB: loop body
LE: loop exit
PB: predicated region body
PF: predicated region fallthrough
CT: control target
= control target key end

     0   :  { %12 = vsyncpa [#allocation3], 0  ;;  %s5030_s24 = smov [#allocation2]   ;;  %s7949_s0 = inlined_call_operand.vmem [shape: f32[8,16,512], index: 0, kind: input, shape index: {}]   ;;  %s7950_s1 = inlined_call_operand.vmem [shape: bf16[128,512], index: 1, kind: input, shape index: {}]   ;;  %s7951_s2 = inlined_call_operand.vmem [shape: bf16[128,512], index: 2, kind: input, shape index: {}]   ;;  %s7952_s3 = inlined_call_operand.hbm [shape: bf16[128,512], index: 3, kind: input, shape index: {}]   ;;  %s7953_s4 = inlined_call_operand.vmem [shape: f32[1,512], index: 4, kind: input, shape index: {}]   ;;  %s7954_s5 = inlined_call_operand.vmem [shape: f32[128,128], index: 5, kind: input, shape index: {}]   ;;  %s7955_s6 = inlined_call_operand.vmem [shape: f32[1,128], index: 6, kind: input, shape index: {}]   ;;  %s7956_s7 = inlined_call_operand.vmem [shape: f32[16,128], index: 7, kind: output, shape index: {}]  }
   0x1   :  { %s24_s25 = sshll.u32 %s5030_s24, 4  ;;  %s25_s25 = int_to_ptr.vmem [resolvable:$true] %s24_s25 }
   0x2   :  { %s5016_s26 = scalar_lea.vmem %s25_s25, 4096  ;;  %p5021_p1 = scmp.lt.s32.totalorder %s25_s25, %s25_s25 }
   0x3   :  { %p5017_p0 = scmp.ne.s32.totalorder %s25_s25, %s5016_s26  ;;  %p5022_p2 = scmp.lt.s32.totalorder %s5016_s26, %s5016_s26 }
   0x5   :  { %p5023_p3 = por %p5022_p2, %p5021_p1 }
   0x7   :  { %p5024_p4 = pnand %p5023_p3, %p5017_p0 }
   0x9   :  { %5027 = shalt.err (!%p5024_p4)
}
   0xa   :  { %s5031_s27 = smov 256   ;;  %s5032_s28 = smov 16  }
   0xb   :  { %30 = dma.hbm_to_vmem [thread:$0]  %s7952_s3, 4096, %s25_s25, [#allocation3], %s5031_s27, %s5031_s27, %s5032_s28  }
   0xc   :  { %5028 = dma.done.wait [#allocation3], 4096  }
   0xd   :  { %5029 = vsyncadd [#allocation3], 4294963200  ;;  %v7957_v0 = vmov 0   ;;  %v5082_v1 = vld [vmem:[%s7950_s1 + $0xe4] ss:$16 sps:$4 sm:$0xff]  }
   0xe   :  { %338 = vmatprep.mubr.bf16.mxu0 %v7957_v0  ;;  %381 = vmatprep.mubr.bf16.mxu1 %v7957_v0  ;;  %v5087_v2 = vld [vmem:[%s7950_s1 + $0xe0] ss:$16 sps:$4 sm:$0xff]   ;;  %v5093_v3 = vld [vmem:[%s7950_s1 + $0xc4] ss:$16 sps:$4 sm:$0xff]   ;;  %v5110_v6 = vld [vmem:[%s7950_s1 + $0xec] ss:$16 sps:$4 sm:$0xff]  }
   0xf   :  { %306 = vmatprep.subr.bf16.mxu0 %v5082_v1  ;;  %v5099_v4 = vld [vmem:[%s7950_s1 + $0xc0] ss:$16 sps:$4 sm:$0xff]   ;;  %v5105_v5 = vld [vmem:[%s7950_s1 + $0xa4] ss:$16 sps:$4 sm:$0xff]   ;;  %v5115_v7 = vld [vmem:[%s7950_s1 + $0xe8] ss:$16 sps:$4 sm:$0xff]   ;;  %349 = vmatprep.subr.bf16.mxu1 %v5110_v6 }
  0x10   :  { %307 = vmatpush1.bf16.msra.mxu0 %v5087_v2  ;;  %v5121_v8 = vld [vmem:[%s7950_s1 + $0xa0] ss:$16 sps:$4 sm:$0xff]   ;;  %v5128_v9 = vld [vmem:[%s7950_s1 + $0x84] ss:$16 sps:$4 sm:$0xff]   ;;  %350 = vmatpush1.bf16.msra.mxu1 %v5115_v7  ;;  %v5134_v10 = vld [vmem:[%s7950_s1 + $0xcc] ss:$16 sps:$4 sm:$0xff]  }
  0x11   :  { %308 = vmatprep.subr.bf16.mxu0 %v5093_v3  ;;  %v5139_v11 = vld [vmem:[%s7950_s1 + $0xc8] ss:$16 sps:$4 sm:$0xff]   ;;  %351 = vmatprep.subr.bf16.mxu1 %v5134_v10  ;;  %v5146_v12 = vld [vmem:[%s7950_s1 + $0x80] ss:$16 sps:$4 sm:$0xff]   ;;  %v5151_v13 = vld [vmem:[%s7950_s1 + $0x64] ss:$16 sps:$4 sm:$0xff]  }
  0x12   :  { %v5156_v14 = vld [vmem:[%s7950_s1 + $0xac] ss:$16 sps:$4 sm:$0xff]   ;;  %v5163_v15 = vld [vmem:[%s7950_s1 + $0xa8] ss:$16 sps:$4 sm:$0xff]   ;;  %v5175_v17 = vld [vmem:[%s7950_s1 + $0x60] ss:$16 sps:$4 sm:$0xff]  }
  0x13   :  { %v5169_v16 = vld [vmem:[%s7950_s1 + $0x8c] ss:$16 sps:$4 sm:$0xff]   ;;  %v5181_v18 = vld [vmem:[%s7950_s1 + $0x44] ss:$16 sps:$4 sm:$0xff]   ;;  %v5187_v19 = vld [vmem:[%s7950_s1 + $0x88] ss:$16 sps:$4 sm:$0xff]  }
  0x14   :  { %309 = vmatpush1.bf16.msra.mxu0 %v5099_v4  ;;  %352 = vmatpush1.bf16.msra.mxu1 %v5139_v11  ;;  %v5193_v20 = vld [vmem:[%s7950_s1 + $0x6c] ss:$16 sps:$4 sm:$0xff]   ;;  %v5199_v21 = vld [vmem:[%s7950_s1 + $0x40] ss:$16 sps:$4 sm:$0xff]   ;;  %v5204_v22 = vld [vmem:[%s7950_s1 + $0x24] ss:$16 sps:$4 sm:$0xff]  }
  0x15   :  { %310 = vmatprep.subr.bf16.mxu0 %v5105_v5  ;;  %353 = vmatprep.subr.bf16.mxu1 %v5156_v14  ;;  %v5211_v23 = vld [vmem:[%s7950_s1 + $0x68] ss:$16 sps:$4 sm:$0xff]   ;;  %v5216_v24 = vld [vmem:[%s7950_s1 + $0x20] ss:$16 sps:$4 sm:$0xff]   ;;  %v5222_v25 = vld [vmem:[%s7950_s1 + $0x4c] ss:$16 sps:$4 sm:$0xff]  }
  0x16   :  { %v5227_v26 = vld [vmem:[%s7950_s1 + $0x4] ss:$16 sps:$4 sm:$0xff]   ;;  %v5232_v27 = vld [vmem:[%s7950_s1 + $0x48] ss:$16 sps:$4 sm:$0xff]   ;;  %v5238_v28 = vld [vmem:[%s7950_s1 + $0x2c] ss:$16 sps:$4 sm:$0xff]  }
  0x17   :  { %v5245_v29 = vld [vmem:[%s7950_s1] ss:$16 sps:$4 sm:$0xff]   ;;  %v5251_v30 = vld [vmem:[%s7950_s1 + $0x28] ss:$16 sps:$4 sm:$0xff]   ;;  %v5257_v31 = vld [vmem:[%s7950_s1 + $0xc] ss:$16 sps:$4 sm:$0xff]  }
  0x18   :  { %311 = vmatpush1.bf16.msra.mxu0 %v5121_v8  ;;  %354 = vmatpush1.bf16.msra.mxu1 %v5163_v15  ;;  %v5265_v32 = vld [vmem:[%s7950_s1 + $0x8] ss:$16 sps:$4 sm:$0xff]   ;;  %v5278_v33 = vld [vmem:[%s7951_s2 + $0xe4] ss:$16 sps:$4 sm:$0xff]   ;;  %v5283_v34 = vld [vmem:[%s7951_s2 + $0xec] ss:$16 sps:$4 sm:$0xff]  }
  0x19   :  { %312 = vmatprep.subr.bf16.mxu0 %v5128_v9  ;;  %355 = vmatprep.subr.bf16.mxu1 %v5169_v16  ;;  %v5288_v35 = vld [vmem:[%s7951_s2 + $0xe0] ss:$16 sps:$4 sm:$0xff]   ;;  %v5293_v36 = vld [vmem:[%s7951_s2 + $0xe8] ss:$16 sps:$4 sm:$0xff]   ;;  %v5302_v37 = vld [vmem:[%s7951_s2 + $0xc4] ss:$16 sps:$4 sm:$0xff]  }
  0x1a   :  { %v5307_v38 = vld [vmem:[%s7951_s2 + $0xcc] ss:$16 sps:$4 sm:$0xff]   ;;  %v5312_v39 = vld [vmem:[%s7951_s2 + $0xc0] ss:$16 sps:$4 sm:$0xff]   ;;  %v5317_v40 = vld [vmem:[%s7951_s2 + $0xc8] ss:$16 sps:$4 sm:$0xff]  }
  0x1b   :  { %v5326_v41 = vld [vmem:[%s7951_s2 + $0xa4] ss:$16 sps:$4 sm:$0xff]   ;;  %v5331_v42 = vld [vmem:[%s7951_s2 + $0xac] ss:$16 sps:$4 sm:$0xff]   ;;  %v5336_v43 = vld [vmem:[%s7951_s2 + $0xa0] ss:$16 sps:$4 sm:$0xff]  }
  0x1c   :  { %313 = vmatpush1.bf16.msra.mxu0 %v5146_v12  ;;  %356 = vmatpush1.bf16.msra.mxu1 %v5187_v19  ;;  %v5341_v44 = vld [vmem:[%s7951_s2 + $0xa8] ss:$16 sps:$4 sm:$0xff]   ;;  %v5350_v45 = vld [vmem:[%s7951_s2 + $0x84] ss:$16 sps:$4 sm:$0xff]   ;;  %v5355_v46 = vld [vmem:[%s7951_s2 + $0x8c] ss:$16 sps:$4 sm:$0xff]  }
  0x1d   :  { %314 = vmatprep.subr.bf16.mxu0 %v5151_v13  ;;  %357 = vmatprep.subr.bf16.mxu1 %v5193_v20  ;;  %8179 = vst [vmem:[#allocation5_spill] sm:$0xff] %v5350_v45  ;;  %8180 = vst [vmem:[#allocation6_spill] sm:$0xff] %v5355_v46  ;;  %v5360_v47 = vld [vmem:[%s7951_s2 + $0x80] ss:$16 sps:$4 sm:$0xff]   ;;  %v5365_v48 = vld [vmem:[%s7951_s2 + $0x88] ss:$16 sps:$4 sm:$0xff]  }
  0x1e   :  { %8181 = vst [vmem:[#allocation7_spill] sm:$0xff] %v5360_v47  ;;  %8182 = vst [vmem:[#allocation8_spill] sm:$0xff] %v5365_v48  ;;  %v5374_v49 = vld [vmem:[%s7951_s2 + $0x64] ss:$16 sps:$4 sm:$0xff]   ;;  %v5379_v50 = vld [vmem:[%s7951_s2 + $0x6c] ss:$16 sps:$4 sm:$0xff]  }
  0x1f   :  { %8183 = vst [vmem:[#allocation9_spill] sm:$0xff] %v5374_v49  ;;  %8184 = vst [vmem:[#allocation10_spill] sm:$0xff] %v5379_v50  ;;  %v5384_v51 = vld [vmem:[%s7951_s2 + $0x60] ss:$16 sps:$4 sm:$0xff]   ;;  %v5389_v52 = vld [vmem:[%s7951_s2 + $0x68] ss:$16 sps:$4 sm:$0xff]  }
  0x20   :  { %315 = vmatpush1.bf16.msra.mxu0 %v5175_v17  ;;  %358 = vmatpush1.bf16.msra.mxu1 %v5211_v23  ;;  %8185 = vst [vmem:[#allocation11_spill] sm:$0xff] %v5384_v51  ;;  %8186 = vst [vmem:[#allocation12_spill] sm:$0xff] %v5389_v52  ;;  %v5394_v53 = vld [vmem:[%s7951_s2 + $0x44] ss:$16 sps:$4 sm:$0xff]   ;;  %v5399_v54 = vld [vmem:[%s7951_s2 + $0x4c] ss:$16 sps:$4 sm:$0xff]  }
  0x21   :  { %316 = vmatprep.subr.bf16.mxu0 %v5181_v18  ;;  %359 = vmatprep.subr.bf16.mxu1 %v5222_v25  ;;  %8187 = vst [vmem:[#allocation13_spill] sm:$0xff] %v5394_v53  ;;  %8188 = vst [vmem:[#allocation14_spill] sm:$0xff] %v5399_v54  ;;  %v5408_v55 = vld [vmem:[%s7951_s2 + $0x40] ss:$16 sps:$4 sm:$0xff]   ;;  %v5413_v56 = vld [vmem:[%s7951_s2 + $0x48] ss:$16 sps:$4 sm:$0xff]  }
  0x22   :  { %8189 = vst [vmem:[#allocation15_spill] sm:$0xff] %v5408_v55  ;;  %8190 = vst [vmem:[#allocation16_spill] sm:$0xff] %v5413_v56  ;;  %v5420_v57 = vld [vmem:[%s7951_s2 + $0x24] ss:$16 sps:$4 sm:$0xff]   ;;  %v5425_v58 = vld [vmem:[%s7951_s2 + $0x2c] ss:$16 sps:$4 sm:$0xff]  }
  0x23   :  { %8191 = vst [vmem:[#allocation17_spill] sm:$0xff] %v5420_v57  ;;  %8192 = vst [vmem:[#allocation18_spill] sm:$0xff] %v5425_v58  ;;  %v5432_v59 = vld [vmem:[%s7951_s2 + $0x20] ss:$16 sps:$4 sm:$0xff]   ;;  %v5437_v60 = vld [vmem:[%s7951_s2 + $0x28] ss:$16 sps:$4 sm:$0xff]  }
  0x24   :  { %317 = vmatpush1.bf16.msra.mxu0 %v5199_v21  ;;  %360 = vmatpush1.bf16.msra.mxu1 %v5232_v27  ;;  %8193 = vst [vmem:[#allocation19_spill] sm:$0xff] %v5432_v59  ;;  %8194 = vst [vmem:[#allocation20_spill] sm:$0xff] %v5437_v60  ;;  %v5444_v61 = vld [vmem:[%s7951_s2 + $0x4] ss:$16 sps:$4 sm:$0xff]   ;;  %v5449_v62 = vld [vmem:[%s7951_s2 + $0xc] ss:$16 sps:$4 sm:$0xff]  }
  0x25   :  { %318 = vmatprep.subr.bf16.mxu0 %v5204_v22  ;;  %361 = vmatprep.subr.bf16.mxu1 %v5238_v28  ;;  %8195 = vst [vmem:[#allocation21_spill] sm:$0xff] %v5444_v61  ;;  %8196 = vst [vmem:[#allocation22_spill] sm:$0xff] %v5449_v62  ;;  %v5456_v63 = vld [vmem:[%s7951_s2] ss:$16 sps:$4 sm:$0xff]  }
  0x26   :  { %8197 = vst [vmem:[#allocation23_spill] sm:$0xff] %v5456_v63 }
  0x28   :  { %319 = vmatpush1.bf16.msra.mxu0 %v5216_v24  ;;  %362 = vmatpush1.bf16.msra.mxu1 %v5251_v30 }
  0x29   :  { %320 = vmatprep.subr.bf16.mxu0 %v5227_v26  ;;  %363 = vmatprep.subr.bf16.mxu1 %v5257_v31 }
  0x2c   :  { %321 = vmatpush1.bf16.msra.mxu0 %v5245_v29  ;;  %364 = vmatpush1.bf16.msra.mxu1 %v5265_v32 }
  0x2d   :  { %609 = vmatprep.subr.bf16.mxu0 %v5278_v33  ;;  %652 = vmatprep.subr.bf16.mxu1 %v5283_v34 }
  0x2f   :  { %339 = vmatmul.mubr.bf16.vlgmr.msra.gmra.mxu0 %v7957_v0  ;;  %382 = vmatmul.mubr.bf16.vlgmr.msra.gmra.mxu1 %v7957_v0 }
  0x30   :  { %641 = vmatprep.mubr.bf16.mxu0 %v7957_v0  ;;  %684 = vmatprep.mubr.bf16.mxu1 %v7957_v0  ;;  %v5461_v0 = vld [vmem:[%s7951_s2 + $0x8] ss:$16 sps:$4 sm:$0xff]  }
  0x31   :  { %610 = vmatpush1.bf16.msra.mxu0 %v5288_v35  ;;  %653 = vmatpush1.bf16.msra.mxu1 %v5293_v36  ;;  %8198 = vst [vmem:[#allocation24_spill] sm:$0xff] %v5461_v0 }
  0x32   :  { %611 = vmatprep.subr.bf16.mxu0 %v5302_v37  ;;  %654 = vmatprep.subr.bf16.mxu1 %v5307_v38 }
  0x35   :  { %612 = vmatpush1.bf16.msra.mxu0 %v5312_v39  ;;  %655 = vmatpush1.bf16.msra.mxu1 %v5317_v40 }
  0x36   :  { %613 = vmatprep.subr.bf16.mxu0 %v5326_v41  ;;  %656 = vmatprep.subr.bf16.mxu1 %v5331_v42 }
  0x39   :  { %614 = vmatpush1.bf16.msra.mxu0 %v5336_v43  ;;  %657 = vmatpush1.bf16.msra.mxu1 %v5341_v44 }
  0x3a   :  { %615 = vmatprep.subr.bf16.mxu0 %v5350_v45  ;;  %658 = vmatprep.subr.bf16.mxu1 %v5355_v46 }
  0x3d   :  { %616 = vmatpush1.bf16.msra.mxu0 %v5360_v47  ;;  %659 = vmatpush1.bf16.msra.mxu1 %v5365_v48 }
  0x3e   :  { %617 = vmatprep.subr.bf16.mxu0 %v5374_v49  ;;  %660 = vmatprep.subr.bf16.mxu1 %v5379_v50 }
  0x41   :  { %618 = vmatpush1.bf16.msra.mxu0 %v5384_v51  ;;  %661 = vmatpush1.bf16.msra.mxu1 %v5389_v52 }
  0x42   :  { %619 = vmatprep.subr.bf16.mxu0 %v5394_v53  ;;  %662 = vmatprep.subr.bf16.mxu1 %v5399_v54 }
  0x45   :  { %620 = vmatpush1.bf16.msra.mxu0 %v5408_v55  ;;  %663 = vmatpush1.bf16.msra.mxu1 %v5413_v56 }
  0x46   :  { %621 = vmatprep.subr.bf16.mxu0 %v5420_v57  ;;  %664 = vmatprep.subr.bf16.mxu1 %v5425_v58  ;;  %v139_v58 = vld [vmem:[%s7949_s0 + $0x8] sm:$0xff] }
  0x49   :  { %622 = vmatpush1.bf16.msra.mxu0 %v5432_v59  ;;  %665 = vmatpush1.bf16.msra.mxu1 %v5437_v60  ;;  %v138_v60 = vld [vmem:[%s7949_s0] sm:$0xff] }
  0x4a   :  { %623 = vmatprep.subr.bf16.mxu0 %v5444_v61  ;;  %666 = vmatprep.subr.bf16.mxu1 %v5449_v62  ;;  %v142_v61 = vld [vmem:[%s7949_s0 + $0x20] sm:$0xff] }
  0x4d   :  { %624 = vmatpush1.bf16.msra.mxu0 %v5456_v63  ;;  %667 = vmatpush1.bf16.msra.mxu1 %v5461_v0  ;;  %v143_v0 = vld [vmem:[%s7949_s0 + $0x28] sm:$0xff] }
  0xef   :  { %v340_v59 = vpop.f32.mrf.mxu0 }
  0xf0   :  { %v392_v57 = vadd.f32 %v340_v59, %v138_v60  ;;  %v383_v59 = vpop.f32.mrf.mxu1 }
  0xf1   :  { %v342_v56 = vpop.f32.mrf.mxu0 }
  0xf2   :  { %v3792_v62 = vmul.f32 -1.442695, %v392_v57  ;;  %v393_v55 = vadd.f32 %v342_v56, %v139_v58  ;;  %v140_v56 = vld [vmem:[%s7949_s0 + $0x10] sm:$0xff]  ;;  %v385_v57 = vpop.f32.mrf.mxu1  ;;  %v141_v58 = vld [vmem:[%s7949_s0 + $0x18] sm:$0xff] }
  0xf3   :  { %v344_v63 = vpop.f32.mrf.mxu0 }
  0xf4   :  { %4210 = vpow2.f32 %v3792_v62  ;;  %v3793_v54 = vmul.f32 -1.442695, %v393_v55  ;;  %v396_v53 = vadd.f32 %v344_v63, %v142_v61  ;;  %v144_v55 = vld [vmem:[%s7949_s0 + $0x30] sm:$0xff]  ;;  %v145_v62 = vld [vmem:[%s7949_s0 + $0x38] sm:$0xff] }
  0xf5   :  { %v346_v52 = vpop.f32.mrf.mxu0 }
  0xf6   :  { %4212 = vpow2.f32 %v3793_v54  ;;  %v3795_v51 = vmul.f32 -1.442695, %v396_v53  ;;  %v397_v50 = vadd.f32 %v346_v52, %v143_v0  ;;  %v394_v54 = vadd.f32 %v383_v59, %v140_v56  ;;  %v387_v53 = vpop.f32.mrf.mxu1 }
  0xf7   :  { %v395_v0 = vadd.f32 %v385_v57, %v141_v58  ;;  %v398_v52 = vadd.f32 %v387_v53, %v144_v55 }
  0xf8   :  { %4214 = vpow2.f32 %v3795_v51  ;;  %v3796_v60 = vmul.f32 -1.442695, %v397_v50  ;;  %v3794_v50 = vmul.f32 -1.442695, %v394_v54  ;;  %v389_v63 = vpop.f32.mrf.mxu1 }
  0xf9   :  { %v3797_v49 = vmul.f32 -1.442695, %v398_v52  ;;  %v399_v46 = vadd.f32 %v389_v63, %v145_v62 }
  0xfa   :  { %4216 = vpow2.f32 %v3796_v60 }
  0xfb   :  { %4218 = vtanh.f32 %v395_v0 }
 0x101   :  { %v4211_v51 = vpop.eup %4210 }
 0x102   :  { %v418_v61 = vadd.f32 1.0, %v4211_v51 }
 0x103   :  { %v4213_v60 = vpop.eup %4212 }
 0x104   :  { %4220 = vrcp.f32 %v418_v61  ;;  %v419_v48 = vadd.f32 1.0, %v4213_v60 }
 0x105   :  { %v4215_v47 = vpop.eup %4214  ;;  %4222 = vpow2.f32 %v3794_v50 }
 0x106   :  { %4224 = vrcp.f32 %v419_v48  ;;  %v421_v59 = vadd.f32 1.0, %v4215_v47 }
 0x107   :  { %v4217_v56 = vpop.eup %4216  ;;  %4226 = vpow2.f32 %v3797_v49 }
 0x108   :  { %4228 = vrcp.f32 %v421_v59  ;;  %v422_v57 = vadd.f32 1.0, %v4217_v56  ;;  %v4219_v58 = vpop.eup %4218 }
 0x109   :  { %4230 = vtanh.f32 %v399_v46 }
 0x10a   :  { %4232 = vrcp.f32 %v422_v57 }
 0x111   :  { %v4221_v55 = vpop.eup %4220 }
 0x112   :  { %v4223_v54 = vpop.eup %4222  ;;  %v440_v52 = vmul.f32 %v4221_v55, %v4219_v58 }
 0x113   :  { %v4225_v53 = vpop.eup %4224  ;;  %v420_v60 = vadd.f32 1.0, %v4223_v54 }
 0x114   :  { %v4227_v51 = vpop.eup %4226  ;;  %v438_v0 = vmul.f32 0.0, %v4225_v53  ;;  %v5503_v53 = vld [vmem:[#allocation2 + $0xe4] ss:$16 sps:$4 sm:$0xff]  }
 0x115   :  { %v4229_v61 = vpop.eup %4228  ;;  %v423_v47 = vadd.f32 1.0, %v4227_v51  ;;  %4234 = vrcp.f32 %v420_v60  ;;  %8202 = vst [vmem:[#allocation27_spill] sm:$0xff] %v5503_v53  ;;  %v5505_v51 = vld [vmem:[#allocation2 + $0xec] ss:$16 sps:$4 sm:$0xff]   ;;  %933 = vmatprep.subr.bf16.mxu0 %v5503_v53 }
 0x116   :  { %v4231_v45 = vpop.eup %4230  ;;  %v5491_v50 = vadd.f32 %v440_v52, %v438_v0  ;;  %8203 = vst [vmem:[#allocation28_spill] sm:$0xff] %v5505_v51  ;;  %v5507_v0 = vld [vmem:[#allocation2 + $0xe0] ss:$16 sps:$4 sm:$0xff]   ;;  %v5509_v52 = vld [vmem:[#allocation2 + $0xe8] ss:$16 sps:$4 sm:$0xff]   ;;  %976 = vmatprep.subr.bf16.mxu1 %v5505_v51 }
 0x117   :  { %v4233_v48 = vpop.eup %4232  ;;  %v441_v49 = vmul.f32 %v4231_v45, %v4229_v61  ;;  %v8201_v45 = vmov 0   ;;  %8204 = vst [vmem:[#allocation29_spill] sm:$0xff] %v5507_v0  ;;  %8205 = vst [vmem:[#allocation30_spill] sm:$0xff] %v5509_v52  ;;  %v5515_v61 = vld [vmem:[#allocation2 + $0xc4] ss:$16 sps:$4 sm:$0xff]  }
 0x118   :  { %8199 = vst [vmem:[#allocation25_spill] sm:$0xff] %v5491_v50  ;;  %v439_v62 = vmul.f32 0.0, %v4233_v48  ;;  %4236 = vtanh.f32 %v5491_v50  ;;  %8206 = vst [vmem:[#allocation31_spill] sm:$0xff] %v5515_v61  ;;  %v5517_v60 = vld [vmem:[#allocation2 + $0xcc] ss:$16 sps:$4 sm:$0xff]  }
 0x119   :  { %4238 = vrcp.f32 %v423_v47  ;;  %8207 = vst [vmem:[#allocation32_spill] sm:$0xff] %v5517_v60  ;;  %v5519_v48 = vld [vmem:[#allocation2 + $0xc0] ss:$16 sps:$4 sm:$0xff]   ;;  %v5521_v47 = vld [vmem:[#allocation2 + $0xc8] ss:$16 sps:$4 sm:$0xff]  }
 0x11a   :  { %v5494_v46 = vadd.f32 %v441_v49, %v439_v62  ;;  %8208 = vst [vmem:[#allocation33_spill] sm:$0xff] %v5519_v48  ;;  %8209 = vst [vmem:[#allocation34_spill] sm:$0xff] %v5521_v47  ;;  %v5527_v62 = vld [vmem:[#allocation2 + $0xa4] ss:$16 sps:$4 sm:$0xff]   ;;  %v5529_v49 = vld [vmem:[#allocation2 + $0xac] ss:$16 sps:$4 sm:$0xff]  }
 0x11b   :  { %8210 = vst [vmem:[#allocation35_spill] sm:$0xff] %v5527_v62  ;;  %8211 = vst [vmem:[#allocation36_spill] sm:$0xff] %v5529_v49 }
 0x11c   :  { %8200 = vst [vmem:[#allocation26_spill] sm:$0xff] %v5494_v46  ;;  %4240 = vtanh.f32 %v5494_v46 }
 0x122   :  { %v4235_v63 = vpop.eup %4234 }
 0x125   :  { %v4237_v59 = vpop.eup %4236 }
 0x126   :  { %v4239_v56 = vpop.eup %4238  ;;  %v446_v58 = vmul.f32 %v4237_v59, %v4235_v63  ;;  %v5531_v63 = vld [vmem:[#allocation2 + $0xa0] ss:$16 sps:$4 sm:$0xff]   ;;  %v5533_v59 = vld [vmem:[#allocation2 + $0xa8] ss:$16 sps:$4 sm:$0xff]  }
 0x127   :  { %8212 = vst [vmem:[#allocation37_spill] sm:$0xff] %v5531_v63  ;;  %8213 = vst [vmem:[#allocation38_spill] sm:$0xff] %v5533_v59 }
 0x129   :  { %v4241_v57 = vpop.eup %4240 }
 0x12a   :  { %v447_v55 = vmul.f32 %v4241_v57, %v4239_v56  ;;  %v5539_v56 = vld [vmem:[#allocation2 + $0x84] ss:$16 sps:$4 sm:$0xff]   ;;  %v5541_v57 = vld [vmem:[#allocation2 + $0x8c] ss:$16 sps:$4 sm:$0xff]  }
 0x12b   :  { %8214 = vst [vmem:[#allocation39_spill] sm:$0xff] %v5539_v56  ;;  %8215 = vst [vmem:[#allocation40_spill] sm:$0xff] %v5541_v57 }
 0x12c   :  { %v5497_v54 = vpack.c.bf16 %v447_v55, %v446_v58  ;;  %v5543_v58 = vld [vmem:[#allocation2 + $0x80] ss:$16 sps:$4 sm:$0xff]   ;;  %v5545_v55 = vld [vmem:[#allocation2 + $0x88] ss:$16 sps:$4 sm:$0xff]  }
 0x12d   :  { %8216 = vst [vmem:[#allocation41_spill] sm:$0xff] %v5543_v58  ;;  %8217 = vst [vmem:[#allocation42_spill] sm:$0xff] %v5545_v55 }
 0x12e   :  { %642 = vmatmul.mubr.bf16.vlgmr.msra.gmra.mxu0 %v5497_v54  ;;  %685 = vmatmul.mubr.bf16.vlgmr.msra.gmra.mxu1 %v5497_v54 }
 0x12f   :  { %965 = vmatprep.mubr.bf16.mxu0 %v8201_v45  ;;  %1008 = vmatprep.mubr.bf16.mxu1 %v8201_v45 }
 0x130   :  { %934 = vmatpush1.bf16.msra.mxu0 %v5507_v0  ;;  %977 = vmatpush1.bf16.msra.mxu1 %v5509_v52 }
 0x131   :  { %935 = vmatprep.subr.bf16.mxu0 %v5515_v61  ;;  %978 = vmatprep.subr.bf16.mxu1 %v5517_v60 }
 0x134   :  { %936 = vmatpush1.bf16.msra.mxu0 %v5519_v48  ;;  %979 = vmatpush1.bf16.msra.mxu1 %v5521_v47  ;;  %v5549_v47 = vld [vmem:[#allocation2 + $0x64] ss:$16 sps:$4 sm:$0xff]  }
 0x135   :  { %937 = vmatprep.subr.bf16.mxu0 %v5527_v62  ;;  %980 = vmatprep.subr.bf16.mxu1 %v5529_v49  ;;  %8218 = vst [vmem:[#allocation43_spill] sm:$0xff] %v5549_v47  ;;  %v5551_v62 = vld [vmem:[#allocation2 + $0x6c] ss:$16 sps:$4 sm:$0xff]   ;;  %v5561_v49 = vld [vmem:[#allocation2 + $0x44] ss:$16 sps:$4 sm:$0xff]  }
 0x136   :  { %8219 = vst [vmem:[#allocation44_spill] sm:$0xff] %v5551_v62  ;;  %8222 = vst [vmem:[#allocation47_spill] sm:$0xff] %v5561_v49 }
 0x138   :  { %938 = vmatpush1.bf16.msra.mxu0 %v5531_v63  ;;  %981 = vmatpush1.bf16.msra.mxu1 %v5533_v59  ;;  %v5555_v59 = vld [vmem:[#allocation2 + $0x60] ss:$16 sps:$4 sm:$0xff]   ;;  %v5557_v63 = vld [vmem:[#allocation2 + $0x68] ss:$16 sps:$4 sm:$0xff]  }
 0x139   :  { %939 = vmatprep.subr.bf16.mxu0 %v5539_v56  ;;  %982 = vmatprep.subr.bf16.mxu1 %v5541_v57  ;;  %8220 = vst [vmem:[#allocation45_spill] sm:$0xff] %v5555_v59  ;;  %8221 = vst [vmem:[#allocation46_spill] sm:$0xff] %v5557_v63  ;;  %v5563_v56 = vld [vmem:[#allocation2 + $0x4c] ss:$16 sps:$4 sm:$0xff]   ;;  %v5567_v57 = vld [vmem:[#allocation2 + $0x40] ss:$16 sps:$4 sm:$0xff]  }
 0x13a   :  { %8223 = vst [vmem:[#allocation48_spill] sm:$0xff] %v5563_v56  ;;  %8224 = vst [vmem:[#allocation49_spill] sm:$0xff] %v5567_v57 }
 0x13c   :  { %940 = vmatpush1.bf16.msra.mxu0 %v5543_v58  ;;  %983 = vmatpush1.bf16.msra.mxu1 %v5545_v55  ;;  %v5569_v58 = vld [vmem:[#allocation2 + $0x48] ss:$16 sps:$4 sm:$0xff]   ;;  %v5573_v55 = vld [vmem:[#allocation2 + $0x24] ss:$16 sps:$4 sm:$0xff]  }
 0x13d   :  { %941 = vmatprep.subr.bf16.mxu0 %v5549_v47  ;;  %984 = vmatprep.subr.bf16.mxu1 %v5551_v62  ;;  %8225 = vst [vmem:[#allocation50_spill] sm:$0xff] %v5569_v58  ;;  %8226 = vst [vmem:[#allocation51_spill] sm:$0xff] %v5573_v55  ;;  %v5575_v47 = vld [vmem:[#allocation2 + $0x2c] ss:$16 sps:$4 sm:$0xff]   ;;  %v5579_v62 = vld [vmem:[#allocation2 + $0x20] ss:$16 sps:$4 sm:$0xff]  }
 0x13e   :  { %8227 = vst [vmem:[#allocation52_spill] sm:$0xff] %v5575_v47  ;;  %8228 = vst [vmem:[#allocation53_spill] sm:$0xff] %v5579_v62 }
 0x140   :  { %942 = vmatpush1.bf16.msra.mxu0 %v5555_v59  ;;  %985 = vmatpush1.bf16.msra.mxu1 %v5557_v63  ;;  %v5581_v59 = vld [vmem:[#allocation2 + $0x28] ss:$16 sps:$4 sm:$0xff]   ;;  %v5585_v63 = vld [vmem:[#allocation2 + $0x4] ss:$16 sps:$4 sm:$0xff]  }
 0x141   :  { %943 = vmatprep.subr.bf16.mxu0 %v5561_v49  ;;  %986 = vmatprep.subr.bf16.mxu1 %v5563_v56  ;;  %8229 = vst [vmem:[#allocation54_spill] sm:$0xff] %v5581_v59  ;;  %8230 = vst [vmem:[#allocation55_spill] sm:$0xff] %v5585_v63  ;;  %v5587_v49 = vld [vmem:[#allocation2 + $0xc] ss:$16 sps:$4 sm:$0xff]   ;;  %v5591_v56 = vld [vmem:[#allocation2] ss:$16 sps:$4 sm:$0xff]  }
 0x142   :  { %8231 = vst [vmem:[#allocation56_spill] sm:$0xff] %v5587_v49  ;;  %8232 = vst [vmem:[#allocation57_spill] sm:$0xff] %v5591_v56 }
 0x144   :  { %944 = vmatpush1.bf16.msra.mxu0 %v5567_v57  ;;  %987 = vmatpush1.bf16.msra.mxu1 %v5569_v58  ;;  %v5593_v57 = vld [vmem:[#allocation2 + $0x8] ss:$16 sps:$4 sm:$0xff]  }
 0x145   :  { %945 = vmatprep.subr.bf16.mxu0 %v5573_v55  ;;  %988 = vmatprep.subr.bf16.mxu1 %v5575_v47  ;;  %8233 = vst [vmem:[#allocation58_spill] sm:$0xff] %v5593_v57  ;;  %v696_v47 = vlaneseq }
 0x148   :  { %946 = vmatpush1.bf16.msra.mxu0 %v5579_v62  ;;  %989 = vmatpush1.bf16.msra.mxu1 %v5581_v59  ;;  %v697_v62 = vshrl.u32 %v696_v47, 7  ;;  %v137_v59 = vld [vmem:[%s7953_s4] sm:$0xf] }
 0x149   :  { %947 = vmatprep.subr.bf16.mxu0 %v5585_v63  ;;  %990 = vmatprep.subr.bf16.mxu1 %v5587_v49 }
 0x14a   :  { %v698_v55 = vsub.s32 0, %v697_v62  ;;  %v702_v58 = vsub.s32 1, %v697_v62 }
 0x14c   :  { %948 = vmatpush1.bf16.msra.mxu0 %v5591_v56  ;;  %991 = vmatpush1.bf16.msra.mxu1 %v5593_v57  ;;  %v5604_v48 = vrot.slane %v137_v59, %v698_v55  ;;  %v5606_v63 = vrot.slane %v137_v59, %v702_v58 }
 0x14d   :  { %1036 = vmatprep.subr.bf16.mxu0 %v5082_v1  ;;  %1079 = vmatprep.subr.bf16.mxu1 %v5110_v6  ;;  %v706_v6 = vsub.s32 2, %v697_v62 }
 0x14e   :  { %8234 = vst [vmem:[#allocation59_spill] sm:$0xff] %v5604_v48  ;;  %8235 = vst [vmem:[#allocation60_spill] sm:$0xff] %v5606_v63 }
 0x14f   :  { %v5612_v50 = vrot.slane %v137_v59, %v706_v6 }
 0x151   :  { %8236 = vst [vmem:[#allocation61_spill] sm:$0xff] %v5612_v50 }
 0x1ee   :  { %v643_v49 = vpop.f32.mrf.mxu0  ;;  %v686_v47 = vpop.f32.mrf.mxu1 }
 0x1ef   :  { %v716_v56 = vadd.f32 %v5604_v48, %v643_v49 }
 0x1f0   :  { %v645_v57 = vpop.f32.mrf.mxu0  ;;  %v688_v51 = vpop.f32.mrf.mxu1 }
 0x1f1   :  { %v3830_v60 = vmul.f32 -1.442695, %v716_v56  ;;  %v717_v1 = vadd.f32 %v5606_v63, %v645_v57  ;;  %v710_v56 = vsub.s32 3, %v697_v62  ;;  %v718_v57 = vadd.f32 %v5612_v50, %v686_v47 }
 0x1f2   :  { %v647_v61 = vpop.f32.mrf.mxu0  ;;  %v690_v53 = vpop.f32.mrf.mxu1 }
 0x1f3   :  { %4242 = vpow2.f32 %v3830_v60  ;;  %v3831_v52 = vmul.f32 -1.442695, %v717_v1  ;;  %v720_v0 = vadd.f32 %v5604_v48, %v647_v61  ;;  %v5615_v60 = vrot.slane %v137_v59, %v710_v56 }
 0x1f4   :  { %v649_v46 = vpop.f32.mrf.mxu0  ;;  %v3832_v1 = vmul.f32 -1.442695, %v718_v57  ;;  %v722_v61 = vadd.f32 %v5612_v50, %v690_v53 }
 0x1f5   :  { %4244 = vpow2.f32 %v3831_v52  ;;  %v3833_v55 = vmul.f32 -1.442695, %v720_v0  ;;  %v721_v58 = vadd.f32 %v5606_v63, %v649_v46  ;;  %v719_v0 = vadd.f32 %v5615_v60, %v688_v51  ;;  %v692_v46 = vpop.f32.mrf.mxu1 }
 0x1f6   :  { %v3835_v63 = vmul.f32 -1.442695, %v722_v61  ;;  %v723_v47 = vadd.f32 %v5615_v60, %v692_v46 }
 0x1f7   :  { %4246 = vpow2.f32 %v3833_v55  ;;  %v3834_v49 = vmul.f32 -1.442695, %v721_v58 }
 0x1f9   :  { %4248 = vpow2.f32 %v3834_v49 }
 0x1fa   :  { %4250 = vpow2.f32 %v3832_v1 }
 0x200   :  { %v4243_v48 = vpop.eup %4242 }
 0x201   :  { %v742_v52 = vadd.f32 1.0, %v4243_v48 }
 0x202   :  { %v4245_v6 = vpop.eup %4244 }
 0x203   :  { %4252 = vrcp.f32 %v742_v52  ;;  %v743_v55 = vadd.f32 1.0, %v4245_v6 }
 0x204   :  { %v4247_v62 = vpop.eup %4246  ;;  %4254 = vtanh.f32 %v719_v0 }
 0x205   :  { %4256 = vrcp.f32 %v743_v55  ;;  %v745_v59 = vadd.f32 1.0, %v4247_v62 }
 0x206   :  { %v4249_v58 = vpop.eup %4248  ;;  %4258 = vpow2.f32 %v3835_v63 }
 0x207   :  { %4260 = vrcp.f32 %v745_v59  ;;  %v746_v53 = vadd.f32 1.0, %v4249_v58  ;;  %v4251_v51 = vpop.eup %4250 }
 0x208   :  { %4262 = vtanh.f32 %v723_v47  ;;  %v744_v6 = vadd.f32 1.0, %v4251_v51 }
 0x209   :  { %4264 = vrcp.f32 %v746_v53 }
 0x20a   :  { %4266 = vrcp.f32 %v744_v6 }
 0x210   :  { %v4253_v48 = vpop.eup %4252 }
 0x211   :  { %v4255_v49 = vpop.eup %4254 }
 0x212   :  { %v4257_v56 = vpop.eup %4256  ;;  %v764_v61 = vmul.f32 %v4255_v49, %v4253_v48 }
 0x213   :  { %v4259_v57 = vpop.eup %4258  ;;  %v762_v1 = vmul.f32 0.0, %v4257_v56 }
 0x214   :  { %v4261_v52 = vpop.eup %4260  ;;  %v747_v55 = vadd.f32 1.0, %v4259_v57 }
 0x215   :  { %v4263_v0 = vpop.eup %4262  ;;  %v5620_v50 = vadd.f32 %v764_v61, %v762_v1 }
 0x216   :  { %v4265_v46 = vpop.eup %4264  ;;  %v765_v63 = vmul.f32 %v4263_v0, %v4261_v52  ;;  %v3870_v52 = vld [vmem:[%s7949_s0 + $0x50] sm:$0xff] }
 0x217   :  { %v763_v62 = vmul.f32 0.0, %v4265_v46  ;;  %4268 = vtanh.f32 %v5620_v50  ;;  %v4267_v59 = vpop.eup %4266 }
 0x218   :  { %4270 = vrcp.f32 %v747_v55  ;;  %v3874_v55 = vld [vmem:[%s7949_s0 + $0x70] sm:$0xff] }
 0x219   :  { %v5623_v47 = vadd.f32 %v765_v63, %v763_v62  ;;  %v3871_v63 = vld [vmem:[%s7949_s0 + $0x58] sm:$0xff] }
 0x21b   :  { %4272 = vtanh.f32 %v5623_v47 }
 0x224   :  { %v4269_v58 = vpop.eup %4268 }
 0x225   :  { %v4271_v53 = vpop.eup %4270  ;;  %v770_v51 = vmul.f32 %v4269_v58, %v4267_v59 }
 0x228   :  { %v4273_v48 = vpop.eup %4272 }
 0x229   :  { %v771_v49 = vmul.f32 %v4273_v48, %v4271_v53 }
 0x22b   :  { %v772_v56 = vpack.c.bf16 %v771_v49, %v770_v51  ;;  %v3875_v49 = vld [vmem:[%s7949_s0 + $0x78] sm:$0xff] }
 0x22d   :  { %966 = vmatmul.mubr.bf16.vlgmr.msra.gmra.mxu0 %v772_v56  ;;  %1009 = vmatmul.mubr.bf16.vlgmr.msra.gmra.mxu1 %v772_v56 }
 0x22e   :  { %1037 = vmatpush1.bf16.msra.mxu0 %v5087_v2  ;;  %1080 = vmatpush1.bf16.msra.mxu1 %v5115_v7  ;;  %v8237_v2 = vld [vmem:[#allocation5_spill] sm:$0xff] }
 0x22f   :  { %1038 = vmatprep.subr.bf16.mxu0 %v5093_v3  ;;  %1081 = vmatprep.subr.bf16.mxu1 %v5134_v10  ;;  %v8238_v3 = vld [vmem:[#allocation6_spill] sm:$0xff]  ;;  %v8241_v7 = vld [vmem:[#allocation9_spill] sm:$0xff]  ;;  %v8244_v10 = vld [vmem:[#allocation12_spill] sm:$0xff] }
 0x230   :  { %1068 = vmatprep.mubr.bf16.mxu0 %v8201_v45  ;;  %1111 = vmatprep.mubr.bf16.mxu1 %v8201_v45 }
 0x232   :  { %1039 = vmatpush1.bf16.msra.mxu0 %v5099_v4  ;;  %1082 = vmatpush1.bf16.msra.mxu1 %v5139_v11  ;;  %v8239_v4 = vld [vmem:[#allocation7_spill] sm:$0xff]  ;;  %v8245_v11 = vld [vmem:[#allocation13_spill] sm:$0xff] }
 0x233   :  { %1040 = vmatprep.subr.bf16.mxu0 %v5105_v5  ;;  %1083 = vmatprep.subr.bf16.mxu1 %v5156_v14  ;;  %v8240_v5 = vld [vmem:[#allocation8_spill] sm:$0xff] }
 0x234   :  { %v8248_v14 = vld [vmem:[#allocation16_spill] sm:$0xff] }
 0x236   :  { %1041 = vmatpush1.bf16.msra.mxu0 %v5121_v8  ;;  %1084 = vmatpush1.bf16.msra.mxu1 %v5163_v15  ;;  %v8242_v8 = vld [vmem:[#allocation10_spill] sm:$0xff]  ;;  %v8249_v15 = vld [vmem:[#allocation17_spill] sm:$0xff] }
 0x237   :  { %1042 = vmatprep.subr.bf16.mxu0 %v5128_v9  ;;  %1085 = vmatprep.subr.bf16.mxu1 %v5169_v16  ;;  %v8243_v9 = vld [vmem:[#allocation11_spill] sm:$0xff]  ;;  %v8250_v16 = vld [vmem:[#allocation18_spill] sm:$0xff] }
 0x23a   :  { %1043 = vmatpush1.bf16.msra.mxu0 %v5146_v12  ;;  %1086 = vmatpush1.bf16.msra.mxu1 %v5187_v19  ;;  %v8246_v12 = vld [vmem:[#allocation14_spill] sm:$0xff]  ;;  %v8253_v19 = vld [vmem:[#allocation21_spill] sm:$0xff] }
 0x23b   :  { %1044 = vmatprep.subr.bf16.mxu0 %v5151_v13  ;;  %1087 = vmatprep.subr.bf16.mxu1 %v5193_v20  ;;  %v8247_v13 = vld [vmem:[#allocation15_spill] sm:$0xff]  ;;  %v8254_v20 = vld [vmem:[#allocation22_spill] sm:$0xff] }
 0x23e   :  { %1045 = vmatpush1.bf16.msra.mxu0 %v5175_v17  ;;  %1088 = vmatpush1.bf16.msra.mxu1 %v5211_v23  ;;  %v8251_v17 = vld [vmem:[#allocation19_spill] sm:$0xff] }
 0x23f   :  { %1046 = vmatprep.subr.bf16.mxu0 %v5181_v18  ;;  %1089 = vmatprep.subr.bf16.mxu1 %v5222_v25  ;;  %v8252_v18 = vld [vmem:[#allocation20_spill] sm:$0xff]  ;;  %v8257_v23 = vld [vmem:[#allocation27_spill] sm:$0xff] }
 0x242   :  { %1047 = vmatpush1.bf16.msra.mxu0 %v5199_v21  ;;  %1090 = vmatpush1.bf16.msra.mxu1 %v5232_v27  ;;  %v8255_v21 = vld [vmem:[#allocation23_spill] sm:$0xff] }
 0x243   :  { %1048 = vmatprep.subr.bf16.mxu0 %v5204_v22  ;;  %1091 = vmatprep.subr.bf16.mxu1 %v5238_v28  ;;  %v8256_v22 = vld [vmem:[#allocation24_spill] sm:$0xff] }
 0x246   :  { %1049 = vmatpush1.bf16.msra.mxu0 %v5216_v24  ;;  %1092 = vmatpush1.bf16.msra.mxu1 %v5251_v30  ;;  %v8258_v24 = vld [vmem:[#allocation28_spill] sm:$0xff] }
 0x247   :  { %1050 = vmatprep.subr.bf16.mxu0 %v5227_v26  ;;  %1093 = vmatprep.subr.bf16.mxu1 %v5257_v31  ;;  %v3868_v31 = vld [vmem:[%s7949_s0 + $0x40] sm:$0xff] }
 0x24a   :  { %1051 = vmatpush1.bf16.msra.mxu0 %v5245_v29  ;;  %1094 = vmatpush1.bf16.msra.mxu1 %v5265_v32 }
 0x24b   :  { %1179 = vmatprep.subr.bf16.mxu0 %v5278_v33  ;;  %1222 = vmatprep.subr.bf16.mxu1 %v5283_v34  ;;  %v3869_v34 = vld [vmem:[%s7949_s0 + $0x48] sm:$0xff] }
 0x24d   :  { %1069 = vmatmul.mubr.bf16.vlgmr.msra.gmra.mxu0 %v5497_v54  ;;  %1112 = vmatmul.mubr.bf16.vlgmr.msra.gmra.mxu1 %v5497_v54 }
 0x24e   :  { %1180 = vmatpush1.bf16.msra.mxu0 %v5288_v35  ;;  %1223 = vmatpush1.bf16.msra.mxu1 %v5293_v36 }
 0x24f   :  { %1181 = vmatprep.subr.bf16.mxu0 %v5302_v37  ;;  %1224 = vmatprep.subr.bf16.mxu1 %v5307_v38  ;;  %v3872_v37 = vld [vmem:[%s7949_s0 + $0x60] sm:$0xff] }
 0x250   :  { %1211 = vmatprep.mubr.bf16.mxu0 %v8201_v45  ;;  %1254 = vmatprep.mubr.bf16.mxu1 %v8201_v45 }
 0x252   :  { %1182 = vmatpush1.bf16.msra.mxu0 %v5312_v39  ;;  %1225 = vmatpush1.bf16.msra.mxu1 %v5317_v40 }
 0x253   :  { %1183 = vmatprep.subr.bf16.mxu0 %v5326_v41  ;;  %1226 = vmatprep.subr.bf16.mxu1 %v5331_v42  ;;  %v3873_v42 = vld [vmem:[%s7949_s0 + $0x68] sm:$0xff] }
 0x256   :  { %1184 = vmatpush1.bf16.msra.mxu0 %v5336_v43  ;;  %1227 = vmatpush1.bf16.msra.mxu1 %v5341_v44 }
 0x257   :  { %1185 = vmatprep.subr.bf16.mxu0 %v8237_v2  ;;  %1228 = vmatprep.subr.bf16.mxu1 %v8238_v3 }
 0x25a   :  { %1186 = vmatpush1.bf16.msra.mxu0 %v8239_v4  ;;  %1229 = vmatpush1.bf16.msra.mxu1 %v8240_v5 }
 0x25b   :  { %1187 = vmatprep.subr.bf16.mxu0 %v8241_v7  ;;  %1230 = vmatprep.subr.bf16.mxu1 %v8242_v8 }
 0x25e   :  { %1188 = vmatpush1.bf16.msra.mxu0 %v8243_v9  ;;  %1231 = vmatpush1.bf16.msra.mxu1 %v8244_v10 }
 0x25f   :  { %1189 = vmatprep.subr.bf16.mxu0 %v8245_v11  ;;  %1232 = vmatprep.subr.bf16.mxu1 %v8246_v12 }
 0x262   :  { %1190 = vmatpush1.bf16.msra.mxu0 %v8247_v13  ;;  %1233 = vmatpush1.bf16.msra.mxu1 %v8248_v14 }
 0x263   :  { %1191 = vmatprep.subr.bf16.mxu0 %v8249_v15  ;;  %1234 = vmatprep.subr.bf16.mxu1 %v8250_v16  ;;  %v8259_v16 = vld [vmem:[#allocation25_spill] sm:$0xff] }
 0x266   :  { %1192 = vmatpush1.bf16.msra.mxu0 %v8251_v17  ;;  %1235 = vmatpush1.bf16.msra.mxu1 %v8252_v18 }
 0x267   :  { %1193 = vmatprep.subr.bf16.mxu0 %v8253_v19  ;;  %1236 = vmatprep.subr.bf16.mxu1 %v8254_v20 }
 0x26a   :  { %1194 = vmatpush1.bf16.msra.mxu0 %v8255_v21  ;;  %1237 = vmatpush1.bf16.msra.mxu1 %v8256_v22 }
 0x26b   :  { %1322 = vmatprep.subr.bf16.mxu0 %v8257_v23  ;;  %1365 = vmatprep.subr.bf16.mxu1 %v8258_v24 }
 0x2ed   :  { %v5696_v25 = vpop.f32.mrf.mxu0  ;;  %v5700_v27 = vpop.f32.mrf.mxu1 }
 0x2ef   :  { %v5698_v26 = vpop.f32.mrf.mxu0  ;;  %v5704_v29 = vpop.f32.mrf.mxu1 }
 0x2f1   :  { %v5702_v28 = vpop.f32.mrf.mxu0  ;;  %v5711_v32 = vpop.f32.mrf.mxu1 }
 0x2f3   :  { %v5706_v30 = vpop.f32.mrf.mxu0  ;;  %v5719_v38 = vpop.f32.mrf.mxu1 }
 0x30d   :  { %v1070_v33 = vpop.f32.mrf.mxu0  ;;  %v1113_v43 = vpop.f32.mrf.mxu1 }
 0x30e   :  { %v1122_v35 = vadd.f32 %v3868_v31, %v1070_v33  ;;  %v1124_v46 = vadd.f32 %v3870_v52, %v1113_v43  ;;  %v8264_v52 = vld [vmem:[#allocation32_spill] sm:$0xff] }
 0x30f   :  { %v1072_v36 = vpop.f32.mrf.mxu0  ;;  %v1115_v6 = vpop.f32.mrf.mxu1 }
 0x310   :  { %v3876_v39 = vmul.f32 -1.442695, %v1122_v35  ;;  %v1123_v40 = vadd.f32 %v3869_v34, %v1072_v36  ;;  %v3878_v59 = vmul.f32 -1.442695, %v1124_v46  ;;  %v1125_v48 = vadd.f32 %v3871_v63, %v1115_v6  ;;  %v8260_v34 = vld [vmem:[#allocation26_spill] sm:$0xff]  ;;  %v8265_v6 = vld [vmem:[#allocation33_spill] sm:$0xff] }
 0x311   :  { %v1074_v41 = vpop.f32.mrf.mxu0  ;;  %v1117_v62 = vpop.f32.mrf.mxu1  ;;  %v8267_v46 = vld [vmem:[#allocation35_spill] sm:$0xff]  ;;  %v8270_v63 = vld [vmem:[#allocation38_spill] sm:$0xff] }
 0x312   :  { %4274 = vpow2.f32 %v3876_v39  ;;  %v3877_v44 = vmul.f32 -1.442695, %v1123_v40  ;;  %v1126_v54 = vadd.f32 %v3872_v37, %v1074_v41  ;;  %v1128_v58 = vadd.f32 %v3874_v55, %v1117_v62  ;;  %v8268_v55 = vld [vmem:[#allocation36_spill] sm:$0xff]  ;;  %v8269_v62 = vld [vmem:[#allocation37_spill] sm:$0xff] }
 0x313   :  { %v1076_v57 = vpop.f32.mrf.mxu0  ;;  %v1119_v56 = vpop.f32.mrf.mxu1 }
 0x314   :  { %4276 = vpow2.f32 %v3877_v44  ;;  %v3879_v1 = vmul.f32 -1.442695, %v1126_v54  ;;  %v1127_v61 = vadd.f32 %v3873_v42, %v1076_v57  ;;  %v3881_v3 = vmul.f32 -1.442695, %v1128_v58  ;;  %v8261_v57 = vld [vmem:[#allocation29_spill] sm:$0xff]  ;;  %v8272_v58 = vld [vmem:[#allocation40_spill] sm:$0xff] }
 0x315   :  { %v1129_v7 = vadd.f32 %v3875_v49, %v1119_v56  ;;  %v8276_v49 = vld [vmem:[#allocation44_spill] sm:$0xff]  ;;  %v8277_v56 = vld [vmem:[#allocation45_spill] sm:$0xff] }
 0x316   :  { %4278 = vpow2.f32 %v3879_v1  ;;  %v3880_v0 = vmul.f32 -1.442695, %v1127_v61  ;;  %v8262_v1 = vld [vmem:[#allocation30_spill] sm:$0xff]  ;;  %v8263_v61 = vld [vmem:[#allocation31_spill] sm:$0xff] }
 0x318   :  { %4280 = vpow2.f32 %v3880_v0  ;;  %v8266_v0 = vld [vmem:[#allocation34_spill] sm:$0xff] }
 0x319   :  { %4282 = vpow2.f32 %v3878_v59  ;;  %v8271_v59 = vld [vmem:[#allocation39_spill] sm:$0xff] }
 0x31f   :  { %v4275_v53 = vpop.eup %4274 }
 0x320   :  { %v1148_v51 = vadd.f32 1.0, %v4275_v53  ;;  %v8273_v53 = vld [vmem:[#allocation41_spill] sm:$0xff] }
 0x321   :  { %v4277_v2 = vpop.eup %4276 }
 0x322   :  { %4284 = vrcp.f32 %v1148_v51  ;;  %v1149_v4 = vadd.f32 1.0, %v4277_v2  ;;  %v8275_v51 = vld [vmem:[#allocation43_spill] sm:$0xff]  ;;  %v8278_v2 = vld [vmem:[#allocation46_spill] sm:$0xff] }
 0x323   :  { %v4279_v5 = vpop.eup %4278  ;;  %4286 = vtanh.f32 %v1125_v48  ;;  %v8274_v48 = vld [vmem:[#allocation42_spill] sm:$0xff] }
 0x324   :  { %4288 = vrcp.f32 %v1149_v4  ;;  %v1151_v8 = vadd.f32 1.0, %v4279_v5  ;;  %v8280_v4 = vld [vmem:[#allocation48_spill] sm:$0xff]  ;;  %v8281_v5 = vld [vmem:[#allocation49_spill] sm:$0xff] }
 0x325   :  { %v4281_v9 = vpop.eup %4280  ;;  %4290 = vpow2.f32 %v3881_v3  ;;  %v8279_v3 = vld [vmem:[#allocation47_spill] sm:$0xff] }
 0x326   :  { %4292 = vrcp.f32 %v1151_v8  ;;  %v1152_v10 = vadd.f32 1.0, %v4281_v9  ;;  %v4283_v11 = vpop.eup %4282  ;;  %v8283_v8 = vld [vmem:[#allocation51_spill] sm:$0xff]  ;;  %v8284_v9 = vld [vmem:[#allocation52_spill] sm:$0xff] }
 0x327   :  { %4294 = vtanh.f32 %v1129_v7  ;;  %v1150_v20 = vadd.f32 1.0, %v4283_v11  ;;  %v8282_v7 = vld [vmem:[#allocation50_spill] sm:$0xff] }
 0x328   :  { %4296 = vrcp.f32 %v1152_v10  ;;  %v8285_v10 = vld [vmem:[#allocation53_spill] sm:$0xff]  ;;  %v8286_v11 = vld [vmem:[#allocation54_spill] sm:$0xff] }
 0x329   :  { %4298 = vrcp.f32 %v1150_v20 }
 0x32f   :  { %v4285_v12 = vpop.eup %4284 }
 0x330   :  { %v4287_v13 = vpop.eup %4286 }
 0x331   :  { %v4289_v14 = vpop.eup %4288  ;;  %v1170_v18 = vmul.f32 %v4287_v13, %v4285_v12  ;;  %v8287_v12 = vld [vmem:[#allocation55_spill] sm:$0xff]  ;;  %v8288_v13 = vld [vmem:[#allocation56_spill] sm:$0xff] }
 0x332   :  { %v4291_v15 = vpop.eup %4290  ;;  %v1168_v17 = vmul.f32 %v4289_v14, %v8259_v16  ;;  %v8289_v14 = vld [vmem:[#allocation57_spill] sm:$0xff] }
 0x333   :  { %v4293_v19 = vpop.eup %4292  ;;  %v1153_v33 = vadd.f32 1.0, %v4291_v15  ;;  %v8290_v15 = vld [vmem:[#allocation58_spill] sm:$0xff]  ;;  %v5783_v16 = vld [vmem:[%s7950_s1 + $0xe4] ss:$16 sps:$4 sm:$0xff]  }
 0x334   :  { %v4295_v21 = vpop.eup %4294  ;;  %v5737_v22 = vadd.f32 %v1170_v18, %v1168_v17  ;;  %v5789_v17 = vld [vmem:[%s7950_s1 + $0xec] ss:$16 sps:$4 sm:$0xff]   ;;  %v8291_v18 = vld [vmem:[#allocation59_spill] sm:$0xff] }
 0x335   :  { %v4297_v31 = vpop.eup %4296  ;;  %v1171_v36 = vmul.f32 %v4295_v21, %v4293_v19  ;;  %v1019_v19 = vadd.f32 %v5696_v25, %v8291_v18  ;;  %v8292_v21 = vld [vmem:[#allocation60_spill] sm:$0xff] }
 0x336   :  { %v1169_v35 = vmul.f32 %v4297_v31, %v8260_v34  ;;  %4300 = vtanh.f32 %v5737_v22  ;;  %v4299_v39 = vpop.eup %4298  ;;  %v1020_v31 = vadd.f32 %v5698_v26, %v8292_v21 }
 0x337   :  { %4302 = vrcp.f32 %v1153_v33 }
 0x338   :  { %v5741_v37 = vadd.f32 %v1171_v36, %v1169_v35  ;;  %v1023_v35 = vadd.f32 %v5702_v28, %v8291_v18 }
 0x33a   :  { %4304 = vtanh.f32 %v5741_v37 }
 0x343   :  { %v4301_v40 = vpop.eup %4300 }
 0x344   :  { %v4303_v41 = vpop.eup %4302  ;;  %v1176_v43 = vmul.f32 %v4301_v40, %v4299_v39 }
 0x347   :  { %v4305_v42 = vpop.eup %4304 }
 0x348   :  { %v1177_v44 = vmul.f32 %v4305_v42, %v4303_v41  ;;  %v1024_v42 = vadd.f32 %v5706_v30, %v8292_v21  ;;  %v1022_v30 = vadd.f32 %v5704_v29, %v5615_v60 }
 0x34a   :  { %v5744_v54 = vpack.c.bf16 %v1177_v44, %v1176_v43 }
 0x34c   :  { %1212 = vmatmul.mubr.bf16.vlgmr.msra.gmra.mxu0 %v5744_v54  ;;  %1255 = vmatmul.mubr.bf16.vlgmr.msra.gmra.mxu1 %v5744_v54 }
 0x34d   :  { %1323 = vmatpush1.bf16.msra.mxu0 %v8261_v57  ;;  %1366 = vmatpush1.bf16.msra.mxu1 %v8262_v1 }
 0x34e   :  { %1324 = vmatprep.subr.bf16.mxu0 %v8263_v61  ;;  %1367 = vmatprep.subr.bf16.mxu1 %v8264_v52  ;;  %v8293_v61 = vld [vmem:[#allocation61_spill] sm:$0xff] }
 0x34f   :  { %1354 = vmatprep.mubr.bf16.mxu0 %v8201_v45  ;;  %1397 = vmatprep.mubr.bf16.mxu1 %v8201_v45  ;;  %v1021_v52 = vadd.f32 %v5700_v27, %v8293_v61 }
 0x351   :  { %1325 = vmatpush1.bf16.msra.mxu0 %v8265_v6  ;;  %1368 = vmatpush1.bf16.msra.mxu1 %v8266_v0 }
 0x352   :  { %1326 = vmatprep.subr.bf16.mxu0 %v8267_v46  ;;  %1369 = vmatprep.subr.bf16.mxu1 %v8268_v55  ;;  %v1025_v46 = vadd.f32 %v5711_v32, %v8293_v61 }
 0x355   :  { %1327 = vmatpush1.bf16.msra.mxu0 %v8269_v62  ;;  %1370 = vmatpush1.bf16.msra.mxu1 %v8270_v63 }
 0x356   :  { %1328 = vmatprep.subr.bf16.mxu0 %v8271_v59  ;;  %1371 = vmatprep.subr.bf16.mxu1 %v8272_v58 }
 0x359   :  { %1329 = vmatpush1.bf16.msra.mxu0 %v8273_v53  ;;  %1372 = vmatpush1.bf16.msra.mxu1 %v8274_v48  ;;  %v1026_v53 = vadd.f32 %v5719_v38, %v5615_v60 }
 0x35a   :  { %1330 = vmatprep.subr.bf16.mxu0 %v8275_v51  ;;  %1373 = vmatprep.subr.bf16.mxu1 %v8276_v49 }
 0x35d   :  { %1331 = vmatpush1.bf16.msra.mxu0 %v8277_v56  ;;  %1374 = vmatpush1.bf16.msra.mxu1 %v8278_v2 }
 0x35e   :  { %1332 = vmatprep.subr.bf16.mxu0 %v8279_v3  ;;  %1375 = vmatprep.subr.bf16.mxu1 %v8280_v4 }
 0x361   :  { %1333 = vmatpush1.bf16.msra.mxu0 %v8281_v5  ;;  %1376 = vmatpush1.bf16.msra.mxu1 %v8282_v7 }
 0x362   :  { %1334 = vmatprep.subr.bf16.mxu0 %v8283_v8  ;;  %1377 = vmatprep.subr.bf16.mxu1 %v8284_v9 }
 0x365   :  { %1335 = vmatpush1.bf16.msra.mxu0 %v8285_v10  ;;  %1378 = vmatpush1.bf16.msra.mxu1 %v8286_v11 }
 0x366   :  { %1336 = vmatprep.subr.bf16.mxu0 %v8287_v12  ;;  %1379 = vmatprep.subr.bf16.mxu1 %v8288_v13 }
 0x369   :  { %1337 = vmatpush1.bf16.msra.mxu0 %v8289_v14  ;;  %1380 = vmatpush1.bf16.msra.mxu1 %v8290_v15 }
 0x36a   :  { %1425 = vmatprep.subr.bf16.mxu0 %v5783_v16  ;;  %1468 = vmatprep.subr.bf16.mxu1 %v5789_v17 }
 0x40c   :  { %v1213_v20 = vpop.f32.mrf.mxu0  ;;  %v1256_v39 = vpop.f32.mrf.mxu1 }
 0x40d   :  { %v1265_v33 = vadd.f32 %v1213_v20, %v1019_v19  ;;  %v1267_v6 = vadd.f32 %v1256_v39, %v1021_v52  ;;  %v5869_v52 = vld [vmem:[%s7950_s1 + $0xa0] ss:$16 sps:$4 sm:$0xff]  }
 0x40e   :  { %v1215_v34 = vpop.f32.mrf.mxu0  ;;  %v1258_v57 = vpop.f32.mrf.mxu1 }
 0x40f   :  { %v3882_v36 = vmul.f32 -1.442695, %v1265_v33  ;;  %v1266_v40 = vadd.f32 %v1215_v34, %v1020_v31  ;;  %v3884_v62 = vmul.f32 -1.442695, %v1267_v6  ;;  %v1268_v63 = vadd.f32 %v1258_v57, %v1022_v30  ;;  %v5851_v57 = vld [vmem:[%s7950_s1 + $0xc8] ss:$16 sps:$4 sm:$0xff]  }
 0x410   :  { %v1217_v41 = vpop.f32.mrf.mxu0  ;;  %v1260_v0 = vpop.f32.mrf.mxu1  ;;  %v5881_v6 = vld [vmem:[%s7950_s1 + $0x84] ss:$16 sps:$4 sm:$0xff]   ;;  %v5899_v30 = vld [vmem:[%s7950_s1 + $0x88] ss:$16 sps:$4 sm:$0xff]  }
 0x411   :  { %4306 = vpow2.f32 %v3882_v36  ;;  %v3883_v43 = vmul.f32 -1.442695, %v1266_v40  ;;  %v1269_v44 = vadd.f32 %v1217_v41, %v1023_v35  ;;  %v1271_v55 = vadd.f32 %v1260_v0, %v1025_v46  ;;  %v5887_v0 = vld [vmem:[%s7950_s1 + $0x8c] ss:$16 sps:$4 sm:$0xff]   ;;  %v5893_v46 = vld [vmem:[%s7950_s1 + $0x80] ss:$16 sps:$4 sm:$0xff]  }
 0x412   :  { %v1219_v25 = vpop.f32.mrf.mxu0  ;;  %v1262_v59 = vpop.f32.mrf.mxu1 }
 0x413   :  { %4308 = vpow2.f32 %v3883_v43  ;;  %v3885_v1 = vmul.f32 -1.442695, %v1269_v44  ;;  %v1270_v26 = vadd.f32 %v1219_v25, %v1024_v42  ;;  %v3887_v27 = vmul.f32 -1.442695, %v1271_v55  ;;  %v5825_v42 = vld [vmem:[%s7950_s1 + $0xe8] ss:$16 sps:$4 sm:$0xff]  }
 0x414   :  { %v1272_v49 = vadd.f32 %v1262_v59, %v1026_v53  ;;  %v5831_v43 = vld [vmem:[%s7950_s1 + $0xc4] ss:$16 sps:$4 sm:$0xff]   ;;  %v5837_v44 = vld [vmem:[%s7950_s1 + $0xcc] ss:$16 sps:$4 sm:$0xff]   ;;  %v5845_v25 = vld [vmem:[%s7950_s1 + $0xc0] ss:$16 sps:$4 sm:$0xff]  }
 0x415   :  { %4310 = vpow2.f32 %v3885_v1  ;;  %v3886_v28 = vmul.f32 -1.442695, %v1270_v26  ;;  %v5857_v1 = vld [vmem:[%s7950_s1 + $0xa4] ss:$16 sps:$4 sm:$0xff]   ;;  %v5863_v26 = vld [vmem:[%s7950_s1 + $0xac] ss:$16 sps:$4 sm:$0xff]  }
 0x416   :  { %v5905_v55 = vld [vmem:[%s7950_s1 + $0x64] ss:$16 sps:$4 sm:$0xff]   ;;  %v5923_v59 = vld [vmem:[%s7950_s1 + $0x68] ss:$16 sps:$4 sm:$0xff]   ;;  %v5935_v53 = vld [vmem:[%s7950_s1 + $0x4c] ss:$16 sps:$4 sm:$0xff]  }
 0x417   :  { %4312 = vpow2.f32 %v3886_v28  ;;  %v5875_v28 = vld [vmem:[%s7950_s1 + $0xa8] ss:$16 sps:$4 sm:$0xff]  }
 0x418   :  { %4314 = vpow2.f32 %v3884_v62  ;;  %v5911_v62 = vld [vmem:[%s7950_s1 + $0x6c] ss:$16 sps:$4 sm:$0xff]  }
 0x419   :  { %4316 = vtanh.f32 %v1268_v63  ;;  %v5917_v63 = vld [vmem:[%s7950_s1 + $0x60] ss:$16 sps:$4 sm:$0xff]  }
 0x41e   :  { %v4307_v58 = vpop.eup %4306 }
 0x41f   :  { %v1291_v48 = vadd.f32 1.0, %v4307_v58  ;;  %v5929_v58 = vld [vmem:[%s7950_s1 + $0x44] ss:$16 sps:$4 sm:$0xff]  }
 0x420   :  { %v4309_v51 = vpop.eup %4308 }
 0x421   :  { %4318 = vrcp.f32 %v1291_v48  ;;  %v1292_v56 = vadd.f32 1.0, %v4309_v51  ;;  %v5947_v48 = vld [vmem:[%s7950_s1 + $0x48] ss:$16 sps:$4 sm:$0xff]   ;;  %v5953_v51 = vld [vmem:[%s7950_s1 + $0x24] ss:$16 sps:$4 sm:$0xff]  }
 0x422   :  { %v4311_v32 = vpop.eup %4310  ;;  %4320 = vpow2.f32 %v3887_v27  ;;  %v5941_v27 = vld [vmem:[%s7950_s1 + $0x40] ss:$16 sps:$4 sm:$0xff]  }
 0x423   :  { %4322 = vrcp.f32 %v1292_v56  ;;  %v1294_v29 = vadd.f32 1.0, %v4311_v32  ;;  %v5965_v56 = vld [vmem:[%s7950_s1 + $0x20] ss:$16 sps:$4 sm:$0xff]   ;;  %v5971_v32 = vld [vmem:[%s7950_s1 + $0x28] ss:$16 sps:$4 sm:$0xff]  }
 0x424   :  { %v4313_v2 = vpop.eup %4312  ;;  %4324 = vtanh.f32 %v1272_v49  ;;  %v5959_v49 = vld [vmem:[%s7950_s1 + $0x2c] ss:$16 sps:$4 sm:$0xff]  }
 0x425   :  { %4326 = vrcp.f32 %v1294_v29  ;;  %v1295_v3 = vadd.f32 1.0, %v4313_v2  ;;  %v4315_v4 = vpop.eup %4314  ;;  %v5977_v29 = vld [vmem:[%s7950_s1 + $0x4] ss:$16 sps:$4 sm:$0xff]   ;;  %v5983_v2 = vld [vmem:[%s7950_s1 + $0xc] ss:$16 sps:$4 sm:$0xff]  }
 0x426   :  { %v4317_v5 = vpop.eup %4316  ;;  %v1293_v13 = vadd.f32 1.0, %v4315_v4  ;;  %8294 = vst [vmem:[#allocation5_spill] sm:$0xff] %v5977_v29  ;;  %8295 = vst [vmem:[#allocation6_spill] sm:$0xff] %v5983_v2  ;;  %v5995_v4 = vld [vmem:[%s7950_s1 + $0x8] ss:$16 sps:$4 sm:$0xff]  }
 0x427   :  { %4328 = vrcp.f32 %v1295_v3  ;;  %v5989_v3 = vld [vmem:[%s7950_s1] ss:$16 sps:$4 sm:$0xff]   ;;  %8297 = vst [vmem:[#allocation8_spill] sm:$0xff] %v5995_v4 }
 0x428   :  { %4330 = vrcp.f32 %v1293_v13  ;;  %8296 = vst [vmem:[#allocation7_spill] sm:$0xff] %v5989_v3  ;;  %v6059_v13 = vld [vmem:[%s7951_s2 + $0xac] ss:$16 sps:$4 sm:$0xff]  }
 0x429   :  { %8307 = vst [vmem:[#allocation18_spill] sm:$0xff] %v6059_v13 }
 0x42e   :  { %v4319_v38 = vpop.eup %4318 }
 0x42f   :  { %v4321_v7 = vpop.eup %4320  ;;  %v1313_v8 = vmul.f32 %v4319_v38, %v4317_v5  ;;  %v6001_v5 = vld [vmem:[%s7951_s2 + $0xe4] ss:$16 sps:$4 sm:$0xff]   ;;  %v6007_v38 = vld [vmem:[%s7951_s2 + $0xec] ss:$16 sps:$4 sm:$0xff]  }
 0x430   :  { %v4323_v9 = vpop.eup %4322  ;;  %v1296_v20 = vadd.f32 1.0, %v4321_v7  ;;  %8298 = vst [vmem:[#allocation9_spill] sm:$0xff] %v6001_v5  ;;  %8299 = vst [vmem:[#allocation10_spill] sm:$0xff] %v6007_v38  ;;  %v6015_v7 = vld [vmem:[%s7951_s2 + $0xe0] ss:$16 sps:$4 sm:$0xff]  }
 0x431   :  { %v4325_v10 = vpop.eup %4324  ;;  %v1311_v11 = vmul.f32 %v4323_v9, %v5620_v50  ;;  %8300 = vst [vmem:[#allocation11_spill] sm:$0xff] %v6015_v7  ;;  %v6027_v9 = vld [vmem:[%s7951_s2 + $0xc4] ss:$16 sps:$4 sm:$0xff]  }
 0x432   :  { %v4327_v12 = vpop.eup %4326  ;;  %8302 = vst [vmem:[#allocation13_spill] sm:$0xff] %v6027_v9 }
 0x433   :  { %v5809_v14 = vadd.f32 %v1313_v8, %v1311_v11  ;;  %v1314_v15 = vmul.f32 %v4327_v12, %v4325_v10  ;;  %v6021_v8 = vld [vmem:[%s7951_s2 + $0xe8] ss:$16 sps:$4 sm:$0xff]   ;;  %v6041_v10 = vld [vmem:[%s7951_s2 + $0xc0] ss:$16 sps:$4 sm:$0xff]   ;;  %v6053_v12 = vld [vmem:[%s7951_s2 + $0xa4] ss:$16 sps:$4 sm:$0xff]  }
 0x434   :  { %v4329_v19 = vpop.eup %4328  ;;  %8301 = vst [vmem:[#allocation12_spill] sm:$0xff] %v6021_v8  ;;  %8304 = vst [vmem:[#allocation15_spill] sm:$0xff] %v6041_v10  ;;  %v6047_v11 = vld [vmem:[%s7951_s2 + $0xc8] ss:$16 sps:$4 sm:$0xff]  }
 0x435   :  { %v1312_v31 = vmul.f32 %v4329_v19, %v5623_v47  ;;  %4332 = vtanh.f32 %v5809_v14  ;;  %v4331_v34 = vpop.eup %4330  ;;  %v5819_v47 = vld [vmem:[%s7950_s1 + $0xe0] ss:$16 sps:$4 sm:$0xff]   ;;  %8305 = vst [vmem:[#allocation16_spill] sm:$0xff] %v6047_v11  ;;  %8306 = vst [vmem:[#allocation17_spill] sm:$0xff] %v6053_v12  ;;  %v6071_v19 = vld [vmem:[%s7951_s2 + $0xa8] ss:$16 sps:$4 sm:$0xff]  }
 0x436   :  { %4334 = vrcp.f32 %v1296_v20  ;;  %8309 = vst [vmem:[#allocation20_spill] sm:$0xff] %v6071_v19  ;;  %v6077_v20 = vld [vmem:[%s7951_s2 + $0x84] ss:$16 sps:$4 sm:$0xff]  }
 0x437   :  { %v5813_v33 = vadd.f32 %v1314_v15, %v1312_v31  ;;  %v6065_v15 = vld [vmem:[%s7951_s2 + $0xa0] ss:$16 sps:$4 sm:$0xff]   ;;  %8310 = vst [vmem:[#allocation21_spill] sm:$0xff] %v6077_v20  ;;  %v6083_v31 = vld [vmem:[%s7951_s2 + $0x8c] ss:$16 sps:$4 sm:$0xff]  }
 0x438   :  { %8308 = vst [vmem:[#allocation19_spill] sm:$0xff] %v6065_v15  ;;  %8311 = vst [vmem:[#allocation22_spill] sm:$0xff] %v6083_v31 }
 0x439   :  { %4336 = vtanh.f32 %v5813_v33 }
 0x442   :  { %v4333_v35 = vpop.eup %4332 }
 0x443   :  { %v4335_v50 = vpop.eup %4334  ;;  %v1319_v39 = vmul.f32 %v4333_v35, %v4331_v34  ;;  %v6089_v34 = vld [vmem:[%s7951_s2 + $0x80] ss:$16 sps:$4 sm:$0xff]   ;;  %v6095_v35 = vld [vmem:[%s7951_s2 + $0x88] ss:$16 sps:$4 sm:$0xff]  }
 0x444   :  { %8312 = vst [vmem:[#allocation23_spill] sm:$0xff] %v6089_v34  ;;  %8313 = vst [vmem:[#allocation24_spill] sm:$0xff] %v6095_v35 }
 0x446   :  { %v4337_v36 = vpop.eup %4336 }
 0x447   :  { %v1320_v40 = vmul.f32 %v4337_v36, %v4335_v50  ;;  %v6101_v50 = vld [vmem:[%s7951_s2 + $0x64] ss:$16 sps:$4 sm:$0xff]   ;;  %v6107_v36 = vld [vmem:[%s7951_s2 + $0x6c] ss:$16 sps:$4 sm:$0xff]  }
 0x448   :  { %8314 = vst [vmem:[#allocation27_spill] sm:$0xff] %v6101_v50  ;;  %8315 = vst [vmem:[#allocation28_spill] sm:$0xff] %v6107_v36 }
 0x449   :  { %v1321_v41 = vpack.c.bf16 %v1320_v40, %v1319_v39  ;;  %v6113_v39 = vld [vmem:[%s7951_s2 + $0x60] ss:$16 sps:$4 sm:$0xff]   ;;  %v6119_v40 = vld [vmem:[%s7951_s2 + $0x68] ss:$16 sps:$4 sm:$0xff]  }
 0x44a   :  { %8316 = vst [vmem:[#allocation25_spill] sm:$0xff] %v6113_v39  ;;  %8317 = vst [vmem:[#allocation26_spill] sm:$0xff] %v6119_v40 }
 0x44b   :  { %1355 = vmatmul.mubr.bf16.vlgmr.msra.gmra.mxu0 %v1321_v41  ;;  %1398 = vmatmul.mubr.bf16.vlgmr.msra.gmra.mxu1 %v1321_v41  ;;  %v6125_v41 = vld [vmem:[%s7951_s2 + $0x44] ss:$16 sps:$4 sm:$0xff]  }
 0x44c   :  { %1426 = vmatpush1.bf16.msra.mxu0 %v5819_v47  ;;  %1469 = vmatpush1.bf16.msra.mxu1 %v5825_v42  ;;  %8318 = vst [vmem:[#allocation29_spill] sm:$0xff] %v6125_v41 }
 0x44d   :  { %1427 = vmatprep.subr.bf16.mxu0 %v5831_v43  ;;  %1470 = vmatprep.subr.bf16.mxu1 %v5837_v44 }
 0x44e   :  { %1457 = vmatprep.mubr.bf16.mxu0 %v8201_v45  ;;  %1500 = vmatprep.mubr.bf16.mxu1 %v8201_v45 }
 0x450   :  { %1428 = vmatpush1.bf16.msra.mxu0 %v5845_v25  ;;  %1471 = vmatpush1.bf16.msra.mxu1 %v5851_v57 }
 0x451   :  { %1429 = vmatprep.subr.bf16.mxu0 %v5857_v1  ;;  %1472 = vmatprep.subr.bf16.mxu1 %v5863_v26 }
 0x454   :  { %1430 = vmatpush1.bf16.msra.mxu0 %v5869_v52  ;;  %1473 = vmatpush1.bf16.msra.mxu1 %v5875_v28 }
 0x455   :  { %1431 = vmatprep.subr.bf16.mxu0 %v5881_v6  ;;  %1474 = vmatprep.subr.bf16.mxu1 %v5887_v0 }
 0x458   :  { %1432 = vmatpush1.bf16.msra.mxu0 %v5893_v46  ;;  %1475 = vmatpush1.bf16.msra.mxu1 %v5899_v30 }
 0x459   :  { %1433 = vmatprep.subr.bf16.mxu0 %v5905_v55  ;;  %1476 = vmatprep.subr.bf16.mxu1 %v5911_v62 }
 0x45c   :  { %1434 = vmatpush1.bf16.msra.mxu0 %v5917_v63  ;;  %1477 = vmatpush1.bf16.msra.mxu1 %v5923_v59 }
 0x45d   :  { %1435 = vmatprep.subr.bf16.mxu0 %v5929_v58  ;;  %1478 = vmatprep.subr.bf16.mxu1 %v5935_v53 }
 0x460   :  { %1436 = vmatpush1.bf16.msra.mxu0 %v5941_v27  ;;  %1479 = vmatpush1.bf16.msra.mxu1 %v5947_v48 }
 0x461   :  { %1437 = vmatprep.subr.bf16.mxu0 %v5953_v51  ;;  %1480 = vmatprep.subr.bf16.mxu1 %v5959_v49 }
 0x464   :  { %1438 = vmatpush1.bf16.msra.mxu0 %v5965_v56  ;;  %1481 = vmatpush1.bf16.msra.mxu1 %v5971_v32 }
 0x465   :  { %1439 = vmatprep.subr.bf16.mxu0 %v5977_v29  ;;  %1482 = vmatprep.subr.bf16.mxu1 %v5983_v2 }
 0x468   :  { %1440 = vmatpush1.bf16.msra.mxu0 %v5989_v3  ;;  %1483 = vmatpush1.bf16.msra.mxu1 %v5995_v4 }
 0x469   :  { %1568 = vmatprep.subr.bf16.mxu0 %v6001_v5  ;;  %1611 = vmatprep.subr.bf16.mxu1 %v6007_v38  ;;  %v3890_v5 = vld [vmem:[%s7949_s0 + $0x90] sm:$0xff] }
 0x46b   :  { %1458 = vmatmul.mubr.bf16.vlgmr.msra.gmra.mxu0 %v5744_v54  ;;  %1501 = vmatmul.mubr.bf16.vlgmr.msra.gmra.mxu1 %v5744_v54  ;;  %v6033_v54 = vld [vmem:[%s7951_s2 + $0xcc] ss:$16 sps:$4 sm:$0xff]  }
 0x46c   :  { %1569 = vmatpush1.bf16.msra.mxu0 %v6015_v7  ;;  %1612 = vmatpush1.bf16.msra.mxu1 %v6021_v8  ;;  %8303 = vst [vmem:[#allocation14_spill] sm:$0xff] %v6033_v54 }
 0x46d   :  { %1570 = vmatprep.subr.bf16.mxu0 %v6027_v9  ;;  %1613 = vmatprep.subr.bf16.mxu1 %v6033_v54  ;;  %v3893_v54 = vld [vmem:[%s7949_s0 + $0xa8] sm:$0xff] }
 0x46e   :  { %1600 = vmatprep.mubr.bf16.mxu0 %v8201_v45  ;;  %1643 = vmatprep.mubr.bf16.mxu1 %v8201_v45 }
 0x470   :  { %1571 = vmatpush1.bf16.msra.mxu0 %v6041_v10  ;;  %1614 = vmatpush1.bf16.msra.mxu1 %v6047_v11 }
 0x471   :  { %1572 = vmatprep.subr.bf16.mxu0 %v6053_v12  ;;  %1615 = vmatprep.subr.bf16.mxu1 %v6059_v13 }
 0x474   :  { %1573 = vmatpush1.bf16.msra.mxu0 %v6065_v15  ;;  %1616 = vmatpush1.bf16.msra.mxu1 %v6071_v19  ;;  %v3892_v15 = vld [vmem:[%s7949_s0 + $0xa0] sm:$0xff] }
 0x475   :  { %1574 = vmatprep.subr.bf16.mxu0 %v6077_v20  ;;  %1617 = vmatprep.subr.bf16.mxu1 %v6083_v31 }
 0x478   :  { %1575 = vmatpush1.bf16.msra.mxu0 %v6089_v34  ;;  %1618 = vmatpush1.bf16.msra.mxu1 %v6095_v35 }
 0x479   :  { %1576 = vmatprep.subr.bf16.mxu0 %v6101_v50  ;;  %1619 = vmatprep.subr.bf16.mxu1 %v6107_v36  ;;  %v6131_v36 = vld [vmem:[%s7951_s2 + $0x4c] ss:$16 sps:$4 sm:$0xff]  }
 0x47a   :  { %8319 = vst [vmem:[#allocation30_spill] sm:$0xff] %v6131_v36 }
 0x47c   :  { %1577 = vmatpush1.bf16.msra.mxu0 %v6113_v39  ;;  %1620 = vmatpush1.bf16.msra.mxu1 %v6119_v40  ;;  %v6137_v39 = vld [vmem:[%s7951_s2 + $0x40] ss:$16 sps:$4 sm:$0xff]   ;;  %v6143_v40 = vld [vmem:[%s7951_s2 + $0x48] ss:$16 sps:$4 sm:$0xff]  }
 0x47d   :  { %1578 = vmatprep.subr.bf16.mxu0 %v6125_v41  ;;  %1621 = vmatprep.subr.bf16.mxu1 %v6131_v36  ;;  %8320 = vst [vmem:[#allocation31_spill] sm:$0xff] %v6137_v39  ;;  %8321 = vst [vmem:[#allocation32_spill] sm:$0xff] %v6143_v40  ;;  %v6149_v41 = vld [vmem:[%s7951_s2 + $0x24] ss:$16 sps:$4 sm:$0xff]   ;;  %v6155_v36 = vld [vmem:[%s7951_s2 + $0x2c] ss:$16 sps:$4 sm:$0xff]  }
 0x47e   :  { %8322 = vst [vmem:[#allocation33_spill] sm:$0xff] %v6149_v41  ;;  %8323 = vst [vmem:[#allocation34_spill] sm:$0xff] %v6155_v36 }
 0x480   :  { %1579 = vmatpush1.bf16.msra.mxu0 %v6137_v39  ;;  %1622 = vmatpush1.bf16.msra.mxu1 %v6143_v40  ;;  %v6161_v39 = vld [vmem:[%s7951_s2 + $0x20] ss:$16 sps:$4 sm:$0xff]   ;;  %v6167_v40 = vld [vmem:[%s7951_s2 + $0x28] ss:$16 sps:$4 sm:$0xff]  }
 0x481   :  { %1580 = vmatprep.subr.bf16.mxu0 %v6149_v41  ;;  %1623 = vmatprep.subr.bf16.mxu1 %v6155_v36  ;;  %8324 = vst [vmem:[#allocation35_spill] sm:$0xff] %v6161_v39  ;;  %8325 = vst [vmem:[#allocation36_spill] sm:$0xff] %v6167_v40  ;;  %v6173_v41 = vld [vmem:[%s7951_s2 + $0x4] ss:$16 sps:$4 sm:$0xff]   ;;  %v6179_v36 = vld [vmem:[%s7951_s2 + $0xc] ss:$16 sps:$4 sm:$0xff]  }
 0x482   :  { %8326 = vst [vmem:[#allocation37_spill] sm:$0xff] %v6173_v41  ;;  %8327 = vst [vmem:[#allocation38_spill] sm:$0xff] %v6179_v36 }
 0x484   :  { %1581 = vmatpush1.bf16.msra.mxu0 %v6161_v39  ;;  %1624 = vmatpush1.bf16.msra.mxu1 %v6167_v40  ;;  %v6185_v39 = vld [vmem:[%s7951_s2] ss:$16 sps:$4 sm:$0xff]   ;;  %v6191_v40 = vld [vmem:[%s7951_s2 + $0x8] ss:$16 sps:$4 sm:$0xff]  }
 0x485   :  { %1582 = vmatprep.subr.bf16.mxu0 %v6173_v41  ;;  %1625 = vmatprep.subr.bf16.mxu1 %v6179_v36  ;;  %8328 = vst [vmem:[#allocation39_spill] sm:$0xff] %v6185_v39  ;;  %8329 = vst [vmem:[#allocation40_spill] sm:$0xff] %v6191_v40 }
 0x488   :  { %1583 = vmatpush1.bf16.msra.mxu0 %v6185_v39  ;;  %1626 = vmatpush1.bf16.msra.mxu1 %v6191_v40  ;;  %v3888_v40 = vld [vmem:[%s7949_s0 + $0x80] sm:$0xff] }
 0x489   :  { %1711 = vmatprep.subr.bf16.mxu0 %v8257_v23  ;;  %1754 = vmatprep.subr.bf16.mxu1 %v8258_v24  ;;  %v3889_v24 = vld [vmem:[%s7949_s0 + $0x88] sm:$0xff] }
 0x50b   :  { %v6196_v41 = vpop.f32.mrf.mxu0  ;;  %v6200_v50 = vpop.f32.mrf.mxu1 }
 0x50d   :  { %v6198_v36 = vpop.f32.mrf.mxu0  ;;  %v6204_v39 = vpop.f32.mrf.mxu1 }
 0x50f   :  { %v6202_v35 = vpop.f32.mrf.mxu0  ;;  %v6211_v31 = vpop.f32.mrf.mxu1 }
 0x511   :  { %v6206_v34 = vpop.f32.mrf.mxu0  ;;  %v6219_v13 = vpop.f32.mrf.mxu1 }
 0x52b   :  { %v1459_v23 = vpop.f32.mrf.mxu0  ;;  %v1502_v9 = vpop.f32.mrf.mxu1 }
 0x52c   :  { %v1511_v20 = vadd.f32 %v3888_v40, %v1459_v23 }
 0x52d   :  { %v1461_v19 = vpop.f32.mrf.mxu0  ;;  %v1504_v4 = vpop.f32.mrf.mxu1 }
 0x52e   :  { %v3896_v12 = vmul.f32 -1.442695, %v1511_v20  ;;  %v1512_v11 = vadd.f32 %v3889_v24, %v1461_v19  ;;  %v1513_v20 = vadd.f32 %v3890_v5, %v1502_v9 }
 0x52f   :  { %v1463_v10 = vpop.f32.mrf.mxu0  ;;  %v1506_v24 = vpop.f32.mrf.mxu1 }
 0x530   :  { %4338 = vpow2.f32 %v3896_v12  ;;  %v3897_v8 = vmul.f32 -1.442695, %v1512_v11  ;;  %v1515_v7 = vadd.f32 %v3892_v15, %v1463_v10  ;;  %v3894_v12 = vld [vmem:[%s7949_s0 + $0xb0] sm:$0xff]  ;;  %v3895_v15 = vld [vmem:[%s7949_s0 + $0xb8] sm:$0xff] }
 0x531   :  { %v1465_v38 = vpop.f32.mrf.mxu0 }
 0x532   :  { %4340 = vpow2.f32 %v3897_v8  ;;  %v3899_v40 = vmul.f32 -1.442695, %v1515_v7  ;;  %v1516_v23 = vadd.f32 %v3893_v54, %v1465_v38  ;;  %v3891_v8 = vld [vmem:[%s7949_s0 + $0x98] sm:$0xff]  ;;  %v3898_v7 = vmul.f32 -1.442695, %v1513_v20 }
 0x533   :  { %v1517_v38 = vadd.f32 %v3894_v12, %v1506_v24  ;;  %v1514_v10 = vadd.f32 %v3891_v8, %v1504_v4 }
 0x534   :  { %4342 = vpow2.f32 %v3899_v40  ;;  %v3900_v19 = vmul.f32 -1.442695, %v1516_v23  ;;  %v1508_v40 = vpop.f32.mrf.mxu1 }
 0x535   :  { %v3901_v9 = vmul.f32 -1.442695, %v1517_v38  ;;  %v1518_v3 = vadd.f32 %v3895_v15, %v1508_v40 }
 0x536   :  { %4344 = vpow2.f32 %v3900_v19 }
 0x537   :  { %4346 = vpow2.f32 %v3898_v7 }
 0x53d   :  { %v4339_v54 = vpop.eup %4338 }
 0x53e   :  { %v1537_v11 = vadd.f32 1.0, %v4339_v54 }
 0x53f   :  { %v4341_v5 = vpop.eup %4340 }
 0x540   :  { %4348 = vrcp.f32 %v1537_v11  ;;  %v1538_v23 = vadd.f32 1.0, %v4341_v5 }
 0x541   :  { %v4343_v19 = vpop.eup %4342  ;;  %4350 = vtanh.f32 %v1514_v10 }
 0x542   :  { %4352 = vrcp.f32 %v1538_v23  ;;  %v1540_v2 = vadd.f32 1.0, %v4343_v19 }
 0x543   :  { %v4345_v20 = vpop.eup %4344  ;;  %4354 = vpow2.f32 %v3901_v9 }
 0x544   :  { %4356 = vrcp.f32 %v1540_v2  ;;  %v1541_v4 = vadd.f32 1.0, %v4345_v20  ;;  %v4347_v12 = vpop.eup %4346 }
 0x545   :  { %4358 = vtanh.f32 %v1518_v3  ;;  %v1539_v5 = vadd.f32 1.0, %v4347_v12 }
 0x546   :  { %4360 = vrcp.f32 %v1541_v4 }
 0x547   :  { %4362 = vrcp.f32 %v1539_v5  ;;  %v6268_v5 = vld [vmem:[#allocation2 + $0xa4] ss:$16 sps:$4 sm:$0xff]  }
 0x548   :  { %8331 = vst [vmem:[#allocation42_spill] sm:$0xff] %v6268_v5 }
 0x54d   :  { %v4349_v24 = vpop.eup %4348 }
 0x54e   :  { %v4351_v8 = vpop.eup %4350 }
 0x54f   :  { %v4353_v54 = vpop.eup %4352  ;;  %v1559_v38 = vmul.f32 %v4351_v8, %v4349_v24 }
 0x550   :  { %v4355_v29 = vpop.eup %4354  ;;  %v1557_v7 = vmul.f32 %v4353_v54, %v5737_v22  ;;  %v6254_v54 = vld [vmem:[#allocation2 + $0xc4] ss:$16 sps:$4 sm:$0xff]  }
 0x551   :  { %v4357_v11 = vpop.eup %4356  ;;  %v1542_v23 = vadd.f32 1.0, %v4355_v29  ;;  %v6251_v29 = vld [vmem:[#allocation2 + $0xe8] ss:$16 sps:$4 sm:$0xff]  }
 0x552   :  { %v4359_v10 = vpop.eup %4358  ;;  %v6237_v15 = vadd.f32 %v1559_v38, %v1557_v7  ;;  %v6257_v7 = vld [vmem:[#allocation2 + $0xcc] ss:$16 sps:$4 sm:$0xff]   ;;  %v6262_v38 = vld [vmem:[#allocation2 + $0xc0] ss:$16 sps:$4 sm:$0xff]  }
 0x553   :  { %v4361_v40 = vpop.eup %4360  ;;  %v1560_v9 = vmul.f32 %v4359_v10, %v4357_v11  ;;  %v6265_v11 = vld [vmem:[#allocation2 + $0xc8] ss:$16 sps:$4 sm:$0xff]   ;;  %v6271_v10 = vld [vmem:[#allocation2 + $0xac] ss:$16 sps:$4 sm:$0xff]  }
 0x554   :  { %v1558_v2 = vmul.f32 %v4361_v40, %v5741_v37  ;;  %4364 = vtanh.f32 %v6237_v15  ;;  %v4363_v22 = vpop.eup %4362  ;;  %v6248_v37 = vld [vmem:[#allocation2 + $0xe0] ss:$16 sps:$4 sm:$0xff]   ;;  %8330 = vst [vmem:[#allocation41_spill] sm:$0xff] %v6265_v11  ;;  %8332 = vst [vmem:[#allocation43_spill] sm:$0xff] %v6271_v10 }
 0x555   :  { %4366 = vrcp.f32 %v1542_v23  ;;  %v6274_v40 = vld [vmem:[#allocation2 + $0xa0] ss:$16 sps:$4 sm:$0xff]   ;;  %v6277_v23 = vld [vmem:[#allocation2 + $0xa8] ss:$16 sps:$4 sm:$0xff]  }
 0x556   :  { %v6241_v3 = vadd.f32 %v1560_v9, %v1558_v2  ;;  %8333 = vst [vmem:[#allocation44_spill] sm:$0xff] %v6274_v40  ;;  %8334 = vst [vmem:[#allocation45_spill] sm:$0xff] %v6277_v23  ;;  %v6280_v2 = vld [vmem:[#allocation2 + $0x84] ss:$16 sps:$4 sm:$0xff]   ;;  %v6283_v9 = vld [vmem:[#allocation2 + $0x8c] ss:$16 sps:$4 sm:$0xff]  }
 0x557   :  { %8335 = vst [vmem:[#allocation46_spill] sm:$0xff] %v6280_v2  ;;  %8336 = vst [vmem:[#allocation47_spill] sm:$0xff] %v6283_v9 }
 0x558   :  { %4368 = vtanh.f32 %v6241_v3 }
 0x561   :  { %v4365_v19 = vpop.eup %4364 }
 0x562   :  { %v4367_v20 = vpop.eup %4366  ;;  %v1565_v12 = vmul.f32 %v4365_v19, %v4363_v22  ;;  %v6286_v22 = vld [vmem:[#allocation2 + $0x80] ss:$16 sps:$4 sm:$0xff]   ;;  %v6289_v19 = vld [vmem:[#allocation2 + $0x88] ss:$16 sps:$4 sm:$0xff]  }
 0x563   :  { %8337 = vst [vmem:[#allocation48_spill] sm:$0xff] %v6286_v22  ;;  %8338 = vst [vmem:[#allocation49_spill] sm:$0xff] %v6289_v19 }
 0x565   :  { %v4369_v4 = vpop.eup %4368 }
 0x566   :  { %v1566_v24 = vmul.f32 %v4369_v4, %v4367_v20  ;;  %v6292_v20 = vld [vmem:[#allocation2 + $0x64] ss:$16 sps:$4 sm:$0xff]   ;;  %v6295_v4 = vld [vmem:[#allocation2 + $0x6c] ss:$16 sps:$4 sm:$0xff]  }
 0x567   :  { %8339 = vst [vmem:[#allocation50_spill] sm:$0xff] %v6292_v20  ;;  %8340 = vst [vmem:[#allocation51_spill] sm:$0xff] %v6295_v4 }
 0x568   :  { %v6244_v8 = vpack.c.bf16 %v1566_v24, %v1565_v12  ;;  %v6298_v12 = vld [vmem:[#allocation2 + $0x60] ss:$16 sps:$4 sm:$0xff]   ;;  %v6301_v24 = vld [vmem:[#allocation2 + $0x68] ss:$16 sps:$4 sm:$0xff]  }
 0x569   :  { %8341 = vst [vmem:[#allocation52_spill] sm:$0xff] %v6298_v12  ;;  %8342 = vst [vmem:[#allocation53_spill] sm:$0xff] %v6301_v24 }
 0x56a   :  { %1601 = vmatmul.mubr.bf16.vlgmr.msra.gmra.mxu0 %v6244_v8  ;;  %1644 = vmatmul.mubr.bf16.vlgmr.msra.gmra.mxu1 %v6244_v8 }
 0x56b   :  { %1712 = vmatpush1.bf16.msra.mxu0 %v6248_v37  ;;  %1755 = vmatpush1.bf16.msra.mxu1 %v6251_v29 }
 0x56c   :  { %1713 = vmatprep.subr.bf16.mxu0 %v6254_v54  ;;  %1756 = vmatprep.subr.bf16.mxu1 %v6257_v7 }
 0x56d   :  { %1743 = vmatprep.mubr.bf16.mxu0 %v8201_v45  ;;  %1786 = vmatprep.mubr.bf16.mxu1 %v8201_v45 }
 0x56f   :  { %1714 = vmatpush1.bf16.msra.mxu0 %v6262_v38  ;;  %1757 = vmatpush1.bf16.msra.mxu1 %v6265_v11 }
 0x570   :  { %1715 = vmatprep.subr.bf16.mxu0 %v6268_v5  ;;  %1758 = vmatprep.subr.bf16.mxu1 %v6271_v10 }
 0x573   :  { %1716 = vmatpush1.bf16.msra.mxu0 %v6274_v40  ;;  %1759 = vmatpush1.bf16.msra.mxu1 %v6277_v23 }
 0x574   :  { %1717 = vmatprep.subr.bf16.mxu0 %v6280_v2  ;;  %1760 = vmatprep.subr.bf16.mxu1 %v6283_v9 }
 0x577   :  { %1718 = vmatpush1.bf16.msra.mxu0 %v6286_v22  ;;  %1761 = vmatpush1.bf16.msra.mxu1 %v6289_v19  ;;  %v6304_v22 = vld [vmem:[#allocation2 + $0x44] ss:$16 sps:$4 sm:$0xff]   ;;  %v6307_v19 = vld [vmem:[#allocation2 + $0x4c] ss:$16 sps:$4 sm:$0xff]  }
 0x578   :  { %1719 = vmatprep.subr.bf16.mxu0 %v6292_v20  ;;  %1762 = vmatprep.subr.bf16.mxu1 %v6295_v4  ;;  %8343 = vst [vmem:[#allocation54_spill] sm:$0xff] %v6304_v22  ;;  %8344 = vst [vmem:[#allocation55_spill] sm:$0xff] %v6307_v19  ;;  %v6310_v20 = vld [vmem:[#allocation2 + $0x40] ss:$16 sps:$4 sm:$0xff]   ;;  %v6313_v4 = vld [vmem:[#allocation2 + $0x48] ss:$16 sps:$4 sm:$0xff]  }
 0x579   :  { %8345 = vst [vmem:[#allocation56_spill] sm:$0xff] %v6310_v20  ;;  %8346 = vst [vmem:[#allocation57_spill] sm:$0xff] %v6313_v4 }
 0x57b   :  { %1720 = vmatpush1.bf16.msra.mxu0 %v6298_v12  ;;  %1763 = vmatpush1.bf16.msra.mxu1 %v6301_v24  ;;  %v6316_v12 = vld [vmem:[#allocation2 + $0x24] ss:$16 sps:$4 sm:$0xff]   ;;  %v6319_v24 = vld [vmem:[#allocation2 + $0x2c] ss:$16 sps:$4 sm:$0xff]  }
 0x57c   :  { %1721 = vmatprep.subr.bf16.mxu0 %v6304_v22  ;;  %1764 = vmatprep.subr.bf16.mxu1 %v6307_v19  ;;  %8347 = vst [vmem:[#allocation58_spill] sm:$0xff] %v6316_v12  ;;  %8348 = vst [vmem:[#allocation59_spill] sm:$0xff] %v6319_v24  ;;  %v6322_v22 = vld [vmem:[#allocation2 + $0x20] ss:$16 sps:$4 sm:$0xff]   ;;  %v6325_v19 = vld [vmem:[#allocation2 + $0x28] ss:$16 sps:$4 sm:$0xff]  }
 0x57d   :  { %8349 = vst [vmem:[#allocation60_spill] sm:$0xff] %v6322_v22  ;;  %8350 = vst [vmem:[#allocation61_spill] sm:$0xff] %v6325_v19 }
 0x57f   :  { %1722 = vmatpush1.bf16.msra.mxu0 %v6310_v20  ;;  %1765 = vmatpush1.bf16.msra.mxu1 %v6313_v4  ;;  %v6328_v20 = vld [vmem:[#allocation2 + $0x4] ss:$16 sps:$4 sm:$0xff]   ;;  %v6331_v4 = vld [vmem:[#allocation2 + $0xc] ss:$16 sps:$4 sm:$0xff]  }
 0x580   :  { %1723 = vmatprep.subr.bf16.mxu0 %v6316_v12  ;;  %1766 = vmatprep.subr.bf16.mxu1 %v6319_v24  ;;  %8351 = vst [vmem:[#allocation62_spill] sm:$0xff] %v6328_v20  ;;  %8352 = vst [vmem:[#allocation63_spill] sm:$0xff] %v6331_v4  ;;  %v6334_v12 = vld [vmem:[#allocation2] ss:$16 sps:$4 sm:$0xff]   ;;  %v6337_v24 = vld [vmem:[#allocation2 + $0x8] ss:$16 sps:$4 sm:$0xff]  }
 0x581   :  { %8353 = vst [vmem:[#allocation64_spill] sm:$0xff] %v6334_v12  ;;  %8354 = vst [vmem:[#allocation65_spill] sm:$0xff] %v6337_v24 }
 0x583   :  { %1724 = vmatpush1.bf16.msra.mxu0 %v6322_v22  ;;  %1767 = vmatpush1.bf16.msra.mxu1 %v6325_v19  ;;  %v1408_v19 = vadd.f32 %v6196_v41, %v8291_v18  ;;  %v1409_v22 = vadd.f32 %v6198_v36, %v8292_v21 }
 0x584   :  { %1725 = vmatprep.subr.bf16.mxu0 %v6328_v20  ;;  %1768 = vmatprep.subr.bf16.mxu1 %v6331_v4 }
 0x587   :  { %1726 = vmatpush1.bf16.msra.mxu0 %v6334_v12  ;;  %1769 = vmatpush1.bf16.msra.mxu1 %v6337_v24  ;;  %v1412_v12 = vadd.f32 %v6202_v35, %v8291_v18 }
 0x588   :  { %1814 = vmatprep.subr.bf16.mxu0 %v5783_v16  ;;  %1857 = vmatprep.subr.bf16.mxu1 %v5789_v17  ;;  %v1413_v16 = vadd.f32 %v6206_v34, %v8292_v21  ;;  %v1411_v34 = vadd.f32 %v6204_v39, %v5615_v60 }
 0x62a   :  { %v1602_v20 = vpop.f32.mrf.mxu0  ;;  %v1645_v23 = vpop.f32.mrf.mxu1 }
 0x62b   :  { %v1654_v4 = vadd.f32 %v1602_v20, %v1408_v19  ;;  %v1410_v19 = vadd.f32 %v6200_v50, %v8293_v61 }
 0x62c   :  { %v1604_v9 = vpop.f32.mrf.mxu0  ;;  %v1647_v5 = vpop.f32.mrf.mxu1 }
 0x62d   :  { %v3902_v2 = vmul.f32 -1.442695, %v1654_v4  ;;  %v1655_v40 = vadd.f32 %v1604_v9, %v1409_v22  ;;  %v1656_v20 = vadd.f32 %v1645_v23, %v1410_v19  ;;  %v1414_v9 = vadd.f32 %v6211_v31, %v8293_v61 }
 0x62e   :  { %v1606_v24 = vpop.f32.mrf.mxu0  ;;  %v1649_v4 = vpop.f32.mrf.mxu1  ;;  %v1657_v22 = vadd.f32 %v1647_v5, %v1411_v34 }
 0x62f   :  { %4370 = vpow2.f32 %v3902_v2  ;;  %v3903_v17 = vmul.f32 -1.442695, %v1655_v40  ;;  %v1658_v10 = vadd.f32 %v1606_v24, %v1412_v12  ;;  %v1660_v40 = vadd.f32 %v1649_v4, %v1414_v9 }
 0x630   :  { %v1608_v41 = vpop.f32.mrf.mxu0  ;;  %v3904_v2 = vmul.f32 -1.442695, %v1656_v20  ;;  %v1651_v12 = vpop.f32.mrf.mxu1  ;;  %v1415_v24 = vadd.f32 %v6219_v13, %v5615_v60 }
 0x631   :  { %4372 = vpow2.f32 %v3903_v17  ;;  %v3905_v11 = vmul.f32 -1.442695, %v1658_v10  ;;  %v1659_v36 = vadd.f32 %v1608_v41, %v1413_v16  ;;  %v3907_v50 = vmul.f32 -1.442695, %v1660_v40 }
 0x632   :  { %v1661_v16 = vadd.f32 %v1651_v12, %v1415_v24 }
 0x633   :  { %4374 = vpow2.f32 %v3905_v11  ;;  %v3906_v35 = vmul.f32 -1.442695, %v1659_v36 }
 0x635   :  { %4376 = vpow2.f32 %v3906_v35 }
 0x636   :  { %4378 = vpow2.f32 %v3904_v2 }
 0x637   :  { %4380 = vtanh.f32 %v1657_v22 }
 0x63c   :  { %v4371_v10 = vpop.eup %4370 }
 0x63d   :  { %v1680_v11 = vadd.f32 1.0, %v4371_v10 }
 0x63e   :  { %v4373_v23 = vpop.eup %4372 }
 0x63f   :  { %4382 = vrcp.f32 %v1680_v11  ;;  %v1681_v17 = vadd.f32 1.0, %v4373_v23 }
 0x640   :  { %v4375_v31 = vpop.eup %4374  ;;  %4384 = vpow2.f32 %v3907_v50 }
 0x641   :  { %4386 = vrcp.f32 %v1681_v17  ;;  %v1683_v39 = vadd.f32 1.0, %v4375_v31 }
 0x642   :  { %v4377_v41 = vpop.eup %4376  ;;  %4388 = vtanh.f32 %v1661_v16 }
 0x643   :  { %4390 = vrcp.f32 %v1683_v39  ;;  %v1684_v5 = vadd.f32 1.0, %v4377_v41  ;;  %v4379_v36 = vpop.eup %4378 }
 0x644   :  { %v4381_v19 = vpop.eup %4380  ;;  %v1682_v2 = vadd.f32 1.0, %v4379_v36  ;;  %v8384_v36 = vld [vmem:[#allocation34_spill] sm:$0xff] }
 0x645   :  { %4392 = vrcp.f32 %v1684_v5  ;;  %v8383_v5 = vld [vmem:[#allocation33_spill] sm:$0xff] }
 0x646   :  { %4394 = vrcp.f32 %v1682_v2 }
 0x64c   :  { %v4383_v13 = vpop.eup %4382 }
 0x64d   :  { %v4385_v35 = vpop.eup %4384  ;;  %v1702_v20 = vmul.f32 %v4383_v13, %v4381_v19  ;;  %v8385_v19 = vld [vmem:[#allocation35_spill] sm:$0xff]  ;;  %v8386_v13 = vld [vmem:[#allocation36_spill] sm:$0xff] }
 0x64e   :  { %v4387_v4 = vpop.eup %4386  ;;  %v1685_v24 = vadd.f32 1.0, %v4385_v35  ;;  %v8387_v35 = vld [vmem:[#allocation37_spill] sm:$0xff] }
 0x64f   :  { %v4389_v9 = vpop.eup %4388  ;;  %v1700_v34 = vmul.f32 %v4387_v4, %v5809_v14  ;;  %v8389_v4 = vld [vmem:[#allocation39_spill] sm:$0xff] }
 0x650   :  { %v4391_v40 = vpop.eup %4390 }
 0x651   :  { %v6359_v22 = vadd.f32 %v1702_v20, %v1700_v34  ;;  %v1703_v12 = vmul.f32 %v4391_v40, %v4389_v9  ;;  %v8388_v20 = vld [vmem:[#allocation38_spill] sm:$0xff]  ;;  %v8390_v9 = vld [vmem:[#allocation40_spill] sm:$0xff]  ;;  %v6434_v34 = vld [vmem:[#allocation2 + $0xe4] ss:$16 sps:$4 sm:$0xff]  }
 0x652   :  { %v4393_v10 = vpop.eup %4392  ;;  %v6437_v40 = vld [vmem:[#allocation2 + $0xec] ss:$16 sps:$4 sm:$0xff]  }
 0x653   :  { %v1701_v50 = vmul.f32 %v4393_v10, %v5813_v33  ;;  %4396 = vtanh.f32 %v6359_v22  ;;  %v4395_v23 = vpop.eup %4394  ;;  %v8355_v33 = vld [vmem:[#allocation5_spill] sm:$0xff] }
 0x654   :  { %4398 = vrcp.f32 %v1685_v24 }
 0x655   :  { %v6363_v11 = vadd.f32 %v1703_v12, %v1701_v50 }
 0x657   :  { %4400 = vtanh.f32 %v6363_v11 }
 0x660   :  { %v4397_v16 = vpop.eup %4396 }
 0x661   :  { %v4399_v14 = vpop.eup %4398  ;;  %v1708_v31 = vmul.f32 %v4397_v16, %v4395_v23  ;;  %v3908_v16 = vld [vmem:[%s7949_s0 + $0xc0] sm:$0xff] }
 0x664   :  { %v4401_v17 = vpop.eup %4400 }
 0x665   :  { %v1709_v39 = vmul.f32 %v4401_v17, %v4399_v14 }
 0x667   :  { %v1710_v41 = vpack.c.bf16 %v1709_v39, %v1708_v31  ;;  %v3909_v31 = vld [vmem:[%s7949_s0 + $0xc8] sm:$0xff] }
 0x669   :  { %1744 = vmatmul.mubr.bf16.vlgmr.msra.gmra.mxu0 %v1710_v41  ;;  %1787 = vmatmul.mubr.bf16.vlgmr.msra.gmra.mxu1 %v1710_v41 }
 0x66a   :  { %1815 = vmatpush1.bf16.msra.mxu0 %v5819_v47  ;;  %1858 = vmatpush1.bf16.msra.mxu1 %v5825_v42  ;;  %v8356_v47 = vld [vmem:[#allocation6_spill] sm:$0xff]  ;;  %v8357_v42 = vld [vmem:[#allocation7_spill] sm:$0xff] }
 0x66b   :  { %1816 = vmatprep.subr.bf16.mxu0 %v5831_v43  ;;  %1859 = vmatprep.subr.bf16.mxu1 %v5837_v44  ;;  %v8358_v43 = vld [vmem:[#allocation8_spill] sm:$0xff]  ;;  %v8359_v44 = vld [vmem:[#allocation9_spill] sm:$0xff] }
 0x66c   :  { %1846 = vmatprep.mubr.bf16.mxu0 %v8201_v45  ;;  %1889 = vmatprep.mubr.bf16.mxu1 %v8201_v45 }
 0x66e   :  { %1817 = vmatpush1.bf16.msra.mxu0 %v5845_v25  ;;  %1860 = vmatpush1.bf16.msra.mxu1 %v5851_v57  ;;  %v8360_v25 = vld [vmem:[#allocation10_spill] sm:$0xff]  ;;  %v8361_v57 = vld [vmem:[#allocation11_spill] sm:$0xff] }
 0x66f   :  { %1818 = vmatprep.subr.bf16.mxu0 %v5857_v1  ;;  %1861 = vmatprep.subr.bf16.mxu1 %v5863_v26  ;;  %v8362_v1 = vld [vmem:[#allocation12_spill] sm:$0xff]  ;;  %v8363_v26 = vld [vmem:[#allocation13_spill] sm:$0xff] }
 0x672   :  { %1819 = vmatpush1.bf16.msra.mxu0 %v5869_v52  ;;  %1862 = vmatpush1.bf16.msra.mxu1 %v5875_v28  ;;  %v8364_v52 = vld [vmem:[#allocation14_spill] sm:$0xff]  ;;  %v8365_v28 = vld [vmem:[#allocation15_spill] sm:$0xff] }
 0x673   :  { %1820 = vmatprep.subr.bf16.mxu0 %v5881_v6  ;;  %1863 = vmatprep.subr.bf16.mxu1 %v5887_v0  ;;  %v8366_v6 = vld [vmem:[#allocation16_spill] sm:$0xff]  ;;  %v8367_v0 = vld [vmem:[#allocation17_spill] sm:$0xff] }
 0x676   :  { %1821 = vmatpush1.bf16.msra.mxu0 %v5893_v46  ;;  %1864 = vmatpush1.bf16.msra.mxu1 %v5899_v30  ;;  %v8368_v46 = vld [vmem:[#allocation18_spill] sm:$0xff]  ;;  %v8369_v30 = vld [vmem:[#allocation19_spill] sm:$0xff] }
 0x677   :  { %1822 = vmatprep.subr.bf16.mxu0 %v5905_v55  ;;  %1865 = vmatprep.subr.bf16.mxu1 %v5911_v62  ;;  %v8370_v55 = vld [vmem:[#allocation20_spill] sm:$0xff]  ;;  %v8371_v62 = vld [vmem:[#allocation21_spill] sm:$0xff] }
 0x67a   :  { %1823 = vmatpush1.bf16.msra.mxu0 %v5917_v63  ;;  %1866 = vmatpush1.bf16.msra.mxu1 %v5923_v59  ;;  %v8372_v63 = vld [vmem:[#allocation22_spill] sm:$0xff]  ;;  %v8373_v59 = vld [vmem:[#allocation23_spill] sm:$0xff] }
 0x67b   :  { %1824 = vmatprep.subr.bf16.mxu0 %v5929_v58  ;;  %1867 = vmatprep.subr.bf16.mxu1 %v5935_v53  ;;  %v8374_v58 = vld [vmem:[#allocation24_spill] sm:$0xff]  ;;  %v8375_v53 = vld [vmem:[#allocation27_spill] sm:$0xff] }
 0x67e   :  { %1825 = vmatpush1.bf16.msra.mxu0 %v5941_v27  ;;  %1868 = vmatpush1.bf16.msra.mxu1 %v5947_v48  ;;  %v8376_v27 = vld [vmem:[#allocation28_spill] sm:$0xff]  ;;  %v8377_v48 = vld [vmem:[#allocation25_spill] sm:$0xff] }
 0x67f   :  { %1826 = vmatprep.subr.bf16.mxu0 %v5953_v51  ;;  %1869 = vmatprep.subr.bf16.mxu1 %v5959_v49  ;;  %v8378_v51 = vld [vmem:[#allocation26_spill] sm:$0xff]  ;;  %v8379_v49 = vld [vmem:[#allocation29_spill] sm:$0xff] }
 0x682   :  { %1827 = vmatpush1.bf16.msra.mxu0 %v5965_v56  ;;  %1870 = vmatpush1.bf16.msra.mxu1 %v5971_v32  ;;  %v8380_v56 = vld [vmem:[#allocation30_spill] sm:$0xff]  ;;  %v8381_v32 = vld [vmem:[#allocation31_spill] sm:$0xff] }
 0x683   :  { %1828 = vmatprep.subr.bf16.mxu0 %v8355_v33  ;;  %1871 = vmatprep.subr.bf16.mxu1 %v8356_v47  ;;  %v3912_v33 = vld [vmem:[%s7949_s0 + $0xe0] sm:$0xff] }
 0x686   :  { %1829 = vmatpush1.bf16.msra.mxu0 %v8357_v42  ;;  %1872 = vmatpush1.bf16.msra.mxu1 %v8358_v43 }
 0x687   :  { %1957 = vmatprep.subr.bf16.mxu0 %v8359_v44  ;;  %2000 = vmatprep.subr.bf16.mxu1 %v8360_v25  ;;  %v3913_v25 = vld [vmem:[%s7949_s0 + $0xe8] sm:$0xff] }
 0x689   :  { %1847 = vmatmul.mubr.bf16.vlgmr.msra.gmra.mxu0 %v6244_v8  ;;  %1890 = vmatmul.mubr.bf16.vlgmr.msra.gmra.mxu1 %v6244_v8  ;;  %v8382_v8 = vld [vmem:[#allocation32_spill] sm:$0xff] }
 0x68a   :  { %1958 = vmatpush1.bf16.msra.mxu0 %v8361_v57  ;;  %2001 = vmatpush1.bf16.msra.mxu1 %v8362_v1 }
 0x68b   :  { %1959 = vmatprep.subr.bf16.mxu0 %v8363_v26  ;;  %2002 = vmatprep.subr.bf16.mxu1 %v8364_v52 }
 0x68c   :  { %1989 = vmatprep.mubr.bf16.mxu0 %v8201_v45  ;;  %2032 = vmatprep.mubr.bf16.mxu1 %v8201_v45 }
 0x68e   :  { %1960 = vmatpush1.bf16.msra.mxu0 %v8365_v28  ;;  %2003 = vmatpush1.bf16.msra.mxu1 %v8366_v6 }
 0x68f   :  { %1961 = vmatprep.subr.bf16.mxu0 %v8367_v0  ;;  %2004 = vmatprep.subr.bf16.mxu1 %v8368_v46  ;;  %v3910_v0 = vld [vmem:[%s7949_s0 + $0xd0] sm:$0xff] }
 0x692   :  { %1962 = vmatpush1.bf16.msra.mxu0 %v8369_v30  ;;  %2005 = vmatpush1.bf16.msra.mxu1 %v8370_v55 }
 0x693   :  { %1963 = vmatprep.subr.bf16.mxu0 %v8371_v62  ;;  %2006 = vmatprep.subr.bf16.mxu1 %v8372_v63  ;;  %v3914_v62 = vld [vmem:[%s7949_s0 + $0xf0] sm:$0xff] }
 0x696   :  { %1964 = vmatpush1.bf16.msra.mxu0 %v8373_v59  ;;  %2007 = vmatpush1.bf16.msra.mxu1 %v8374_v58  ;;  %v3911_v59 = vld [vmem:[%s7949_s0 + $0xd8] sm:$0xff] }
 0x697   :  { %1965 = vmatprep.subr.bf16.mxu0 %v8375_v53  ;;  %2008 = vmatprep.subr.bf16.mxu1 %v8376_v27 }
 0x69a   :  { %1966 = vmatpush1.bf16.msra.mxu0 %v8377_v48  ;;  %2009 = vmatpush1.bf16.msra.mxu1 %v8378_v51 }
 0x69b   :  { %1967 = vmatprep.subr.bf16.mxu0 %v8379_v49  ;;  %2010 = vmatprep.subr.bf16.mxu1 %v8380_v56  ;;  %v3915_v49 = vld [vmem:[%s7949_s0 + $0xf8] sm:$0xff] }
 0x69e   :  { %1968 = vmatpush1.bf16.msra.mxu0 %v8381_v32  ;;  %2011 = vmatpush1.bf16.msra.mxu1 %v8382_v8 }
 0x69f   :  { %1969 = vmatprep.subr.bf16.mxu0 %v8383_v5  ;;  %2012 = vmatprep.subr.bf16.mxu1 %v8384_v36 }
 0x6a2   :  { %1970 = vmatpush1.bf16.msra.mxu0 %v8385_v19  ;;  %2013 = vmatpush1.bf16.msra.mxu1 %v8386_v13 }
 0x6a3   :  { %1971 = vmatprep.subr.bf16.mxu0 %v8387_v35  ;;  %2014 = vmatprep.subr.bf16.mxu1 %v8388_v20 }
 0x6a6   :  { %1972 = vmatpush1.bf16.msra.mxu0 %v8389_v4  ;;  %2015 = vmatpush1.bf16.msra.mxu1 %v8390_v9 }
 0x6a7   :  { %2100 = vmatprep.subr.bf16.mxu0 %v6434_v34  ;;  %2143 = vmatprep.subr.bf16.mxu1 %v6437_v40 }
 0x729   :  { %v6440_v2 = vpop.f32.mrf.mxu0  ;;  %v6444_v10 = vpop.f32.mrf.mxu1 }
 0x72b   :  { %v6442_v12 = vpop.f32.mrf.mxu0  ;;  %v6448_v50 = vpop.f32.mrf.mxu1 }
 0x72d   :  { %v6446_v24 = vpop.f32.mrf.mxu0  ;;  %v6455_v14 = vpop.f32.mrf.mxu1 }
 0x72f   :  { %v6450_v23 = vpop.f32.mrf.mxu0  ;;  %v6463_v47 = vpop.f32.mrf.mxu1 }
 0x749   :  { %v1848_v17 = vpop.f32.mrf.mxu0  ;;  %v1891_v57 = vpop.f32.mrf.mxu1 }
 0x74a   :  { %v1900_v39 = vadd.f32 %v3908_v16, %v1848_v17  ;;  %v1902_v55 = vadd.f32 %v3910_v0, %v1891_v57 }
 0x74b   :  { %v1850_v41 = vpop.f32.mrf.mxu0  ;;  %v1893_v46 = vpop.f32.mrf.mxu1 }
 0x74c   :  { %v3916_v42 = vmul.f32 -1.442695, %v1900_v39  ;;  %v1901_v43 = vadd.f32 %v3909_v31, %v1850_v41  ;;  %v3918_v58 = vmul.f32 -1.442695, %v1902_v55  ;;  %v1903_v48 = vadd.f32 %v3911_v59, %v1893_v46  ;;  %v8394_v59 = vld [vmem:[#allocation44_spill] sm:$0xff] }
 0x74d   :  { %v1852_v44 = vpop.f32.mrf.mxu0  ;;  %v1895_v63 = vpop.f32.mrf.mxu1 }
 0x74e   :  { %4402 = vpow2.f32 %v3916_v42  ;;  %v3917_v1 = vmul.f32 -1.442695, %v1901_v43  ;;  %v1904_v26 = vadd.f32 %v3912_v33, %v1852_v44  ;;  %v1906_v53 = vadd.f32 %v3914_v62, %v1895_v63  ;;  %v8392_v62 = vld [vmem:[#allocation42_spill] sm:$0xff]  ;;  %v8393_v63 = vld [vmem:[#allocation43_spill] sm:$0xff] }
 0x74f   :  { %v1854_v52 = vpop.f32.mrf.mxu0  ;;  %v1897_v56 = vpop.f32.mrf.mxu1 }
 0x750   :  { %4404 = vpow2.f32 %v3917_v1  ;;  %v3919_v28 = vmul.f32 -1.442695, %v1904_v26  ;;  %v1905_v6 = vadd.f32 %v3913_v25, %v1854_v52  ;;  %v3921_v8 = vmul.f32 -1.442695, %v1906_v53  ;;  %v8400_v53 = vld [vmem:[#allocation50_spill] sm:$0xff] }
 0x751   :  { %v1907_v19 = vadd.f32 %v3915_v49, %v1897_v56  ;;  %v8405_v49 = vld [vmem:[#allocation55_spill] sm:$0xff]  ;;  %v8406_v56 = vld [vmem:[#allocation56_spill] sm:$0xff] }
 0x752   :  { %4406 = vpow2.f32 %v3919_v28  ;;  %v3920_v30 = vmul.f32 -1.442695, %v1905_v6 }
 0x754   :  { %4408 = vpow2.f32 %v3920_v30 }
 0x755   :  { %4410 = vpow2.f32 %v3918_v58  ;;  %v8399_v58 = vld [vmem:[#allocation49_spill] sm:$0xff] }
 0x75b   :  { %v4403_v27 = vpop.eup %4402 }
 0x75c   :  { %v1926_v51 = vadd.f32 1.0, %v4403_v27  ;;  %v8402_v27 = vld [vmem:[#allocation52_spill] sm:$0xff] }
 0x75d   :  { %v4405_v32 = vpop.eup %4404 }
 0x75e   :  { %4412 = vrcp.f32 %v1926_v51  ;;  %v1927_v5 = vadd.f32 1.0, %v4405_v32  ;;  %v8404_v51 = vld [vmem:[#allocation54_spill] sm:$0xff]  ;;  %v8407_v32 = vld [vmem:[#allocation57_spill] sm:$0xff] }
 0x75f   :  { %v4407_v36 = vpop.eup %4406  ;;  %4414 = vtanh.f32 %v1903_v48  ;;  %v8403_v48 = vld [vmem:[#allocation53_spill] sm:$0xff] }
 0x760   :  { %4416 = vrcp.f32 %v1927_v5  ;;  %v1929_v13 = vadd.f32 1.0, %v4407_v36  ;;  %v8409_v5 = vld [vmem:[#allocation59_spill] sm:$0xff]  ;;  %v8410_v36 = vld [vmem:[#allocation60_spill] sm:$0xff] }
 0x761   :  { %v4409_v35 = vpop.eup %4408  ;;  %4418 = vpow2.f32 %v3921_v8  ;;  %v8408_v8 = vld [vmem:[#allocation58_spill] sm:$0xff] }
 0x762   :  { %4420 = vrcp.f32 %v1929_v13  ;;  %v1930_v20 = vadd.f32 1.0, %v4409_v35  ;;  %v4411_v4 = vpop.eup %4410  ;;  %v8412_v13 = vld [vmem:[#allocation62_spill] sm:$0xff]  ;;  %v8413_v35 = vld [vmem:[#allocation63_spill] sm:$0xff] }
 0x763   :  { %4422 = vtanh.f32 %v1907_v19  ;;  %v1928_v42 = vadd.f32 1.0, %v4411_v4  ;;  %v8411_v19 = vld [vmem:[#allocation61_spill] sm:$0xff] }
 0x764   :  { %4424 = vrcp.f32 %v1930_v20  ;;  %v8414_v20 = vld [vmem:[#allocation64_spill] sm:$0xff]  ;;  %v8415_v4 = vld [vmem:[#allocation65_spill] sm:$0xff] }
 0x765   :  { %4426 = vrcp.f32 %v1928_v42  ;;  %v1801_v42 = vadd.f32 %v6446_v24, %v8291_v18 }
 0x76b   :  { %v4413_v9 = vpop.eup %4412 }
 0x76c   :  { %v4415_v16 = vpop.eup %4414 }
 0x76d   :  { %v4417_v17 = vpop.eup %4416  ;;  %v1948_v41 = vmul.f32 %v4415_v16, %v4413_v9  ;;  %v6527_v9 = vld [vmem:[%s7950_s1 + $0xe4] ss:$16 sps:$4 sm:$0xff]   ;;  %v6533_v16 = vld [vmem:[%s7950_s1 + $0xec] ss:$16 sps:$4 sm:$0xff]  }
 0x76e   :  { %v4419_v31 = vpop.eup %4418  ;;  %v1946_v39 = vmul.f32 %v4417_v17, %v6237_v15  ;;  %v1797_v17 = vadd.f32 %v6440_v2, %v8291_v18 }
 0x76f   :  { %v4421_v33 = vpop.eup %4420  ;;  %v1931_v57 = vadd.f32 1.0, %v4419_v31 }
 0x770   :  { %v4423_v43 = vpop.eup %4422  ;;  %v6481_v44 = vadd.f32 %v1948_v41, %v1946_v39  ;;  %v1798_v39 = vadd.f32 %v6442_v12, %v8292_v21 }
 0x771   :  { %v4425_v25 = vpop.eup %4424  ;;  %v1949_v26 = vmul.f32 %v4423_v43, %v4421_v33 }
 0x772   :  { %v1947_v1 = vmul.f32 %v4425_v25, %v6241_v3  ;;  %4428 = vtanh.f32 %v6481_v44  ;;  %v4427_v15 = vpop.eup %4426  ;;  %v8391_v3 = vld [vmem:[#allocation41_spill] sm:$0xff] }
 0x773   :  { %4430 = vrcp.f32 %v1931_v57 }
 0x774   :  { %v6485_v52 = vadd.f32 %v1949_v26, %v1947_v1  ;;  %v1802_v26 = vadd.f32 %v6450_v23, %v8292_v21  ;;  %v1800_v23 = vadd.f32 %v6448_v50, %v5615_v60 }
 0x776   :  { %4432 = vtanh.f32 %v6485_v52 }
 0x77f   :  { %v4429_v28 = vpop.eup %4428 }
 0x780   :  { %v4431_v6 = vpop.eup %4430  ;;  %v1954_v46 = vmul.f32 %v4429_v28, %v4427_v15 }
 0x783   :  { %v4433_v0 = vpop.eup %4432 }
 0x784   :  { %v1955_v30 = vmul.f32 %v4433_v0, %v4431_v6 }
 0x786   :  { %v6488_v55 = vpack.c.bf16 %v1955_v30, %v1954_v46  ;;  %v1799_v46 = vadd.f32 %v6444_v10, %v8293_v61 }
 0x788   :  { %1990 = vmatmul.mubr.bf16.vlgmr.msra.gmra.mxu0 %v6488_v55  ;;  %2033 = vmatmul.mubr.bf16.vlgmr.msra.gmra.mxu1 %v6488_v55 }
 0x789   :  { %2101 = vmatpush1.bf16.msra.mxu0 %v6248_v37  ;;  %2144 = vmatpush1.bf16.msra.mxu1 %v6251_v29  ;;  %v8395_v37 = vld [vmem:[#allocation45_spill] sm:$0xff]  ;;  %v8396_v29 = vld [vmem:[#allocation46_spill] sm:$0xff] }
 0x78a   :  { %2102 = vmatprep.subr.bf16.mxu0 %v6254_v54  ;;  %2145 = vmatprep.subr.bf16.mxu1 %v6257_v7  ;;  %v8397_v54 = vld [vmem:[#allocation47_spill] sm:$0xff]  ;;  %v8398_v7 = vld [vmem:[#allocation48_spill] sm:$0xff] }
 0x78b   :  { %2132 = vmatprep.mubr.bf16.mxu0 %v8201_v45  ;;  %2175 = vmatprep.mubr.bf16.mxu1 %v8201_v45 }
 0x78d   :  { %2103 = vmatpush1.bf16.msra.mxu0 %v6262_v38  ;;  %2146 = vmatpush1.bf16.msra.mxu1 %v8391_v3  ;;  %v8401_v38 = vld [vmem:[#allocation51_spill] sm:$0xff] }
 0x78e   :  { %2104 = vmatprep.subr.bf16.mxu0 %v8392_v62  ;;  %2147 = vmatprep.subr.bf16.mxu1 %v8393_v63  ;;  %v1803_v62 = vadd.f32 %v6455_v14, %v8293_v61 }
 0x791   :  { %2105 = vmatpush1.bf16.msra.mxu0 %v8394_v59  ;;  %2148 = vmatpush1.bf16.msra.mxu1 %v8395_v37 }
 0x792   :  { %2106 = vmatprep.subr.bf16.mxu0 %v8396_v29  ;;  %2149 = vmatprep.subr.bf16.mxu1 %v8397_v54 }
 0x795   :  { %2107 = vmatpush1.bf16.msra.mxu0 %v8398_v7  ;;  %2150 = vmatpush1.bf16.msra.mxu1 %v8399_v58  ;;  %v1804_v7 = vadd.f32 %v6463_v47, %v5615_v60 }
 0x796   :  { %2108 = vmatprep.subr.bf16.mxu0 %v8400_v53  ;;  %2151 = vmatprep.subr.bf16.mxu1 %v8401_v38 }
 0x799   :  { %2109 = vmatpush1.bf16.msra.mxu0 %v8402_v27  ;;  %2152 = vmatpush1.bf16.msra.mxu1 %v8403_v48 }
 0x79a   :  { %2110 = vmatprep.subr.bf16.mxu0 %v8404_v51  ;;  %2153 = vmatprep.subr.bf16.mxu1 %v8405_v49 }
 0x79d   :  { %2111 = vmatpush1.bf16.msra.mxu0 %v8406_v56  ;;  %2154 = vmatpush1.bf16.msra.mxu1 %v8407_v32 }
 0x79e   :  { %2112 = vmatprep.subr.bf16.mxu0 %v8408_v8  ;;  %2155 = vmatprep.subr.bf16.mxu1 %v8409_v5 }
 0x7a1   :  { %2113 = vmatpush1.bf16.msra.mxu0 %v8410_v36  ;;  %2156 = vmatpush1.bf16.msra.mxu1 %v8411_v19 }
 0x7a2   :  { %2114 = vmatprep.subr.bf16.mxu0 %v8412_v13  ;;  %2157 = vmatprep.subr.bf16.mxu1 %v8413_v35 }
 0x7a5   :  { %2115 = vmatpush1.bf16.msra.mxu0 %v8414_v20  ;;  %2158 = vmatpush1.bf16.msra.mxu1 %v8415_v4 }
 0x7a6   :  { %2203 = vmatprep.subr.bf16.mxu0 %v6527_v9  ;;  %2246 = vmatprep.subr.bf16.mxu1 %v6533_v16 }
 0x848   :  { %v1991_v31 = vpop.f32.mrf.mxu0  ;;  %v2034_v25 = vpop.f32.mrf.mxu1 }
 0x849   :  { %v2043_v41 = vadd.f32 %v1991_v31, %v1797_v17  ;;  %v2045_v30 = vadd.f32 %v2034_v25, %v1799_v46  ;;  %v6613_v46 = vld [vmem:[%s7950_s1 + $0xa0] ss:$16 sps:$4 sm:$0xff]  }
 0x84a   :  { %v1993_v33 = vpop.f32.mrf.mxu0  ;;  %v2036_v6 = vpop.f32.mrf.mxu1 }
 0x84b   :  { %v3922_v43 = vmul.f32 -1.442695, %v2043_v41  ;;  %v2044_v57 = vadd.f32 %v1993_v33, %v1798_v39  ;;  %v3924_v59 = vmul.f32 -1.442695, %v2045_v30  ;;  %v2046_v37 = vadd.f32 %v2036_v6, %v1800_v23  ;;  %v6595_v6 = vld [vmem:[%s7950_s1 + $0xc8] ss:$16 sps:$4 sm:$0xff]  }
 0x84c   :  { %v1995_v1 = vpop.f32.mrf.mxu0  ;;  %v2038_v3 = vpop.f32.mrf.mxu1  ;;  %v6625_v30 = vld [vmem:[%s7950_s1 + $0x84] ss:$16 sps:$4 sm:$0xff]   ;;  %v6643_v23 = vld [vmem:[%s7950_s1 + $0x88] ss:$16 sps:$4 sm:$0xff]  }
 0x84d   :  { %4434 = vpow2.f32 %v3922_v43  ;;  %v3923_v15 = vmul.f32 -1.442695, %v2044_v57  ;;  %v2047_v28 = vadd.f32 %v1995_v1, %v1801_v42  ;;  %v2049_v63 = vadd.f32 %v2038_v3, %v1803_v62  ;;  %v6631_v3 = vld [vmem:[%s7950_s1 + $0x8c] ss:$16 sps:$4 sm:$0xff]   ;;  %v6637_v62 = vld [vmem:[%s7950_s1 + $0x80] ss:$16 sps:$4 sm:$0xff]  }
 0x84e   :  { %v1997_v2 = vpop.f32.mrf.mxu0  ;;  %v2040_v29 = vpop.f32.mrf.mxu1 }
 0x84f   :  { %4436 = vpow2.f32 %v3923_v15  ;;  %v3925_v0 = vmul.f32 -1.442695, %v2047_v28  ;;  %v2048_v12 = vadd.f32 %v1997_v2, %v1802_v26  ;;  %v3927_v10 = vmul.f32 -1.442695, %v2049_v63  ;;  %v6569_v26 = vld [vmem:[%s7950_s1 + $0xe8] ss:$16 sps:$4 sm:$0xff]  }
 0x850   :  { %v2050_v38 = vadd.f32 %v2040_v29, %v1804_v7  ;;  %v6575_v15 = vld [vmem:[%s7950_s1 + $0xc4] ss:$16 sps:$4 sm:$0xff]   ;;  %v6581_v28 = vld [vmem:[%s7950_s1 + $0xcc] ss:$16 sps:$4 sm:$0xff]   ;;  %v6589_v2 = vld [vmem:[%s7950_s1 + $0xc0] ss:$16 sps:$4 sm:$0xff]  }
 0x851   :  { %4438 = vpow2.f32 %v3925_v0  ;;  %v3926_v24 = vmul.f32 -1.442695, %v2048_v12  ;;  %v6601_v0 = vld [vmem:[%s7950_s1 + $0xa4] ss:$16 sps:$4 sm:$0xff]   ;;  %v6607_v12 = vld [vmem:[%s7950_s1 + $0xac] ss:$16 sps:$4 sm:$0xff]  }
 0x852   :  { %v6649_v63 = vld [vmem:[%s7950_s1 + $0x64] ss:$16 sps:$4 sm:$0xff]   ;;  %v6667_v29 = vld [vmem:[%s7950_s1 + $0x68] ss:$16 sps:$4 sm:$0xff]   ;;  %v6679_v7 = vld [vmem:[%s7950_s1 + $0x4c] ss:$16 sps:$4 sm:$0xff]  }
 0x853   :  { %4440 = vpow2.f32 %v3926_v24  ;;  %v6619_v24 = vld [vmem:[%s7950_s1 + $0xa8] ss:$16 sps:$4 sm:$0xff]  }
 0x854   :  { %4442 = vpow2.f32 %v3924_v59  ;;  %v6655_v59 = vld [vmem:[%s7950_s1 + $0x6c] ss:$16 sps:$4 sm:$0xff]  }
 0x855   :  { %4444 = vtanh.f32 %v2046_v37  ;;  %v6661_v37 = vld [vmem:[%s7950_s1 + $0x60] ss:$16 sps:$4 sm:$0xff]  }
 0x85a   :  { %v4435_v54 = vpop.eup %4434 }
 0x85b   :  { %v2069_v58 = vadd.f32 1.0, %v4435_v54  ;;  %v6673_v54 = vld [vmem:[%s7950_s1 + $0x44] ss:$16 sps:$4 sm:$0xff]  }
 0x85c   :  { %v4437_v53 = vpop.eup %4436 }
 0x85d   :  { %4446 = vrcp.f32 %v2069_v58  ;;  %v2070_v27 = vadd.f32 1.0, %v4437_v53  ;;  %v6691_v58 = vld [vmem:[%s7950_s1 + $0x48] ss:$16 sps:$4 sm:$0xff]   ;;  %v6697_v53 = vld [vmem:[%s7950_s1 + $0x24] ss:$16 sps:$4 sm:$0xff]  }
 0x85e   :  { %v4439_v14 = vpop.eup %4438  ;;  %4448 = vpow2.f32 %v3927_v10  ;;  %v6685_v10 = vld [vmem:[%s7950_s1 + $0x40] ss:$16 sps:$4 sm:$0xff]  }
 0x85f   :  { %4450 = vrcp.f32 %v2070_v27  ;;  %v2072_v50 = vadd.f32 1.0, %v4439_v14  ;;  %v6709_v27 = vld [vmem:[%s7950_s1 + $0x20] ss:$16 sps:$4 sm:$0xff]   ;;  %v6715_v14 = vld [vmem:[%s7950_s1 + $0x28] ss:$16 sps:$4 sm:$0xff]  }
 0x860   :  { %v4441_v48 = vpop.eup %4440  ;;  %4452 = vtanh.f32 %v2050_v38  ;;  %v6703_v38 = vld [vmem:[%s7950_s1 + $0x2c] ss:$16 sps:$4 sm:$0xff]  }
 0x861   :  { %4454 = vrcp.f32 %v2072_v50  ;;  %v2073_v51 = vadd.f32 1.0, %v4441_v48  ;;  %v4443_v49 = vpop.eup %4442  ;;  %v6721_v50 = vld [vmem:[%s7950_s1 + $0x4] ss:$16 sps:$4 sm:$0xff]   ;;  %v6727_v48 = vld [vmem:[%s7950_s1 + $0xc] ss:$16 sps:$4 sm:$0xff]  }
 0x862   :  { %v4445_v56 = vpop.eup %4444  ;;  %v2071_v35 = vadd.f32 1.0, %v4443_v49  ;;  %8416 = vst [vmem:[#allocation5_spill] sm:$0xff] %v6721_v50  ;;  %8417 = vst [vmem:[#allocation6_spill] sm:$0xff] %v6727_v48  ;;  %v6739_v49 = vld [vmem:[%s7950_s1 + $0x8] ss:$16 sps:$4 sm:$0xff]  }
 0x863   :  { %4456 = vrcp.f32 %v2073_v51  ;;  %v6733_v51 = vld [vmem:[%s7950_s1] ss:$16 sps:$4 sm:$0xff]   ;;  %8419 = vst [vmem:[#allocation8_spill] sm:$0xff] %v6739_v49 }
 0x864   :  { %4458 = vrcp.f32 %v2071_v35  ;;  %8418 = vst [vmem:[#allocation7_spill] sm:$0xff] %v6733_v51  ;;  %v6803_v35 = vld [vmem:[%s7951_s2 + $0xac] ss:$16 sps:$4 sm:$0xff]  }
 0x865   :  { %8429 = vst [vmem:[#allocation18_spill] sm:$0xff] %v6803_v35 }
 0x86a   :  { %v4447_v47 = vpop.eup %4446 }
 0x86b   :  { %v4449_v32 = vpop.eup %4448  ;;  %v2091_v8 = vmul.f32 %v4447_v47, %v4445_v56  ;;  %v6745_v56 = vld [vmem:[%s7951_s2 + $0xe4] ss:$16 sps:$4 sm:$0xff]   ;;  %v6751_v47 = vld [vmem:[%s7951_s2 + $0xec] ss:$16 sps:$4 sm:$0xff]  }
 0x86c   :  { %v4451_v5 = vpop.eup %4450  ;;  %v2074_v31 = vadd.f32 1.0, %v4449_v32  ;;  %8420 = vst [vmem:[#allocation9_spill] sm:$0xff] %v6745_v56  ;;  %8421 = vst [vmem:[#allocation10_spill] sm:$0xff] %v6751_v47  ;;  %v6759_v32 = vld [vmem:[%s7951_s2 + $0xe0] ss:$16 sps:$4 sm:$0xff]  }
 0x86d   :  { %v4453_v36 = vpop.eup %4452  ;;  %v2089_v19 = vmul.f32 %v4451_v5, %v6359_v22  ;;  %8422 = vst [vmem:[#allocation11_spill] sm:$0xff] %v6759_v32  ;;  %v6771_v5 = vld [vmem:[%s7951_s2 + $0xc4] ss:$16 sps:$4 sm:$0xff]  }
 0x86e   :  { %v4455_v13 = vpop.eup %4454  ;;  %8424 = vst [vmem:[#allocation13_spill] sm:$0xff] %v6771_v5 }
 0x86f   :  { %v6553_v20 = vadd.f32 %v2091_v8, %v2089_v19  ;;  %v2092_v4 = vmul.f32 %v4455_v13, %v4453_v36  ;;  %v6765_v8 = vld [vmem:[%s7951_s2 + $0xe8] ss:$16 sps:$4 sm:$0xff]   ;;  %v6785_v36 = vld [vmem:[%s7951_s2 + $0xc0] ss:$16 sps:$4 sm:$0xff]   ;;  %v6797_v13 = vld [vmem:[%s7951_s2 + $0xa4] ss:$16 sps:$4 sm:$0xff]  }
 0x870   :  { %v4457_v17 = vpop.eup %4456  ;;  %8423 = vst [vmem:[#allocation12_spill] sm:$0xff] %v6765_v8  ;;  %8426 = vst [vmem:[#allocation15_spill] sm:$0xff] %v6785_v36  ;;  %v6791_v19 = vld [vmem:[%s7951_s2 + $0xc8] ss:$16 sps:$4 sm:$0xff]  }
 0x871   :  { %v2090_v39 = vmul.f32 %v4457_v17, %v6363_v11  ;;  %4460 = vtanh.f32 %v6553_v20  ;;  %v4459_v33 = vpop.eup %4458  ;;  %v6563_v11 = vld [vmem:[%s7950_s1 + $0xe0] ss:$16 sps:$4 sm:$0xff]   ;;  %8427 = vst [vmem:[#allocation16_spill] sm:$0xff] %v6791_v19  ;;  %8428 = vst [vmem:[#allocation17_spill] sm:$0xff] %v6797_v13  ;;  %v6815_v17 = vld [vmem:[%s7951_s2 + $0xa8] ss:$16 sps:$4 sm:$0xff]  }
 0x872   :  { %4462 = vrcp.f32 %v2074_v31  ;;  %8431 = vst [vmem:[#allocation20_spill] sm:$0xff] %v6815_v17  ;;  %v6821_v31 = vld [vmem:[%s7951_s2 + $0x84] ss:$16 sps:$4 sm:$0xff]  }
 0x873   :  { %v6557_v41 = vadd.f32 %v2092_v4, %v2090_v39  ;;  %v6809_v4 = vld [vmem:[%s7951_s2 + $0xa0] ss:$16 sps:$4 sm:$0xff]   ;;  %8432 = vst [vmem:[#allocation21_spill] sm:$0xff] %v6821_v31  ;;  %v6827_v39 = vld [vmem:[%s7951_s2 + $0x8c] ss:$16 sps:$4 sm:$0xff]  }
 0x874   :  { %8430 = vst [vmem:[#allocation19_spill] sm:$0xff] %v6809_v4  ;;  %8433 = vst [vmem:[#allocation22_spill] sm:$0xff] %v6827_v39 }
 0x875   :  { %4464 = vtanh.f32 %v6557_v41 }
 0x87e   :  { %v4461_v42 = vpop.eup %4460 }
 0x87f   :  { %v4463_v22 = vpop.eup %4462  ;;  %v2097_v25 = vmul.f32 %v4461_v42, %v4459_v33  ;;  %v6833_v33 = vld [vmem:[%s7951_s2 + $0x80] ss:$16 sps:$4 sm:$0xff]   ;;  %v6839_v42 = vld [vmem:[%s7951_s2 + $0x88] ss:$16 sps:$4 sm:$0xff]  }
 0x880   :  { %8434 = vst [vmem:[#allocation23_spill] sm:$0xff] %v6833_v33  ;;  %8435 = vst [vmem:[#allocation24_spill] sm:$0xff] %v6839_v42 }
 0x882   :  { %v4465_v43 = vpop.eup %4464 }
 0x883   :  { %v2098_v57 = vmul.f32 %v4465_v43, %v4463_v22  ;;  %v6845_v22 = vld [vmem:[%s7951_s2 + $0x64] ss:$16 sps:$4 sm:$0xff]   ;;  %v6851_v43 = vld [vmem:[%s7951_s2 + $0x6c] ss:$16 sps:$4 sm:$0xff]  }
 0x884   :  { %8436 = vst [vmem:[#allocation27_spill] sm:$0xff] %v6845_v22  ;;  %8437 = vst [vmem:[#allocation28_spill] sm:$0xff] %v6851_v43 }
 0x885   :  { %v2099_v1 = vpack.c.bf16 %v2098_v57, %v2097_v25  ;;  %v6857_v25 = vld [vmem:[%s7951_s2 + $0x60] ss:$16 sps:$4 sm:$0xff]   ;;  %v6863_v57 = vld [vmem:[%s7951_s2 + $0x68] ss:$16 sps:$4 sm:$0xff]  }
 0x886   :  { %8438 = vst [vmem:[#allocation25_spill] sm:$0xff] %v6857_v25  ;;  %8439 = vst [vmem:[#allocation26_spill] sm:$0xff] %v6863_v57 }
 0x887   :  { %2133 = vmatmul.mubr.bf16.vlgmr.msra.gmra.mxu0 %v2099_v1  ;;  %2176 = vmatmul.mubr.bf16.vlgmr.msra.gmra.mxu1 %v2099_v1  ;;  %v6869_v1 = vld [vmem:[%s7951_s2 + $0x44] ss:$16 sps:$4 sm:$0xff]  }
 0x888   :  { %2204 = vmatpush1.bf16.msra.mxu0 %v6563_v11  ;;  %2247 = vmatpush1.bf16.msra.mxu1 %v6569_v26  ;;  %8440 = vst [vmem:[#allocation29_spill] sm:$0xff] %v6869_v1 }
 0x889   :  { %2205 = vmatprep.subr.bf16.mxu0 %v6575_v15  ;;  %2248 = vmatprep.subr.bf16.mxu1 %v6581_v28 }
 0x88a   :  { %2235 = vmatprep.mubr.bf16.mxu0 %v8201_v45  ;;  %2278 = vmatprep.mubr.bf16.mxu1 %v8201_v45 }
 0x88c   :  { %2206 = vmatpush1.bf16.msra.mxu0 %v6589_v2  ;;  %2249 = vmatpush1.bf16.msra.mxu1 %v6595_v6 }
 0x88d   :  { %2207 = vmatprep.subr.bf16.mxu0 %v6601_v0  ;;  %2250 = vmatprep.subr.bf16.mxu1 %v6607_v12 }
 0x890   :  { %2208 = vmatpush1.bf16.msra.mxu0 %v6613_v46  ;;  %2251 = vmatpush1.bf16.msra.mxu1 %v6619_v24 }
 0x891   :  { %2209 = vmatprep.subr.bf16.mxu0 %v6625_v30  ;;  %2252 = vmatprep.subr.bf16.mxu1 %v6631_v3 }
 0x894   :  { %2210 = vmatpush1.bf16.msra.mxu0 %v6637_v62  ;;  %2253 = vmatpush1.bf16.msra.mxu1 %v6643_v23 }
 0x895   :  { %2211 = vmatprep.subr.bf16.mxu0 %v6649_v63  ;;  %2254 = vmatprep.subr.bf16.mxu1 %v6655_v59 }
 0x898   :  { %2212 = vmatpush1.bf16.msra.mxu0 %v6661_v37  ;;  %2255 = vmatpush1.bf16.msra.mxu1 %v6667_v29 }
 0x899   :  { %2213 = vmatprep.subr.bf16.mxu0 %v6673_v54  ;;  %2256 = vmatprep.subr.bf16.mxu1 %v6679_v7 }
 0x89c   :  { %2214 = vmatpush1.bf16.msra.mxu0 %v6685_v10  ;;  %2257 = vmatpush1.bf16.msra.mxu1 %v6691_v58 }
 0x89d   :  { %2215 = vmatprep.subr.bf16.mxu0 %v6697_v53  ;;  %2258 = vmatprep.subr.bf16.mxu1 %v6703_v38 }
 0x8a0   :  { %2216 = vmatpush1.bf16.msra.mxu0 %v6709_v27  ;;  %2259 = vmatpush1.bf16.msra.mxu1 %v6715_v14 }
 0x8a1   :  { %2217 = vmatprep.subr.bf16.mxu0 %v6721_v50  ;;  %2260 = vmatprep.subr.bf16.mxu1 %v6727_v48 }
 0x8a4   :  { %2218 = vmatpush1.bf16.msra.mxu0 %v6733_v51  ;;  %2261 = vmatpush1.bf16.msra.mxu1 %v6739_v49 }
 0x8a5   :  { %2346 = vmatprep.subr.bf16.mxu0 %v6745_v56  ;;  %2389 = vmatprep.subr.bf16.mxu1 %v6751_v47  ;;  %v3930_v56 = vld [vmem:[%s7949_s0 + $0x110] sm:$0xff] }
 0x8a7   :  { %2236 = vmatmul.mubr.bf16.vlgmr.msra.gmra.mxu0 %v6488_v55  ;;  %2279 = vmatmul.mubr.bf16.vlgmr.msra.gmra.mxu1 %v6488_v55  ;;  %v6777_v55 = vld [vmem:[%s7951_s2 + $0xcc] ss:$16 sps:$4 sm:$0xff]  }
 0x8a8   :  { %2347 = vmatpush1.bf16.msra.mxu0 %v6759_v32  ;;  %2390 = vmatpush1.bf16.msra.mxu1 %v6765_v8  ;;  %8425 = vst [vmem:[#allocation14_spill] sm:$0xff] %v6777_v55 }
 0x8a9   :  { %2348 = vmatprep.subr.bf16.mxu0 %v6771_v5  ;;  %2391 = vmatprep.subr.bf16.mxu1 %v6777_v55  ;;  %v3933_v55 = vld [vmem:[%s7949_s0 + $0x128] sm:$0xff] }
 0x8aa   :  { %2378 = vmatprep.mubr.bf16.mxu0 %v8201_v45  ;;  %2421 = vmatprep.mubr.bf16.mxu1 %v8201_v45 }
 0x8ac   :  { %2349 = vmatpush1.bf16.msra.mxu0 %v6785_v36  ;;  %2392 = vmatpush1.bf16.msra.mxu1 %v6791_v19 }
 0x8ad   :  { %2350 = vmatprep.subr.bf16.mxu0 %v6797_v13  ;;  %2393 = vmatprep.subr.bf16.mxu1 %v6803_v35 }
 0x8b0   :  { %2351 = vmatpush1.bf16.msra.mxu0 %v6809_v4  ;;  %2394 = vmatpush1.bf16.msra.mxu1 %v6815_v17  ;;  %v3932_v4 = vld [vmem:[%s7949_s0 + $0x120] sm:$0xff] }
 0x8b1   :  { %2352 = vmatprep.subr.bf16.mxu0 %v6821_v31  ;;  %2395 = vmatprep.subr.bf16.mxu1 %v6827_v39 }
 0x8b4   :  { %2353 = vmatpush1.bf16.msra.mxu0 %v6833_v33  ;;  %2396 = vmatpush1.bf16.msra.mxu1 %v6839_v42 }
 0x8b5   :  { %2354 = vmatprep.subr.bf16.mxu0 %v6845_v22  ;;  %2397 = vmatprep.subr.bf16.mxu1 %v6851_v43  ;;  %v6875_v43 = vld [vmem:[%s7951_s2 + $0x4c] ss:$16 sps:$4 sm:$0xff]  }
 0x8b6   :  { %8441 = vst [vmem:[#allocation30_spill] sm:$0xff] %v6875_v43 }
 0x8b8   :  { %2355 = vmatpush1.bf16.msra.mxu0 %v6857_v25  ;;  %2398 = vmatpush1.bf16.msra.mxu1 %v6863_v57  ;;  %v6881_v25 = vld [vmem:[%s7951_s2 + $0x40] ss:$16 sps:$4 sm:$0xff]   ;;  %v6887_v57 = vld [vmem:[%s7951_s2 + $0x48] ss:$16 sps:$4 sm:$0xff]  }
 0x8b9   :  { %2356 = vmatprep.subr.bf16.mxu0 %v6869_v1  ;;  %2399 = vmatprep.subr.bf16.mxu1 %v6875_v43  ;;  %8442 = vst [vmem:[#allocation31_spill] sm:$0xff] %v6881_v25  ;;  %8443 = vst [vmem:[#allocation32_spill] sm:$0xff] %v6887_v57  ;;  %v6893_v1 = vld [vmem:[%s7951_s2 + $0x24] ss:$16 sps:$4 sm:$0xff]   ;;  %v6899_v43 = vld [vmem:[%s7951_s2 + $0x2c] ss:$16 sps:$4 sm:$0xff]  }
 0x8ba   :  { %8444 = vst [vmem:[#allocation33_spill] sm:$0xff] %v6893_v1  ;;  %8445 = vst [vmem:[#allocation34_spill] sm:$0xff] %v6899_v43 }
 0x8bc   :  { %2357 = vmatpush1.bf16.msra.mxu0 %v6881_v25  ;;  %2400 = vmatpush1.bf16.msra.mxu1 %v6887_v57  ;;  %v6905_v25 = vld [vmem:[%s7951_s2 + $0x20] ss:$16 sps:$4 sm:$0xff]   ;;  %v6911_v57 = vld [vmem:[%s7951_s2 + $0x28] ss:$16 sps:$4 sm:$0xff]  }
 0x8bd   :  { %2358 = vmatprep.subr.bf16.mxu0 %v6893_v1  ;;  %2401 = vmatprep.subr.bf16.mxu1 %v6899_v43  ;;  %8446 = vst [vmem:[#allocation35_spill] sm:$0xff] %v6905_v25  ;;  %8447 = vst [vmem:[#allocation36_spill] sm:$0xff] %v6911_v57  ;;  %v6917_v1 = vld [vmem:[%s7951_s2 + $0x4] ss:$16 sps:$4 sm:$0xff]   ;;  %v6923_v43 = vld [vmem:[%s7951_s2 + $0xc] ss:$16 sps:$4 sm:$0xff]  }
 0x8be   :  { %8448 = vst [vmem:[#allocation37_spill] sm:$0xff] %v6917_v1  ;;  %8449 = vst [vmem:[#allocation38_spill] sm:$0xff] %v6923_v43 }
 0x8c0   :  { %2359 = vmatpush1.bf16.msra.mxu0 %v6905_v25  ;;  %2402 = vmatpush1.bf16.msra.mxu1 %v6911_v57  ;;  %v6929_v25 = vld [vmem:[%s7951_s2] ss:$16 sps:$4 sm:$0xff]   ;;  %v6935_v57 = vld [vmem:[%s7951_s2 + $0x8] ss:$16 sps:$4 sm:$0xff]  }
 0x8c1   :  { %2360 = vmatprep.subr.bf16.mxu0 %v6917_v1  ;;  %2403 = vmatprep.subr.bf16.mxu1 %v6923_v43  ;;  %8450 = vst [vmem:[#allocation39_spill] sm:$0xff] %v6929_v25  ;;  %8451 = vst [vmem:[#allocation40_spill] sm:$0xff] %v6935_v57 }
 0x8c4   :  { %2361 = vmatpush1.bf16.msra.mxu0 %v6929_v25  ;;  %2404 = vmatpush1.bf16.msra.mxu1 %v6935_v57  ;;  %v3928_v57 = vld [vmem:[%s7949_s0 + $0x100] sm:$0xff] }
 0x8c5   :  { %2489 = vmatprep.subr.bf16.mxu0 %v6434_v34  ;;  %2532 = vmatprep.subr.bf16.mxu1 %v6437_v40  ;;  %v3929_v40 = vld [vmem:[%s7949_s0 + $0x108] sm:$0xff] }
 0x947   :  { %v6940_v1 = vpop.f32.mrf.mxu0  ;;  %v6944_v22 = vpop.f32.mrf.mxu1 }
 0x949   :  { %v6942_v43 = vpop.f32.mrf.mxu0  ;;  %v6948_v25 = vpop.f32.mrf.mxu1 }
 0x94b   :  { %v6946_v42 = vpop.f32.mrf.mxu0  ;;  %v6955_v39 = vpop.f32.mrf.mxu1 }
 0x94d   :  { %v6950_v33 = vpop.f32.mrf.mxu0  ;;  %v6963_v35 = vpop.f32.mrf.mxu1 }
 0x967   :  { %v2237_v34 = vpop.f32.mrf.mxu0  ;;  %v2280_v5 = vpop.f32.mrf.mxu1 }
 0x968   :  { %v2289_v31 = vadd.f32 %v3928_v57, %v2237_v34 }
 0x969   :  { %v2239_v17 = vpop.f32.mrf.mxu0  ;;  %v2282_v49 = vpop.f32.mrf.mxu1 }
 0x96a   :  { %v3936_v13 = vmul.f32 -1.442695, %v2289_v31  ;;  %v2290_v19 = vadd.f32 %v3929_v40, %v2239_v17  ;;  %v2291_v31 = vadd.f32 %v3930_v56, %v2280_v5 }
 0x96b   :  { %v2241_v36 = vpop.f32.mrf.mxu0  ;;  %v2284_v40 = vpop.f32.mrf.mxu1 }
 0x96c   :  { %4466 = vpow2.f32 %v3936_v13  ;;  %v3937_v8 = vmul.f32 -1.442695, %v2290_v19  ;;  %v2293_v32 = vadd.f32 %v3932_v4, %v2241_v36  ;;  %v3934_v13 = vld [vmem:[%s7949_s0 + $0x130] sm:$0xff]  ;;  %v3935_v4 = vld [vmem:[%s7949_s0 + $0x138] sm:$0xff] }
 0x96d   :  { %v2243_v47 = vpop.f32.mrf.mxu0 }
 0x96e   :  { %4468 = vpow2.f32 %v3937_v8  ;;  %v3939_v57 = vmul.f32 -1.442695, %v2293_v32  ;;  %v2294_v34 = vadd.f32 %v3933_v55, %v2243_v47  ;;  %v3931_v8 = vld [vmem:[%s7949_s0 + $0x118] sm:$0xff]  ;;  %v3938_v32 = vmul.f32 -1.442695, %v2291_v31 }
 0x96f   :  { %v2295_v47 = vadd.f32 %v3934_v13, %v2284_v40  ;;  %v2292_v36 = vadd.f32 %v3931_v8, %v2282_v49 }
 0x970   :  { %4470 = vpow2.f32 %v3939_v57  ;;  %v3940_v17 = vmul.f32 -1.442695, %v2294_v34  ;;  %v2286_v57 = vpop.f32.mrf.mxu1 }
 0x971   :  { %v3941_v5 = vmul.f32 -1.442695, %v2295_v47  ;;  %v2296_v51 = vadd.f32 %v3935_v4, %v2286_v57 }
 0x972   :  { %4472 = vpow2.f32 %v3940_v17 }
 0x973   :  { %4474 = vpow2.f32 %v3938_v32 }
 0x979   :  { %v4467_v55 = vpop.eup %4466 }
 0x97a   :  { %v2315_v19 = vadd.f32 1.0, %v4467_v55 }
 0x97b   :  { %v4469_v56 = vpop.eup %4468 }
 0x97c   :  { %4476 = vrcp.f32 %v2315_v19  ;;  %v2316_v34 = vadd.f32 1.0, %v4469_v56 }
 0x97d   :  { %v4471_v17 = vpop.eup %4470  ;;  %4478 = vtanh.f32 %v2292_v36 }
 0x97e   :  { %4480 = vrcp.f32 %v2316_v34  ;;  %v2318_v48 = vadd.f32 1.0, %v4471_v17 }
 0x97f   :  { %v4473_v31 = vpop.eup %4472  ;;  %4482 = vpow2.f32 %v3941_v5 }
 0x980   :  { %4484 = vrcp.f32 %v2318_v48  ;;  %v2319_v49 = vadd.f32 1.0, %v4473_v31  ;;  %v4475_v13 = vpop.eup %4474 }
 0x981   :  { %4486 = vtanh.f32 %v2296_v51  ;;  %v2317_v56 = vadd.f32 1.0, %v4475_v13 }
 0x982   :  { %4488 = vrcp.f32 %v2319_v49 }
 0x983   :  { %4490 = vrcp.f32 %v2317_v56  ;;  %v7012_v56 = vld [vmem:[#allocation2 + $0xa4] ss:$16 sps:$4 sm:$0xff]  }
 0x984   :  { %8453 = vst [vmem:[#allocation42_spill] sm:$0xff] %v7012_v56 }
 0x989   :  { %v4477_v40 = vpop.eup %4476 }
 0x98a   :  { %v4479_v8 = vpop.eup %4478 }
 0x98b   :  { %v4481_v55 = vpop.eup %4480  ;;  %v2337_v47 = vmul.f32 %v4479_v8, %v4477_v40 }
 0x98c   :  { %v4483_v50 = vpop.eup %4482  ;;  %v2335_v32 = vmul.f32 %v4481_v55, %v6481_v44  ;;  %v6998_v55 = vld [vmem:[#allocation2 + $0xc4] ss:$16 sps:$4 sm:$0xff]  }
 0x98d   :  { %v4485_v19 = vpop.eup %4484  ;;  %v2320_v34 = vadd.f32 1.0, %v4483_v50  ;;  %v6995_v50 = vld [vmem:[#allocation2 + $0xe8] ss:$16 sps:$4 sm:$0xff]  }
 0x98e   :  { %v4487_v36 = vpop.eup %4486  ;;  %v6981_v4 = vadd.f32 %v2337_v47, %v2335_v32  ;;  %v7001_v32 = vld [vmem:[#allocation2 + $0xcc] ss:$16 sps:$4 sm:$0xff]   ;;  %v7006_v47 = vld [vmem:[#allocation2 + $0xc0] ss:$16 sps:$4 sm:$0xff]  }
 0x98f   :  { %v4489_v57 = vpop.eup %4488  ;;  %v2338_v5 = vmul.f32 %v4487_v36, %v4485_v19  ;;  %v7009_v19 = vld [vmem:[#allocation2 + $0xc8] ss:$16 sps:$4 sm:$0xff]   ;;  %v7015_v36 = vld [vmem:[#allocation2 + $0xac] ss:$16 sps:$4 sm:$0xff]  }
 0x990   :  { %v2336_v48 = vmul.f32 %v4489_v57, %v6485_v52  ;;  %4492 = vtanh.f32 %v6981_v4  ;;  %v4491_v44 = vpop.eup %4490  ;;  %v6992_v52 = vld [vmem:[#allocation2 + $0xe0] ss:$16 sps:$4 sm:$0xff]   ;;  %8452 = vst [vmem:[#allocation41_spill] sm:$0xff] %v7009_v19  ;;  %8454 = vst [vmem:[#allocation43_spill] sm:$0xff] %v7015_v36 }
 0x991   :  { %4494 = vrcp.f32 %v2320_v34  ;;  %v7018_v57 = vld [vmem:[#allocation2 + $0xa0] ss:$16 sps:$4 sm:$0xff]   ;;  %v7021_v34 = vld [vmem:[#allocation2 + $0xa8] ss:$16 sps:$4 sm:$0xff]  }
 0x992   :  { %v6985_v51 = vadd.f32 %v2338_v5, %v2336_v48  ;;  %8455 = vst [vmem:[#allocation44_spill] sm:$0xff] %v7018_v57  ;;  %8456 = vst [vmem:[#allocation45_spill] sm:$0xff] %v7021_v34  ;;  %v7024_v48 = vld [vmem:[#allocation2 + $0x84] ss:$16 sps:$4 sm:$0xff]   ;;  %v7027_v5 = vld [vmem:[#allocation2 + $0x8c] ss:$16 sps:$4 sm:$0xff]  }
 0x993   :  { %8457 = vst [vmem:[#allocation46_spill] sm:$0xff] %v7024_v48  ;;  %8458 = vst [vmem:[#allocation47_spill] sm:$0xff] %v7027_v5 }
 0x994   :  { %4496 = vtanh.f32 %v6985_v51 }
 0x99d   :  { %v4493_v17 = vpop.eup %4492 }
 0x99e   :  { %v4495_v31 = vpop.eup %4494  ;;  %v2343_v13 = vmul.f32 %v4493_v17, %v4491_v44  ;;  %v7030_v44 = vld [vmem:[#allocation2 + $0x80] ss:$16 sps:$4 sm:$0xff]   ;;  %v7033_v17 = vld [vmem:[#allocation2 + $0x88] ss:$16 sps:$4 sm:$0xff]  }
 0x99f   :  { %8459 = vst [vmem:[#allocation48_spill] sm:$0xff] %v7030_v44  ;;  %8460 = vst [vmem:[#allocation49_spill] sm:$0xff] %v7033_v17 }
 0x9a1   :  { %v4497_v49 = vpop.eup %4496 }
 0x9a2   :  { %v2344_v40 = vmul.f32 %v4497_v49, %v4495_v31  ;;  %v7036_v31 = vld [vmem:[#allocation2 + $0x64] ss:$16 sps:$4 sm:$0xff]   ;;  %v7039_v49 = vld [vmem:[#allocation2 + $0x6c] ss:$16 sps:$4 sm:$0xff]  }
 0x9a3   :  { %8461 = vst [vmem:[#allocation50_spill] sm:$0xff] %v7036_v31  ;;  %8462 = vst [vmem:[#allocation51_spill] sm:$0xff] %v7039_v49 }
 0x9a4   :  { %v6988_v8 = vpack.c.bf16 %v2344_v40, %v2343_v13  ;;  %v7042_v13 = vld [vmem:[#allocation2 + $0x60] ss:$16 sps:$4 sm:$0xff]   ;;  %v7045_v40 = vld [vmem:[#allocation2 + $0x68] ss:$16 sps:$4 sm:$0xff]  }
 0x9a5   :  { %8463 = vst [vmem:[#allocation52_spill] sm:$0xff] %v7042_v13  ;;  %8464 = vst [vmem:[#allocation53_spill] sm:$0xff] %v7045_v40 }
 0x9a6   :  { %2379 = vmatmul.mubr.bf16.vlgmr.msra.gmra.mxu0 %v6988_v8  ;;  %2422 = vmatmul.mubr.bf16.vlgmr.msra.gmra.mxu1 %v6988_v8 }
 0x9a7   :  { %2490 = vmatpush1.bf16.msra.mxu0 %v6992_v52  ;;  %2533 = vmatpush1.bf16.msra.mxu1 %v6995_v50 }
 0x9a8   :  { %2491 = vmatprep.subr.bf16.mxu0 %v6998_v55  ;;  %2534 = vmatprep.subr.bf16.mxu1 %v7001_v32 }
 0x9a9   :  { %2521 = vmatprep.mubr.bf16.mxu0 %v8201_v45  ;;  %2564 = vmatprep.mubr.bf16.mxu1 %v8201_v45 }
 0x9ab   :  { %2492 = vmatpush1.bf16.msra.mxu0 %v7006_v47  ;;  %2535 = vmatpush1.bf16.msra.mxu1 %v7009_v19 }
 0x9ac   :  { %2493 = vmatprep.subr.bf16.mxu0 %v7012_v56  ;;  %2536 = vmatprep.subr.bf16.mxu1 %v7015_v36 }
 0x9af   :  { %2494 = vmatpush1.bf16.msra.mxu0 %v7018_v57  ;;  %2537 = vmatpush1.bf16.msra.mxu1 %v7021_v34 }
 0x9b0   :  { %2495 = vmatprep.subr.bf16.mxu0 %v7024_v48  ;;  %2538 = vmatprep.subr.bf16.mxu1 %v7027_v5 }
 0x9b3   :  { %2496 = vmatpush1.bf16.msra.mxu0 %v7030_v44  ;;  %2539 = vmatpush1.bf16.msra.mxu1 %v7033_v17  ;;  %v7048_v44 = vld [vmem:[#allocation2 + $0x44] ss:$16 sps:$4 sm:$0xff]   ;;  %v7051_v17 = vld [vmem:[#allocation2 + $0x4c] ss:$16 sps:$4 sm:$0xff]  }
 0x9b4   :  { %2497 = vmatprep.subr.bf16.mxu0 %v7036_v31  ;;  %2540 = vmatprep.subr.bf16.mxu1 %v7039_v49  ;;  %8465 = vst [vmem:[#allocation54_spill] sm:$0xff] %v7048_v44  ;;  %8466 = vst [vmem:[#allocation55_spill] sm:$0xff] %v7051_v17  ;;  %v7054_v31 = vld [vmem:[#allocation2 + $0x40] ss:$16 sps:$4 sm:$0xff]   ;;  %v7057_v49 = vld [vmem:[#allocation2 + $0x48] ss:$16 sps:$4 sm:$0xff]  }
 0x9b5   :  { %8467 = vst [vmem:[#allocation56_spill] sm:$0xff] %v7054_v31  ;;  %8468 = vst [vmem:[#allocation57_spill] sm:$0xff] %v7057_v49 }
 0x9b7   :  { %2498 = vmatpush1.bf16.msra.mxu0 %v7042_v13  ;;  %2541 = vmatpush1.bf16.msra.mxu1 %v7045_v40  ;;  %v7060_v13 = vld [vmem:[#allocation2 + $0x24] ss:$16 sps:$4 sm:$0xff]   ;;  %v7063_v40 = vld [vmem:[#allocation2 + $0x2c] ss:$16 sps:$4 sm:$0xff]  }
 0x9b8   :  { %2499 = vmatprep.subr.bf16.mxu0 %v7048_v44  ;;  %2542 = vmatprep.subr.bf16.mxu1 %v7051_v17  ;;  %8469 = vst [vmem:[#allocation58_spill] sm:$0xff] %v7060_v13  ;;  %8470 = vst [vmem:[#allocation59_spill] sm:$0xff] %v7063_v40  ;;  %v7066_v44 = vld [vmem:[#allocation2 + $0x20] ss:$16 sps:$4 sm:$0xff]   ;;  %v7069_v17 = vld [vmem:[#allocation2 + $0x28] ss:$16 sps:$4 sm:$0xff]  }
 0x9b9   :  { %8471 = vst [vmem:[#allocation60_spill] sm:$0xff] %v7066_v44  ;;  %8472 = vst [vmem:[#allocation61_spill] sm:$0xff] %v7069_v17 }
 0x9bb   :  { %2500 = vmatpush1.bf16.msra.mxu0 %v7054_v31  ;;  %2543 = vmatpush1.bf16.msra.mxu1 %v7057_v49  ;;  %v7072_v31 = vld [vmem:[#allocation2 + $0x4] ss:$16 sps:$4 sm:$0xff]   ;;  %v7075_v49 = vld [vmem:[#allocation2 + $0xc] ss:$16 sps:$4 sm:$0xff]  }
 0x9bc   :  { %2501 = vmatprep.subr.bf16.mxu0 %v7060_v13  ;;  %2544 = vmatprep.subr.bf16.mxu1 %v7063_v40  ;;  %8473 = vst [vmem:[#allocation62_spill] sm:$0xff] %v7072_v31  ;;  %8474 = vst [vmem:[#allocation63_spill] sm:$0xff] %v7075_v49  ;;  %v7078_v13 = vld [vmem:[#allocation2] ss:$16 sps:$4 sm:$0xff]   ;;  %v7081_v40 = vld [vmem:[#allocation2 + $0x8] ss:$16 sps:$4 sm:$0xff]  }
 0x9bd   :  { %8475 = vst [vmem:[#allocation64_spill] sm:$0xff] %v7078_v13  ;;  %8476 = vst [vmem:[#allocation65_spill] sm:$0xff] %v7081_v40 }
 0x9bf   :  { %2502 = vmatpush1.bf16.msra.mxu0 %v7066_v44  ;;  %2545 = vmatpush1.bf16.msra.mxu1 %v7069_v17  ;;  %v2186_v17 = vadd.f32 %v6940_v1, %v8291_v18  ;;  %v2187_v44 = vadd.f32 %v6942_v43, %v8292_v21 }
 0x9c0   :  { %2503 = vmatprep.subr.bf16.mxu0 %v7072_v31  ;;  %2546 = vmatprep.subr.bf16.mxu1 %v7075_v49 }
 0x9c3   :  { %2504 = vmatpush1.bf16.msra.mxu0 %v7078_v13  ;;  %2547 = vmatpush1.bf16.msra.mxu1 %v7081_v40  ;;  %v2190_v13 = vadd.f32 %v6946_v42, %v8291_v18 }
 0x9c4   :  { %2592 = vmatprep.subr.bf16.mxu0 %v6527_v9  ;;  %2635 = vmatprep.subr.bf16.mxu1 %v6533_v16  ;;  %v2191_v9 = vadd.f32 %v6950_v33, %v8292_v21  ;;  %v2189_v33 = vadd.f32 %v6948_v25, %v5615_v60 }
 0xa66   :  { %v2380_v31 = vpop.f32.mrf.mxu0  ;;  %v2423_v34 = vpop.f32.mrf.mxu1 }
 0xa67   :  { %v2432_v49 = vadd.f32 %v2380_v31, %v2186_v17  ;;  %v2188_v17 = vadd.f32 %v6944_v22, %v8293_v61 }
 0xa68   :  { %v2382_v5 = vpop.f32.mrf.mxu0  ;;  %v2425_v56 = vpop.f32.mrf.mxu1 }
 0xa69   :  { %v3942_v48 = vmul.f32 -1.442695, %v2432_v49  ;;  %v2433_v57 = vadd.f32 %v2382_v5, %v2187_v44  ;;  %v2434_v31 = vadd.f32 %v2423_v34, %v2188_v17  ;;  %v2192_v5 = vadd.f32 %v6955_v39, %v8293_v61 }
 0xa6a   :  { %v2384_v40 = vpop.f32.mrf.mxu0  ;;  %v2427_v49 = vpop.f32.mrf.mxu1  ;;  %v2435_v44 = vadd.f32 %v2425_v56, %v2189_v33 }
 0xa6b   :  { %4498 = vpow2.f32 %v3942_v48  ;;  %v3943_v16 = vmul.f32 -1.442695, %v2433_v57  ;;  %v2436_v36 = vadd.f32 %v2384_v40, %v2190_v13  ;;  %v2438_v57 = vadd.f32 %v2427_v49, %v2192_v5 }
 0xa6c   :  { %v2386_v1 = vpop.f32.mrf.mxu0  ;;  %v3944_v48 = vmul.f32 -1.442695, %v2434_v31  ;;  %v2429_v13 = vpop.f32.mrf.mxu1  ;;  %v2193_v40 = vadd.f32 %v6963_v35, %v5615_v60 }
 0xa6d   :  { %4500 = vpow2.f32 %v3943_v16  ;;  %v3945_v19 = vmul.f32 -1.442695, %v2436_v36  ;;  %v2437_v43 = vadd.f32 %v2386_v1, %v2191_v9  ;;  %v3947_v22 = vmul.f32 -1.442695, %v2438_v57 }
 0xa6e   :  { %v2439_v9 = vadd.f32 %v2429_v13, %v2193_v40 }
 0xa6f   :  { %4502 = vpow2.f32 %v3945_v19  ;;  %v3946_v42 = vmul.f32 -1.442695, %v2437_v43 }
 0xa71   :  { %4504 = vpow2.f32 %v3946_v42 }
 0xa72   :  { %4506 = vpow2.f32 %v3944_v48 }
 0xa73   :  { %4508 = vtanh.f32 %v2435_v44 }
 0xa78   :  { %v4499_v36 = vpop.eup %4498 }
 0xa79   :  { %v2458_v19 = vadd.f32 1.0, %v4499_v36 }
 0xa7a   :  { %v4501_v34 = vpop.eup %4500 }
 0xa7b   :  { %4510 = vrcp.f32 %v2458_v19  ;;  %v2459_v16 = vadd.f32 1.0, %v4501_v34 }
 0xa7c   :  { %v4503_v39 = vpop.eup %4502  ;;  %4512 = vpow2.f32 %v3947_v22 }
 0xa7d   :  { %4514 = vrcp.f32 %v2459_v16  ;;  %v2461_v25 = vadd.f32 1.0, %v4503_v39 }
 0xa7e   :  { %v4505_v1 = vpop.eup %4504  ;;  %4516 = vtanh.f32 %v2439_v9 }
 0xa7f   :  { %4518 = vrcp.f32 %v2461_v25  ;;  %v2462_v56 = vadd.f32 1.0, %v4505_v1  ;;  %v4507_v43 = vpop.eup %4506 }
 0xa80   :  { %v4509_v17 = vpop.eup %4508  ;;  %v2460_v48 = vadd.f32 1.0, %v4507_v43  ;;  %v8506_v43 = vld [vmem:[#allocation34_spill] sm:$0xff] }
 0xa81   :  { %4520 = vrcp.f32 %v2462_v56  ;;  %v8505_v56 = vld [vmem:[#allocation33_spill] sm:$0xff] }
 0xa82   :  { %4522 = vrcp.f32 %v2460_v48 }
 0xa88   :  { %v4511_v35 = vpop.eup %4510 }
 0xa89   :  { %v4513_v42 = vpop.eup %4512  ;;  %v2480_v31 = vmul.f32 %v4511_v35, %v4509_v17  ;;  %v8507_v17 = vld [vmem:[#allocation35_spill] sm:$0xff]  ;;  %v8508_v35 = vld [vmem:[#allocation36_spill] sm:$0xff] }
 0xa8a   :  { %v4515_v49 = vpop.eup %4514  ;;  %v2463_v40 = vadd.f32 1.0, %v4513_v42  ;;  %v8509_v42 = vld [vmem:[#allocation37_spill] sm:$0xff] }
 0xa8b   :  { %v4517_v5 = vpop.eup %4516  ;;  %v2478_v33 = vmul.f32 %v4515_v49, %v6553_v20  ;;  %v8511_v49 = vld [vmem:[#allocation39_spill] sm:$0xff] }
 0xa8c   :  { %v4519_v57 = vpop.eup %4518 }
 0xa8d   :  { %v7103_v44 = vadd.f32 %v2480_v31, %v2478_v33  ;;  %v2481_v13 = vmul.f32 %v4519_v57, %v4517_v5  ;;  %v8510_v31 = vld [vmem:[#allocation38_spill] sm:$0xff]  ;;  %v8512_v5 = vld [vmem:[#allocation40_spill] sm:$0xff]  ;;  %v7178_v33 = vld [vmem:[#allocation2 + $0xe4] ss:$16 sps:$4 sm:$0xff]  }
 0xa8e   :  { %v4521_v36 = vpop.eup %4520  ;;  %v7181_v57 = vld [vmem:[#allocation2 + $0xec] ss:$16 sps:$4 sm:$0xff]  }
 0xa8f   :  { %v2479_v22 = vmul.f32 %v4521_v36, %v6557_v41  ;;  %4524 = vtanh.f32 %v7103_v44  ;;  %v4523_v34 = vpop.eup %4522  ;;  %v8477_v41 = vld [vmem:[#allocation5_spill] sm:$0xff] }
 0xa90   :  { %4526 = vrcp.f32 %v2463_v40 }
 0xa91   :  { %v7107_v19 = vadd.f32 %v2481_v13, %v2479_v22 }
 0xa93   :  { %4528 = vtanh.f32 %v7107_v19 }
 0xa9c   :  { %v4525_v9 = vpop.eup %4524 }
 0xa9d   :  { %v4527_v20 = vpop.eup %4526  ;;  %v2486_v39 = vmul.f32 %v4525_v9, %v4523_v34  ;;  %v3948_v9 = vld [vmem:[%s7949_s0 + $0x140] sm:$0xff] }
 0xaa0   :  { %v4529_v16 = vpop.eup %4528 }
 0xaa1   :  { %v2487_v25 = vmul.f32 %v4529_v16, %v4527_v20 }
 0xaa3   :  { %v2488_v1 = vpack.c.bf16 %v2487_v25, %v2486_v39  ;;  %v3949_v39 = vld [vmem:[%s7949_s0 + $0x148] sm:$0xff] }
 0xaa5   :  { %2522 = vmatmul.mubr.bf16.vlgmr.msra.gmra.mxu0 %v2488_v1  ;;  %2565 = vmatmul.mubr.bf16.vlgmr.msra.gmra.mxu1 %v2488_v1 }
 0xaa6   :  { %2593 = vmatpush1.bf16.msra.mxu0 %v6563_v11  ;;  %2636 = vmatpush1.bf16.msra.mxu1 %v6569_v26  ;;  %v8478_v11 = vld [vmem:[#allocation6_spill] sm:$0xff]  ;;  %v8479_v26 = vld [vmem:[#allocation7_spill] sm:$0xff] }
 0xaa7   :  { %2594 = vmatprep.subr.bf16.mxu0 %v6575_v15  ;;  %2637 = vmatprep.subr.bf16.mxu1 %v6581_v28  ;;  %v8480_v15 = vld [vmem:[#allocation8_spill] sm:$0xff]  ;;  %v8481_v28 = vld [vmem:[#allocation9_spill] sm:$0xff] }
 0xaa8   :  { %2624 = vmatprep.mubr.bf16.mxu0 %v8201_v45  ;;  %2667 = vmatprep.mubr.bf16.mxu1 %v8201_v45 }
 0xaaa   :  { %2595 = vmatpush1.bf16.msra.mxu0 %v6589_v2  ;;  %2638 = vmatpush1.bf16.msra.mxu1 %v6595_v6  ;;  %v8482_v2 = vld [vmem:[#allocation10_spill] sm:$0xff]  ;;  %v8483_v6 = vld [vmem:[#allocation11_spill] sm:$0xff] }
 0xaab   :  { %2596 = vmatprep.subr.bf16.mxu0 %v6601_v0  ;;  %2639 = vmatprep.subr.bf16.mxu1 %v6607_v12  ;;  %v8484_v0 = vld [vmem:[#allocation12_spill] sm:$0xff]  ;;  %v8485_v12 = vld [vmem:[#allocation13_spill] sm:$0xff] }
 0xaae   :  { %2597 = vmatpush1.bf16.msra.mxu0 %v6613_v46  ;;  %2640 = vmatpush1.bf16.msra.mxu1 %v6619_v24  ;;  %v8486_v46 = vld [vmem:[#allocation14_spill] sm:$0xff]  ;;  %v8487_v24 = vld [vmem:[#allocation15_spill] sm:$0xff] }
 0xaaf   :  { %2598 = vmatprep.subr.bf16.mxu0 %v6625_v30  ;;  %2641 = vmatprep.subr.bf16.mxu1 %v6631_v3  ;;  %v8488_v30 = vld [vmem:[#allocation16_spill] sm:$0xff]  ;;  %v8489_v3 = vld [vmem:[#allocation17_spill] sm:$0xff] }
 0xab2   :  { %2599 = vmatpush1.bf16.msra.mxu0 %v6637_v62  ;;  %2642 = vmatpush1.bf16.msra.mxu1 %v6643_v23  ;;  %v8490_v62 = vld [vmem:[#allocation18_spill] sm:$0xff]  ;;  %v8491_v23 = vld [vmem:[#allocation19_spill] sm:$0xff] }
 0xab3   :  { %2600 = vmatprep.subr.bf16.mxu0 %v6649_v63  ;;  %2643 = vmatprep.subr.bf16.mxu1 %v6655_v59  ;;  %v8492_v63 = vld [vmem:[#allocation20_spill] sm:$0xff]  ;;  %v8493_v59 = vld [vmem:[#allocation21_spill] sm:$0xff] }
 0xab6   :  { %2601 = vmatpush1.bf16.msra.mxu0 %v6661_v37  ;;  %2644 = vmatpush1.bf16.msra.mxu1 %v6667_v29  ;;  %v8494_v37 = vld [vmem:[#allocation22_spill] sm:$0xff]  ;;  %v8495_v29 = vld [vmem:[#allocation23_spill] sm:$0xff] }
 0xab7   :  { %2602 = vmatprep.subr.bf16.mxu0 %v6673_v54  ;;  %2645 = vmatprep.subr.bf16.mxu1 %v6679_v7  ;;  %v8496_v54 = vld [vmem:[#allocation24_spill] sm:$0xff]  ;;  %v8497_v7 = vld [vmem:[#allocation27_spill] sm:$0xff] }
 0xaba   :  { %2603 = vmatpush1.bf16.msra.mxu0 %v6685_v10  ;;  %2646 = vmatpush1.bf16.msra.mxu1 %v6691_v58  ;;  %v8498_v10 = vld [vmem:[#allocation28_spill] sm:$0xff]  ;;  %v8499_v58 = vld [vmem:[#allocation25_spill] sm:$0xff] }
 0xabb   :  { %2604 = vmatprep.subr.bf16.mxu0 %v6697_v53  ;;  %2647 = vmatprep.subr.bf16.mxu1 %v6703_v38  ;;  %v8500_v53 = vld [vmem:[#allocation26_spill] sm:$0xff]  ;;  %v8501_v38 = vld [vmem:[#allocation29_spill] sm:$0xff] }
 0xabe   :  { %2605 = vmatpush1.bf16.msra.mxu0 %v6709_v27  ;;  %2648 = vmatpush1.bf16.msra.mxu1 %v6715_v14  ;;  %v8502_v27 = vld [vmem:[#allocation30_spill] sm:$0xff]  ;;  %v8503_v14 = vld [vmem:[#allocation31_spill] sm:$0xff] }
 0xabf   :  { %2606 = vmatprep.subr.bf16.mxu0 %v8477_v41  ;;  %2649 = vmatprep.subr.bf16.mxu1 %v8478_v11  ;;  %v3952_v41 = vld [vmem:[%s7949_s0 + $0x160] sm:$0xff] }
 0xac2   :  { %2607 = vmatpush1.bf16.msra.mxu0 %v8479_v26  ;;  %2650 = vmatpush1.bf16.msra.mxu1 %v8480_v15 }
 0xac3   :  { %2735 = vmatprep.subr.bf16.mxu0 %v8481_v28  ;;  %2778 = vmatprep.subr.bf16.mxu1 %v8482_v2  ;;  %v3953_v2 = vld [vmem:[%s7949_s0 + $0x168] sm:$0xff] }
 0xac5   :  { %2625 = vmatmul.mubr.bf16.vlgmr.msra.gmra.mxu0 %v6988_v8  ;;  %2668 = vmatmul.mubr.bf16.vlgmr.msra.gmra.mxu1 %v6988_v8  ;;  %v8504_v8 = vld [vmem:[#allocation32_spill] sm:$0xff] }
 0xac6   :  { %2736 = vmatpush1.bf16.msra.mxu0 %v8483_v6  ;;  %2779 = vmatpush1.bf16.msra.mxu1 %v8484_v0 }
 0xac7   :  { %2737 = vmatprep.subr.bf16.mxu0 %v8485_v12  ;;  %2780 = vmatprep.subr.bf16.mxu1 %v8486_v46 }
 0xac8   :  { %2767 = vmatprep.mubr.bf16.mxu0 %v8201_v45  ;;  %2810 = vmatprep.mubr.bf16.mxu1 %v8201_v45 }
 0xaca   :  { %2738 = vmatpush1.bf16.msra.mxu0 %v8487_v24  ;;  %2781 = vmatpush1.bf16.msra.mxu1 %v8488_v30 }
 0xacb   :  { %2739 = vmatprep.subr.bf16.mxu0 %v8489_v3  ;;  %2782 = vmatprep.subr.bf16.mxu1 %v8490_v62  ;;  %v3950_v3 = vld [vmem:[%s7949_s0 + $0x150] sm:$0xff] }
 0xace   :  { %2740 = vmatpush1.bf16.msra.mxu0 %v8491_v23  ;;  %2783 = vmatpush1.bf16.msra.mxu1 %v8492_v63 }
 0xacf   :  { %2741 = vmatprep.subr.bf16.mxu0 %v8493_v59  ;;  %2784 = vmatprep.subr.bf16.mxu1 %v8494_v37  ;;  %v3954_v59 = vld [vmem:[%s7949_s0 + $0x170] sm:$0xff] }
 0xad2   :  { %2742 = vmatpush1.bf16.msra.mxu0 %v8495_v29  ;;  %2785 = vmatpush1.bf16.msra.mxu1 %v8496_v54  ;;  %v3951_v29 = vld [vmem:[%s7949_s0 + $0x158] sm:$0xff] }
 0xad3   :  { %2743 = vmatprep.subr.bf16.mxu0 %v8497_v7  ;;  %2786 = vmatprep.subr.bf16.mxu1 %v8498_v10 }
 0xad6   :  { %2744 = vmatpush1.bf16.msra.mxu0 %v8499_v58  ;;  %2787 = vmatpush1.bf16.msra.mxu1 %v8500_v53 }
 0xad7   :  { %2745 = vmatprep.subr.bf16.mxu0 %v8501_v38  ;;  %2788 = vmatprep.subr.bf16.mxu1 %v8502_v27  ;;  %v3955_v38 = vld [vmem:[%s7949_s0 + $0x178] sm:$0xff] }
 0xada   :  { %2746 = vmatpush1.bf16.msra.mxu0 %v8503_v14  ;;  %2789 = vmatpush1.bf16.msra.mxu1 %v8504_v8 }
 0xadb   :  { %2747 = vmatprep.subr.bf16.mxu0 %v8505_v56  ;;  %2790 = vmatprep.subr.bf16.mxu1 %v8506_v43 }
 0xade   :  { %2748 = vmatpush1.bf16.msra.mxu0 %v8507_v17  ;;  %2791 = vmatpush1.bf16.msra.mxu1 %v8508_v35 }
 0xadf   :  { %2749 = vmatprep.subr.bf16.mxu0 %v8509_v42  ;;  %2792 = vmatprep.subr.bf16.mxu1 %v8510_v31 }
 0xae2   :  { %2750 = vmatpush1.bf16.msra.mxu0 %v8511_v49  ;;  %2793 = vmatpush1.bf16.msra.mxu1 %v8512_v5 }
 0xae3   :  { %2878 = vmatprep.subr.bf16.mxu0 %v7178_v33  ;;  %2921 = vmatprep.subr.bf16.mxu1 %v7181_v57 }
 0xb65   :  { %v7184_v48 = vpop.f32.mrf.mxu0  ;;  %v7188_v36 = vpop.f32.mrf.mxu1 }
 0xb67   :  { %v7186_v13 = vpop.f32.mrf.mxu0  ;;  %v7192_v22 = vpop.f32.mrf.mxu1 }
 0xb69   :  { %v7190_v40 = vpop.f32.mrf.mxu0  ;;  %v7199_v20 = vpop.f32.mrf.mxu1 }
 0xb6b   :  { %v7194_v34 = vpop.f32.mrf.mxu0  ;;  %v7207_v11 = vpop.f32.mrf.mxu1 }
 0xb85   :  { %v2626_v16 = vpop.f32.mrf.mxu0  ;;  %v2669_v6 = vpop.f32.mrf.mxu1 }
 0xb86   :  { %v2678_v25 = vadd.f32 %v3948_v9, %v2626_v16  ;;  %v2680_v63 = vadd.f32 %v3950_v3, %v2669_v6 }
 0xb87   :  { %v2628_v1 = vpop.f32.mrf.mxu0  ;;  %v2671_v62 = vpop.f32.mrf.mxu1 }
 0xb88   :  { %v3956_v26 = vmul.f32 -1.442695, %v2678_v25  ;;  %v2679_v15 = vadd.f32 %v3949_v39, %v2628_v1  ;;  %v3958_v54 = vmul.f32 -1.442695, %v2680_v63  ;;  %v2681_v58 = vadd.f32 %v3951_v29, %v2671_v62  ;;  %v8516_v29 = vld [vmem:[#allocation44_spill] sm:$0xff] }
 0xb89   :  { %v2630_v28 = vpop.f32.mrf.mxu0  ;;  %v2673_v37 = vpop.f32.mrf.mxu1 }
 0xb8a   :  { %4530 = vpow2.f32 %v3956_v26  ;;  %v3957_v0 = vmul.f32 -1.442695, %v2679_v15  ;;  %v2682_v12 = vadd.f32 %v3952_v41, %v2630_v28  ;;  %v2684_v7 = vadd.f32 %v3954_v59, %v2673_v37  ;;  %v8514_v59 = vld [vmem:[#allocation42_spill] sm:$0xff]  ;;  %v8515_v37 = vld [vmem:[#allocation43_spill] sm:$0xff] }
 0xb8b   :  { %v2632_v46 = vpop.f32.mrf.mxu0  ;;  %v2675_v27 = vpop.f32.mrf.mxu1 }
 0xb8c   :  { %4532 = vpow2.f32 %v3957_v0  ;;  %v3959_v24 = vmul.f32 -1.442695, %v2682_v12  ;;  %v2683_v30 = vadd.f32 %v3953_v2, %v2632_v46  ;;  %v3961_v8 = vmul.f32 -1.442695, %v2684_v7  ;;  %v8522_v7 = vld [vmem:[#allocation50_spill] sm:$0xff] }
 0xb8d   :  { %v2685_v17 = vadd.f32 %v3955_v38, %v2675_v27  ;;  %v8527_v38 = vld [vmem:[#allocation55_spill] sm:$0xff]  ;;  %v8528_v27 = vld [vmem:[#allocation56_spill] sm:$0xff] }
 0xb8e   :  { %4534 = vpow2.f32 %v3959_v24  ;;  %v3960_v23 = vmul.f32 -1.442695, %v2683_v30 }
 0xb90   :  { %4536 = vpow2.f32 %v3960_v23 }
 0xb91   :  { %4538 = vpow2.f32 %v3958_v54  ;;  %v8521_v54 = vld [vmem:[#allocation49_spill] sm:$0xff] }
 0xb97   :  { %v4531_v10 = vpop.eup %4530 }
 0xb98   :  { %v2704_v53 = vadd.f32 1.0, %v4531_v10  ;;  %v8524_v10 = vld [vmem:[#allocation52_spill] sm:$0xff] }
 0xb99   :  { %v4533_v14 = vpop.eup %4532 }
 0xb9a   :  { %4540 = vrcp.f32 %v2704_v53  ;;  %v2705_v56 = vadd.f32 1.0, %v4533_v14  ;;  %v8526_v53 = vld [vmem:[#allocation54_spill] sm:$0xff]  ;;  %v8529_v14 = vld [vmem:[#allocation57_spill] sm:$0xff] }
 0xb9b   :  { %v4535_v43 = vpop.eup %4534  ;;  %4542 = vtanh.f32 %v2681_v58  ;;  %v8525_v58 = vld [vmem:[#allocation53_spill] sm:$0xff] }
 0xb9c   :  { %4544 = vrcp.f32 %v2705_v56  ;;  %v2707_v35 = vadd.f32 1.0, %v4535_v43  ;;  %v8531_v56 = vld [vmem:[#allocation59_spill] sm:$0xff]  ;;  %v8532_v43 = vld [vmem:[#allocation60_spill] sm:$0xff] }
 0xb9d   :  { %v4537_v42 = vpop.eup %4536  ;;  %4546 = vpow2.f32 %v3961_v8  ;;  %v8530_v8 = vld [vmem:[#allocation58_spill] sm:$0xff] }
 0xb9e   :  { %4548 = vrcp.f32 %v2707_v35  ;;  %v2708_v31 = vadd.f32 1.0, %v4537_v42  ;;  %v4539_v49 = vpop.eup %4538  ;;  %v8534_v35 = vld [vmem:[#allocation62_spill] sm:$0xff]  ;;  %v8535_v42 = vld [vmem:[#allocation63_spill] sm:$0xff] }
 0xb9f   :  { %4550 = vtanh.f32 %v2685_v17  ;;  %v2706_v26 = vadd.f32 1.0, %v4539_v49  ;;  %v8533_v17 = vld [vmem:[#allocation61_spill] sm:$0xff] }
 0xba0   :  { %4552 = vrcp.f32 %v2708_v31  ;;  %v8536_v31 = vld [vmem:[#allocation64_spill] sm:$0xff]  ;;  %v8537_v49 = vld [vmem:[#allocation65_spill] sm:$0xff] }
 0xba1   :  { %4554 = vrcp.f32 %v2706_v26  ;;  %v2579_v26 = vadd.f32 %v7190_v40, %v8291_v18 }
 0xba7   :  { %v4541_v5 = vpop.eup %4540 }
 0xba8   :  { %v4543_v9 = vpop.eup %4542 }
 0xba9   :  { %v4545_v16 = vpop.eup %4544  ;;  %v2726_v1 = vmul.f32 %v4543_v9, %v4541_v5  ;;  %v7271_v5 = vld [vmem:[%s7950_s1 + $0xe4] ss:$16 sps:$4 sm:$0xff]   ;;  %v7277_v9 = vld [vmem:[%s7950_s1 + $0xec] ss:$16 sps:$4 sm:$0xff]  }
 0xbaa   :  { %v4547_v39 = vpop.eup %4546  ;;  %v2724_v25 = vmul.f32 %v4545_v16, %v6981_v4  ;;  %v2575_v16 = vadd.f32 %v7184_v48, %v8291_v18 }
 0xbab   :  { %v4549_v41 = vpop.eup %4548  ;;  %v2709_v6 = vadd.f32 1.0, %v4547_v39 }
 0xbac   :  { %v4551_v15 = vpop.eup %4550  ;;  %v7225_v28 = vadd.f32 %v2726_v1, %v2724_v25  ;;  %v2576_v25 = vadd.f32 %v7186_v13, %v8292_v21 }
 0xbad   :  { %v4553_v2 = vpop.eup %4552  ;;  %v2727_v12 = vmul.f32 %v4551_v15, %v4549_v41 }
 0xbae   :  { %v2725_v0 = vmul.f32 %v4553_v2, %v6985_v51  ;;  %4556 = vtanh.f32 %v7225_v28  ;;  %v4555_v4 = vpop.eup %4554  ;;  %v8513_v51 = vld [vmem:[#allocation41_spill] sm:$0xff] }
 0xbaf   :  { %4558 = vrcp.f32 %v2709_v6 }
 0xbb0   :  { %v7229_v46 = vadd.f32 %v2727_v12, %v2725_v0  ;;  %v2580_v12 = vadd.f32 %v7194_v34, %v8292_v21  ;;  %v2578_v34 = vadd.f32 %v7192_v22, %v5615_v60 }
 0xbb2   :  { %4560 = vtanh.f32 %v7229_v46 }
 0xbbb   :  { %v4557_v24 = vpop.eup %4556 }
 0xbbc   :  { %v4559_v30 = vpop.eup %4558  ;;  %v2732_v62 = vmul.f32 %v4557_v24, %v4555_v4 }
 0xbbf   :  { %v4561_v3 = vpop.eup %4560 }
 0xbc0   :  { %v2733_v23 = vmul.f32 %v4561_v3, %v4559_v30 }
 0xbc2   :  { %v7232_v63 = vpack.c.bf16 %v2733_v23, %v2732_v62  ;;  %v2577_v62 = vadd.f32 %v7188_v36, %v8293_v61 }
 0xbc4   :  { %2768 = vmatmul.mubr.bf16.vlgmr.msra.gmra.mxu0 %v7232_v63  ;;  %2811 = vmatmul.mubr.bf16.vlgmr.msra.gmra.mxu1 %v7232_v63 }
 0xbc5   :  { %2879 = vmatpush1.bf16.msra.mxu0 %v6992_v52  ;;  %2922 = vmatpush1.bf16.msra.mxu1 %v6995_v50  ;;  %v8517_v52 = vld [vmem:[#allocation45_spill] sm:$0xff]  ;;  %v8518_v50 = vld [vmem:[#allocation46_spill] sm:$0xff] }
 0xbc6   :  { %2880 = vmatprep.subr.bf16.mxu0 %v6998_v55  ;;  %2923 = vmatprep.subr.bf16.mxu1 %v7001_v32  ;;  %v8519_v55 = vld [vmem:[#allocation47_spill] sm:$0xff]  ;;  %v8520_v32 = vld [vmem:[#allocation48_spill] sm:$0xff] }
 0xbc7   :  { %2910 = vmatprep.mubr.bf16.mxu0 %v8201_v45  ;;  %2953 = vmatprep.mubr.bf16.mxu1 %v8201_v45 }
 0xbc9   :  { %2881 = vmatpush1.bf16.msra.mxu0 %v7006_v47  ;;  %2924 = vmatpush1.bf16.msra.mxu1 %v8513_v51  ;;  %v8523_v47 = vld [vmem:[#allocation51_spill] sm:$0xff] }
 0xbca   :  { %2882 = vmatprep.subr.bf16.mxu0 %v8514_v59  ;;  %2925 = vmatprep.subr.bf16.mxu1 %v8515_v37  ;;  %v2581_v59 = vadd.f32 %v7199_v20, %v8293_v61 }
 0xbcd   :  { %2883 = vmatpush1.bf16.msra.mxu0 %v8516_v29  ;;  %2926 = vmatpush1.bf16.msra.mxu1 %v8517_v52 }
 0xbce   :  { %2884 = vmatprep.subr.bf16.mxu0 %v8518_v50  ;;  %2927 = vmatprep.subr.bf16.mxu1 %v8519_v55 }
 0xbd1   :  { %2885 = vmatpush1.bf16.msra.mxu0 %v8520_v32  ;;  %2928 = vmatpush1.bf16.msra.mxu1 %v8521_v54  ;;  %v2582_v32 = vadd.f32 %v7207_v11, %v5615_v60 }
 0xbd2   :  { %2886 = vmatprep.subr.bf16.mxu0 %v8522_v7  ;;  %2929 = vmatprep.subr.bf16.mxu1 %v8523_v47 }
 0xbd5   :  { %2887 = vmatpush1.bf16.msra.mxu0 %v8524_v10  ;;  %2930 = vmatpush1.bf16.msra.mxu1 %v8525_v58 }
 0xbd6   :  { %2888 = vmatprep.subr.bf16.mxu0 %v8526_v53  ;;  %2931 = vmatprep.subr.bf16.mxu1 %v8527_v38 }
 0xbd9   :  { %2889 = vmatpush1.bf16.msra.mxu0 %v8528_v27  ;;  %2932 = vmatpush1.bf16.msra.mxu1 %v8529_v14 }
 0xbda   :  { %2890 = vmatprep.subr.bf16.mxu0 %v8530_v8  ;;  %2933 = vmatprep.subr.bf16.mxu1 %v8531_v56 }
 0xbdd   :  { %2891 = vmatpush1.bf16.msra.mxu0 %v8532_v43  ;;  %2934 = vmatpush1.bf16.msra.mxu1 %v8533_v17 }
 0xbde   :  { %2892 = vmatprep.subr.bf16.mxu0 %v8534_v35  ;;  %2935 = vmatprep.subr.bf16.mxu1 %v8535_v42 }
 0xbe1   :  { %2893 = vmatpush1.bf16.msra.mxu0 %v8536_v31  ;;  %2936 = vmatpush1.bf16.msra.mxu1 %v8537_v49 }
 0xbe2   :  { %2981 = vmatprep.subr.bf16.mxu0 %v7271_v5  ;;  %3024 = vmatprep.subr.bf16.mxu1 %v7277_v9 }
 0xc84   :  { %v2769_v39 = vpop.f32.mrf.mxu0  ;;  %v2812_v2 = vpop.f32.mrf.mxu1 }
 0xc85   :  { %v2821_v1 = vadd.f32 %v2769_v39, %v2575_v16  ;;  %v2823_v23 = vadd.f32 %v2812_v2, %v2577_v62  ;;  %v7357_v62 = vld [vmem:[%s7950_s1 + $0xa0] ss:$16 sps:$4 sm:$0xff]  }
 0xc86   :  { %v2771_v41 = vpop.f32.mrf.mxu0  ;;  %v2814_v30 = vpop.f32.mrf.mxu1 }
 0xc87   :  { %v3962_v15 = vmul.f32 -1.442695, %v2821_v1  ;;  %v2822_v6 = vadd.f32 %v2771_v41, %v2576_v25  ;;  %v3964_v29 = vmul.f32 -1.442695, %v2823_v23  ;;  %v2824_v52 = vadd.f32 %v2814_v30, %v2578_v34  ;;  %v7339_v30 = vld [vmem:[%s7950_s1 + $0xc8] ss:$16 sps:$4 sm:$0xff]  }
 0xc88   :  { %v2773_v0 = vpop.f32.mrf.mxu0  ;;  %v2816_v51 = vpop.f32.mrf.mxu1  ;;  %v7369_v23 = vld [vmem:[%s7950_s1 + $0x84] ss:$16 sps:$4 sm:$0xff]   ;;  %v7387_v34 = vld [vmem:[%s7950_s1 + $0x88] ss:$16 sps:$4 sm:$0xff]  }
 0xc89   :  { %4562 = vpow2.f32 %v3962_v15  ;;  %v3963_v4 = vmul.f32 -1.442695, %v2822_v6  ;;  %v2825_v24 = vadd.f32 %v2773_v0, %v2579_v26  ;;  %v2827_v37 = vadd.f32 %v2816_v51, %v2581_v59  ;;  %v7375_v51 = vld [vmem:[%s7950_s1 + $0x8c] ss:$16 sps:$4 sm:$0xff]   ;;  %v7381_v59 = vld [vmem:[%s7950_s1 + $0x80] ss:$16 sps:$4 sm:$0xff]  }
 0xc8a   :  { %v2775_v48 = vpop.f32.mrf.mxu0  ;;  %v2818_v50 = vpop.f32.mrf.mxu1 }
 0xc8b   :  { %4564 = vpow2.f32 %v3963_v4  ;;  %v3965_v3 = vmul.f32 -1.442695, %v2825_v24  ;;  %v2826_v13 = vadd.f32 %v2775_v48, %v2580_v12  ;;  %v3967_v36 = vmul.f32 -1.442695, %v2827_v37  ;;  %v7313_v12 = vld [vmem:[%s7950_s1 + $0xe8] ss:$16 sps:$4 sm:$0xff]  }
 0xc8c   :  { %v2828_v47 = vadd.f32 %v2818_v50, %v2582_v32  ;;  %v7319_v4 = vld [vmem:[%s7950_s1 + $0xc4] ss:$16 sps:$4 sm:$0xff]   ;;  %v7325_v24 = vld [vmem:[%s7950_s1 + $0xcc] ss:$16 sps:$4 sm:$0xff]   ;;  %v7333_v48 = vld [vmem:[%s7950_s1 + $0xc0] ss:$16 sps:$4 sm:$0xff]  }
 0xc8d   :  { %4566 = vpow2.f32 %v3965_v3  ;;  %v3966_v40 = vmul.f32 -1.442695, %v2826_v13  ;;  %v7345_v3 = vld [vmem:[%s7950_s1 + $0xa4] ss:$16 sps:$4 sm:$0xff]   ;;  %v7351_v13 = vld [vmem:[%s7950_s1 + $0xac] ss:$16 sps:$4 sm:$0xff]  }
 0xc8e   :  { %v7393_v37 = vld [vmem:[%s7950_s1 + $0x64] ss:$16 sps:$4 sm:$0xff]   ;;  %v7411_v50 = vld [vmem:[%s7950_s1 + $0x68] ss:$16 sps:$4 sm:$0xff]   ;;  %v7423_v32 = vld [vmem:[%s7950_s1 + $0x4c] ss:$16 sps:$4 sm:$0xff]  }
 0xc8f   :  { %4568 = vpow2.f32 %v3966_v40  ;;  %v7363_v40 = vld [vmem:[%s7950_s1 + $0xa8] ss:$16 sps:$4 sm:$0xff]  }
 0xc90   :  { %4570 = vpow2.f32 %v3964_v29  ;;  %v7399_v29 = vld [vmem:[%s7950_s1 + $0x6c] ss:$16 sps:$4 sm:$0xff]  }
 0xc91   :  { %4572 = vtanh.f32 %v2824_v52  ;;  %v7405_v52 = vld [vmem:[%s7950_s1 + $0x60] ss:$16 sps:$4 sm:$0xff]  }
 0xc96   :  { %v4563_v55 = vpop.eup %4562 }
 0xc97   :  { %v2847_v54 = vadd.f32 1.0, %v4563_v55  ;;  %v7417_v55 = vld [vmem:[%s7950_s1 + $0x44] ss:$16 sps:$4 sm:$0xff]  }
 0xc98   :  { %v4565_v7 = vpop.eup %4564 }
 0xc99   :  { %4574 = vrcp.f32 %v2847_v54  ;;  %v2848_v10 = vadd.f32 1.0, %v4565_v7  ;;  %v7435_v54 = vld [vmem:[%s7950_s1 + $0x48] ss:$16 sps:$4 sm:$0xff]   ;;  %v7441_v7 = vld [vmem:[%s7950_s1 + $0x24] ss:$16 sps:$4 sm:$0xff]  }
 0xc9a   :  { %v4567_v20 = vpop.eup %4566  ;;  %4576 = vpow2.f32 %v3967_v36  ;;  %v7429_v36 = vld [vmem:[%s7950_s1 + $0x40] ss:$16 sps:$4 sm:$0xff]  }
 0xc9b   :  { %4578 = vrcp.f32 %v2848_v10  ;;  %v2850_v22 = vadd.f32 1.0, %v4567_v20  ;;  %v7453_v10 = vld [vmem:[%s7950_s1 + $0x20] ss:$16 sps:$4 sm:$0xff]   ;;  %v7459_v20 = vld [vmem:[%s7950_s1 + $0x28] ss:$16 sps:$4 sm:$0xff]  }
 0xc9c   :  { %v4569_v58 = vpop.eup %4568  ;;  %4580 = vtanh.f32 %v2828_v47  ;;  %v7447_v47 = vld [vmem:[%s7950_s1 + $0x2c] ss:$16 sps:$4 sm:$0xff]  }
 0xc9d   :  { %4582 = vrcp.f32 %v2850_v22  ;;  %v2851_v53 = vadd.f32 1.0, %v4569_v58  ;;  %v4571_v38 = vpop.eup %4570  ;;  %v7465_v22 = vld [vmem:[%s7950_s1 + $0x4] ss:$16 sps:$4 sm:$0xff]   ;;  %v7471_v58 = vld [vmem:[%s7950_s1 + $0xc] ss:$16 sps:$4 sm:$0xff]  }
 0xc9e   :  { %v4573_v27 = vpop.eup %4572  ;;  %v2849_v42 = vadd.f32 1.0, %v4571_v38  ;;  %8538 = vst [vmem:[#allocation5_spill] sm:$0xff] %v7465_v22  ;;  %8539 = vst [vmem:[#allocation6_spill] sm:$0xff] %v7471_v58  ;;  %v7483_v38 = vld [vmem:[%s7950_s1 + $0x8] ss:$16 sps:$4 sm:$0xff]  }
 0xc9f   :  { %4584 = vrcp.f32 %v2851_v53  ;;  %v7477_v53 = vld [vmem:[%s7950_s1] ss:$16 sps:$4 sm:$0xff]   ;;  %8541 = vst [vmem:[#allocation8_spill] sm:$0xff] %v7483_v38 }
 0xca0   :  { %4586 = vrcp.f32 %v2849_v42  ;;  %8540 = vst [vmem:[#allocation7_spill] sm:$0xff] %v7477_v53  ;;  %v7547_v42 = vld [vmem:[%s7951_s2 + $0xac] ss:$16 sps:$4 sm:$0xff]  }
 0xca1   :  { %8551 = vst [vmem:[#allocation18_spill] sm:$0xff] %v7547_v42 }
 0xca6   :  { %v4575_v11 = vpop.eup %4574 }
 0xca7   :  { %v4577_v14 = vpop.eup %4576  ;;  %v2869_v8 = vmul.f32 %v4575_v11, %v4573_v27  ;;  %v7489_v27 = vld [vmem:[%s7951_s2 + $0xe4] ss:$16 sps:$4 sm:$0xff]   ;;  %v7495_v11 = vld [vmem:[%s7951_s2 + $0xec] ss:$16 sps:$4 sm:$0xff]  }
 0xca8   :  { %v4579_v56 = vpop.eup %4578  ;;  %v2852_v39 = vadd.f32 1.0, %v4577_v14  ;;  %8542 = vst [vmem:[#allocation9_spill] sm:$0xff] %v7489_v27  ;;  %8543 = vst [vmem:[#allocation10_spill] sm:$0xff] %v7495_v11  ;;  %v7503_v14 = vld [vmem:[%s7951_s2 + $0xe0] ss:$16 sps:$4 sm:$0xff]  }
 0xca9   :  { %v4581_v43 = vpop.eup %4580  ;;  %v2867_v17 = vmul.f32 %v4579_v56, %v7103_v44  ;;  %8544 = vst [vmem:[#allocation11_spill] sm:$0xff] %v7503_v14  ;;  %v7515_v56 = vld [vmem:[%s7951_s2 + $0xc4] ss:$16 sps:$4 sm:$0xff]  }
 0xcaa   :  { %v4583_v35 = vpop.eup %4582  ;;  %8546 = vst [vmem:[#allocation13_spill] sm:$0xff] %v7515_v56 }
 0xcab   :  { %v7297_v31 = vadd.f32 %v2869_v8, %v2867_v17  ;;  %v2870_v49 = vmul.f32 %v4583_v35, %v4581_v43  ;;  %v7509_v8 = vld [vmem:[%s7951_s2 + $0xe8] ss:$16 sps:$4 sm:$0xff]   ;;  %v7529_v43 = vld [vmem:[%s7951_s2 + $0xc0] ss:$16 sps:$4 sm:$0xff]   ;;  %v7541_v35 = vld [vmem:[%s7951_s2 + $0xa4] ss:$16 sps:$4 sm:$0xff]  }
 0xcac   :  { %v4585_v16 = vpop.eup %4584  ;;  %8545 = vst [vmem:[#allocation12_spill] sm:$0xff] %v7509_v8  ;;  %8548 = vst [vmem:[#allocation15_spill] sm:$0xff] %v7529_v43  ;;  %v7535_v17 = vld [vmem:[%s7951_s2 + $0xc8] ss:$16 sps:$4 sm:$0xff]  }
 0xcad   :  { %v2868_v25 = vmul.f32 %v4585_v16, %v7107_v19  ;;  %4588 = vtanh.f32 %v7297_v31  ;;  %v4587_v41 = vpop.eup %4586  ;;  %v7307_v19 = vld [vmem:[%s7950_s1 + $0xe0] ss:$16 sps:$4 sm:$0xff]   ;;  %8549 = vst [vmem:[#allocation16_spill] sm:$0xff] %v7535_v17  ;;  %8550 = vst [vmem:[#allocation17_spill] sm:$0xff] %v7541_v35  ;;  %v7559_v16 = vld [vmem:[%s7951_s2 + $0xa8] ss:$16 sps:$4 sm:$0xff]  }
 0xcae   :  { %4590 = vrcp.f32 %v2852_v39  ;;  %8553 = vst [vmem:[#allocation20_spill] sm:$0xff] %v7559_v16  ;;  %v7565_v39 = vld [vmem:[%s7951_s2 + $0x84] ss:$16 sps:$4 sm:$0xff]  }
 0xcaf   :  { %v7301_v1 = vadd.f32 %v2870_v49, %v2868_v25  ;;  %v7553_v49 = vld [vmem:[%s7951_s2 + $0xa0] ss:$16 sps:$4 sm:$0xff]   ;;  %8554 = vst [vmem:[#allocation21_spill] sm:$0xff] %v7565_v39  ;;  %v7571_v25 = vld [vmem:[%s7951_s2 + $0x8c] ss:$16 sps:$4 sm:$0xff]  }
 0xcb0   :  { %8552 = vst [vmem:[#allocation19_spill] sm:$0xff] %v7553_v49  ;;  %8555 = vst [vmem:[#allocation22_spill] sm:$0xff] %v7571_v25 }
 0xcb1   :  { %4592 = vtanh.f32 %v7301_v1 }
 0xcba   :  { %v4589_v26 = vpop.eup %4588 }
 0xcbb   :  { %v4591_v44 = vpop.eup %4590  ;;  %v2875_v2 = vmul.f32 %v4589_v26, %v4587_v41  ;;  %v7577_v41 = vld [vmem:[%s7951_s2 + $0x80] ss:$16 sps:$4 sm:$0xff]   ;;  %v7583_v26 = vld [vmem:[%s7951_s2 + $0x88] ss:$16 sps:$4 sm:$0xff]  }
 0xcbc   :  { %8556 = vst [vmem:[#allocation23_spill] sm:$0xff] %v7577_v41  ;;  %8557 = vst [vmem:[#allocation24_spill] sm:$0xff] %v7583_v26 }
 0xcbe   :  { %v4593_v15 = vpop.eup %4592 }
 0xcbf   :  { %v2876_v6 = vmul.f32 %v4593_v15, %v4591_v44  ;;  %v7589_v44 = vld [vmem:[%s7951_s2 + $0x64] ss:$16 sps:$4 sm:$0xff]   ;;  %v7595_v15 = vld [vmem:[%s7951_s2 + $0x6c] ss:$16 sps:$4 sm:$0xff]  }
 0xcc0   :  { %8558 = vst [vmem:[#allocation27_spill] sm:$0xff] %v7589_v44  ;;  %8559 = vst [vmem:[#allocation28_spill] sm:$0xff] %v7595_v15 }
 0xcc1   :  { %v2877_v0 = vpack.c.bf16 %v2876_v6, %v2875_v2  ;;  %v7601_v2 = vld [vmem:[%s7951_s2 + $0x60] ss:$16 sps:$4 sm:$0xff]   ;;  %v7607_v6 = vld [vmem:[%s7951_s2 + $0x68] ss:$16 sps:$4 sm:$0xff]  }
 0xcc2   :  { %8560 = vst [vmem:[#allocation25_spill] sm:$0xff] %v7601_v2  ;;  %8561 = vst [vmem:[#allocation26_spill] sm:$0xff] %v7607_v6 }
 0xcc3   :  { %2911 = vmatmul.mubr.bf16.vlgmr.msra.gmra.mxu0 %v2877_v0  ;;  %2954 = vmatmul.mubr.bf16.vlgmr.msra.gmra.mxu1 %v2877_v0  ;;  %v7613_v0 = vld [vmem:[%s7951_s2 + $0x44] ss:$16 sps:$4 sm:$0xff]  }
 0xcc4   :  { %2982 = vmatpush1.bf16.msra.mxu0 %v7307_v19  ;;  %3025 = vmatpush1.bf16.msra.mxu1 %v7313_v12  ;;  %8562 = vst [vmem:[#allocation29_spill] sm:$0xff] %v7613_v0 }
 0xcc5   :  { %2983 = vmatprep.subr.bf16.mxu0 %v7319_v4  ;;  %3026 = vmatprep.subr.bf16.mxu1 %v7325_v24 }
 0xcc6   :  { %3013 = vmatprep.mubr.bf16.mxu0 %v8201_v45  ;;  %3056 = vmatprep.mubr.bf16.mxu1 %v8201_v45 }
 0xcc8   :  { %2984 = vmatpush1.bf16.msra.mxu0 %v7333_v48  ;;  %3027 = vmatpush1.bf16.msra.mxu1 %v7339_v30 }
 0xcc9   :  { %2985 = vmatprep.subr.bf16.mxu0 %v7345_v3  ;;  %3028 = vmatprep.subr.bf16.mxu1 %v7351_v13 }
 0xccc   :  { %2986 = vmatpush1.bf16.msra.mxu0 %v7357_v62  ;;  %3029 = vmatpush1.bf16.msra.mxu1 %v7363_v40 }
 0xccd   :  { %2987 = vmatprep.subr.bf16.mxu0 %v7369_v23  ;;  %3030 = vmatprep.subr.bf16.mxu1 %v7375_v51 }
 0xcd0   :  { %2988 = vmatpush1.bf16.msra.mxu0 %v7381_v59  ;;  %3031 = vmatpush1.bf16.msra.mxu1 %v7387_v34 }
 0xcd1   :  { %2989 = vmatprep.subr.bf16.mxu0 %v7393_v37  ;;  %3032 = vmatprep.subr.bf16.mxu1 %v7399_v29 }
 0xcd4   :  { %2990 = vmatpush1.bf16.msra.mxu0 %v7405_v52  ;;  %3033 = vmatpush1.bf16.msra.mxu1 %v7411_v50 }
 0xcd5   :  { %2991 = vmatprep.subr.bf16.mxu0 %v7417_v55  ;;  %3034 = vmatprep.subr.bf16.mxu1 %v7423_v32 }
 0xcd8   :  { %2992 = vmatpush1.bf16.msra.mxu0 %v7429_v36  ;;  %3035 = vmatpush1.bf16.msra.mxu1 %v7435_v54 }
 0xcd9   :  { %2993 = vmatprep.subr.bf16.mxu0 %v7441_v7  ;;  %3036 = vmatprep.subr.bf16.mxu1 %v7447_v47 }
 0xcdc   :  { %2994 = vmatpush1.bf16.msra.mxu0 %v7453_v10  ;;  %3037 = vmatpush1.bf16.msra.mxu1 %v7459_v20 }
 0xcdd   :  { %2995 = vmatprep.subr.bf16.mxu0 %v7465_v22  ;;  %3038 = vmatprep.subr.bf16.mxu1 %v7471_v58 }
 0xce0   :  { %2996 = vmatpush1.bf16.msra.mxu0 %v7477_v53  ;;  %3039 = vmatpush1.bf16.msra.mxu1 %v7483_v38 }
 0xce1   :  { %3124 = vmatprep.subr.bf16.mxu0 %v7489_v27  ;;  %3167 = vmatprep.subr.bf16.mxu1 %v7495_v11  ;;  %v3970_v27 = vld [vmem:[%s7949_s0 + $0x190] sm:$0xff] }
 0xce3   :  { %3014 = vmatmul.mubr.bf16.vlgmr.msra.gmra.mxu0 %v7232_v63  ;;  %3057 = vmatmul.mubr.bf16.vlgmr.msra.gmra.mxu1 %v7232_v63  ;;  %v7521_v63 = vld [vmem:[%s7951_s2 + $0xcc] ss:$16 sps:$4 sm:$0xff]  }
 0xce4   :  { %3125 = vmatpush1.bf16.msra.mxu0 %v7503_v14  ;;  %3168 = vmatpush1.bf16.msra.mxu1 %v7509_v8  ;;  %8547 = vst [vmem:[#allocation14_spill] sm:$0xff] %v7521_v63 }
 0xce5   :  { %3126 = vmatprep.subr.bf16.mxu0 %v7515_v56  ;;  %3169 = vmatprep.subr.bf16.mxu1 %v7521_v63  ;;  %v3973_v63 = vld [vmem:[%s7949_s0 + $0x1a8] sm:$0xff] }
 0xce6   :  { %3156 = vmatprep.mubr.bf16.mxu0 %v8201_v45  ;;  %3199 = vmatprep.mubr.bf16.mxu1 %v8201_v45 }
 0xce8   :  { %3127 = vmatpush1.bf16.msra.mxu0 %v7529_v43  ;;  %3170 = vmatpush1.bf16.msra.mxu1 %v7535_v17 }
 0xce9   :  { %3128 = vmatprep.subr.bf16.mxu0 %v7541_v35  ;;  %3171 = vmatprep.subr.bf16.mxu1 %v7547_v42 }
 0xcec   :  { %3129 = vmatpush1.bf16.msra.mxu0 %v7553_v49  ;;  %3172 = vmatpush1.bf16.msra.mxu1 %v7559_v16  ;;  %v3972_v49 = vld [vmem:[%s7949_s0 + $0x1a0] sm:$0xff] }
 0xced   :  { %3130 = vmatprep.subr.bf16.mxu0 %v7565_v39  ;;  %3173 = vmatprep.subr.bf16.mxu1 %v7571_v25 }
 0xcf0   :  { %3131 = vmatpush1.bf16.msra.mxu0 %v7577_v41  ;;  %3174 = vmatpush1.bf16.msra.mxu1 %v7583_v26 }
 0xcf1   :  { %3132 = vmatprep.subr.bf16.mxu0 %v7589_v44  ;;  %3175 = vmatprep.subr.bf16.mxu1 %v7595_v15  ;;  %v7619_v15 = vld [vmem:[%s7951_s2 + $0x4c] ss:$16 sps:$4 sm:$0xff]  }
 0xcf2   :  { %8563 = vst [vmem:[#allocation30_spill] sm:$0xff] %v7619_v15 }
 0xcf4   :  { %3133 = vmatpush1.bf16.msra.mxu0 %v7601_v2  ;;  %3176 = vmatpush1.bf16.msra.mxu1 %v7607_v6  ;;  %v7625_v2 = vld [vmem:[%s7951_s2 + $0x40] ss:$16 sps:$4 sm:$0xff]   ;;  %v7631_v6 = vld [vmem:[%s7951_s2 + $0x48] ss:$16 sps:$4 sm:$0xff]  }
 0xcf5   :  { %3134 = vmatprep.subr.bf16.mxu0 %v7613_v0  ;;  %3177 = vmatprep.subr.bf16.mxu1 %v7619_v15  ;;  %8564 = vst [vmem:[#allocation31_spill] sm:$0xff] %v7625_v2  ;;  %8565 = vst [vmem:[#allocation32_spill] sm:$0xff] %v7631_v6  ;;  %v7637_v0 = vld [vmem:[%s7951_s2 + $0x24] ss:$16 sps:$4 sm:$0xff]   ;;  %v7643_v15 = vld [vmem:[%s7951_s2 + $0x2c] ss:$16 sps:$4 sm:$0xff]  }
 0xcf6   :  { %8566 = vst [vmem:[#allocation33_spill] sm:$0xff] %v7637_v0  ;;  %8567 = vst [vmem:[#allocation34_spill] sm:$0xff] %v7643_v15 }
 0xcf8   :  { %3135 = vmatpush1.bf16.msra.mxu0 %v7625_v2  ;;  %3178 = vmatpush1.bf16.msra.mxu1 %v7631_v6  ;;  %v7649_v2 = vld [vmem:[%s7951_s2 + $0x20] ss:$16 sps:$4 sm:$0xff]   ;;  %v7655_v6 = vld [vmem:[%s7951_s2 + $0x28] ss:$16 sps:$4 sm:$0xff]  }
 0xcf9   :  { %3136 = vmatprep.subr.bf16.mxu0 %v7637_v0  ;;  %3179 = vmatprep.subr.bf16.mxu1 %v7643_v15  ;;  %8568 = vst [vmem:[#allocation35_spill] sm:$0xff] %v7649_v2  ;;  %8569 = vst [vmem:[#allocation36_spill] sm:$0xff] %v7655_v6  ;;  %v7661_v0 = vld [vmem:[%s7951_s2 + $0x4] ss:$16 sps:$4 sm:$0xff]   ;;  %v7667_v15 = vld [vmem:[%s7951_s2 + $0xc] ss:$16 sps:$4 sm:$0xff]  }
 0xcfa   :  { %8570 = vst [vmem:[#allocation37_spill] sm:$0xff] %v7661_v0  ;;  %8571 = vst [vmem:[#allocation38_spill] sm:$0xff] %v7667_v15 }
 0xcfc   :  { %3137 = vmatpush1.bf16.msra.mxu0 %v7649_v2  ;;  %3180 = vmatpush1.bf16.msra.mxu1 %v7655_v6  ;;  %v7673_v2 = vld [vmem:[%s7951_s2] ss:$16 sps:$4 sm:$0xff]   ;;  %v7679_v6 = vld [vmem:[%s7951_s2 + $0x8] ss:$16 sps:$4 sm:$0xff]  }
 0xcfd   :  { %3138 = vmatprep.subr.bf16.mxu0 %v7661_v0  ;;  %3181 = vmatprep.subr.bf16.mxu1 %v7667_v15  ;;  %8572 = vst [vmem:[#allocation39_spill] sm:$0xff] %v7673_v2  ;;  %8573 = vst [vmem:[#allocation40_spill] sm:$0xff] %v7679_v6 }
 0xd00   :  { %3139 = vmatpush1.bf16.msra.mxu0 %v7673_v2  ;;  %3182 = vmatpush1.bf16.msra.mxu1 %v7679_v6  ;;  %v3968_v6 = vld [vmem:[%s7949_s0 + $0x180] sm:$0xff] }
 0xd01   :  { %3267 = vmatprep.subr.bf16.mxu0 %v7178_v33  ;;  %3310 = vmatprep.subr.bf16.mxu1 %v7181_v57  ;;  %v3969_v57 = vld [vmem:[%s7949_s0 + $0x188] sm:$0xff] }
 0xd83   :  { %v7684_v0 = vpop.f32.mrf.mxu0  ;;  %v7688_v44 = vpop.f32.mrf.mxu1 }
 0xd85   :  { %v7686_v15 = vpop.f32.mrf.mxu0  ;;  %v7692_v2 = vpop.f32.mrf.mxu1 }
 0xd87   :  { %v7690_v26 = vpop.f32.mrf.mxu0  ;;  %v7699_v25 = vpop.f32.mrf.mxu1 }
 0xd89   :  { %v7694_v41 = vpop.f32.mrf.mxu0  ;;  %v7707_v42 = vpop.f32.mrf.mxu1 }
 0xda3   :  { %v3015_v33 = vpop.f32.mrf.mxu0  ;;  %v3058_v56 = vpop.f32.mrf.mxu1 }
 0xda4   :  { %v3067_v39 = vadd.f32 %v3968_v6, %v3015_v33 }
 0xda5   :  { %v3017_v16 = vpop.f32.mrf.mxu0  ;;  %v3060_v38 = vpop.f32.mrf.mxu1 }
 0xda6   :  { %v3976_v35 = vmul.f32 -1.442695, %v3067_v39  ;;  %v3068_v17 = vadd.f32 %v3969_v57, %v3017_v16  ;;  %v3069_v39 = vadd.f32 %v3970_v27, %v3058_v56 }
 0xda7   :  { %v3019_v43 = vpop.f32.mrf.mxu0  ;;  %v3062_v57 = vpop.f32.mrf.mxu1 }
 0xda8   :  { %4594 = vpow2.f32 %v3976_v35  ;;  %v3977_v8 = vmul.f32 -1.442695, %v3068_v17  ;;  %v3071_v14 = vadd.f32 %v3972_v49, %v3019_v43  ;;  %v3974_v35 = vld [vmem:[%s7949_s0 + $0x1b0] sm:$0xff]  ;;  %v3975_v49 = vld [vmem:[%s7949_s0 + $0x1b8] sm:$0xff] }
 0xda9   :  { %v3021_v11 = vpop.f32.mrf.mxu0 }
 0xdaa   :  { %4596 = vpow2.f32 %v3977_v8  ;;  %v3979_v6 = vmul.f32 -1.442695, %v3071_v14  ;;  %v3072_v33 = vadd.f32 %v3973_v63, %v3021_v11  ;;  %v3971_v8 = vld [vmem:[%s7949_s0 + $0x198] sm:$0xff]  ;;  %v3978_v14 = vmul.f32 -1.442695, %v3069_v39 }
 0xdab   :  { %v3073_v11 = vadd.f32 %v3974_v35, %v3062_v57  ;;  %v3070_v43 = vadd.f32 %v3971_v8, %v3060_v38 }
 0xdac   :  { %4598 = vpow2.f32 %v3979_v6  ;;  %v3980_v16 = vmul.f32 -1.442695, %v3072_v33  ;;  %v3064_v6 = vpop.f32.mrf.mxu1 }
 0xdad   :  { %v3981_v56 = vmul.f32 -1.442695, %v3073_v11  ;;  %v3074_v53 = vadd.f32 %v3975_v49, %v3064_v6 }
 0xdae   :  { %4600 = vpow2.f32 %v3980_v16 }
 0xdaf   :  { %4602 = vpow2.f32 %v3978_v14 }
 0xdb5   :  { %v4595_v63 = vpop.eup %4594 }
 0xdb6   :  { %v3093_v17 = vadd.f32 1.0, %v4595_v63 }
 0xdb7   :  { %v4597_v27 = vpop.eup %4596 }
 0xdb8   :  { %4604 = vrcp.f32 %v3093_v17  ;;  %v3094_v33 = vadd.f32 1.0, %v4597_v27 }
 0xdb9   :  { %v4599_v16 = vpop.eup %4598  ;;  %4606 = vtanh.f32 %v3070_v43 }
 0xdba   :  { %4608 = vrcp.f32 %v3094_v33  ;;  %v3096_v58 = vadd.f32 1.0, %v4599_v16 }
 0xdbb   :  { %v4601_v39 = vpop.eup %4600  ;;  %4610 = vpow2.f32 %v3981_v56 }
 0xdbc   :  { %4612 = vrcp.f32 %v3096_v58  ;;  %v3097_v38 = vadd.f32 1.0, %v4601_v39  ;;  %v4603_v35 = vpop.eup %4602 }
 0xdbd   :  { %4614 = vtanh.f32 %v3074_v53  ;;  %v3095_v27 = vadd.f32 1.0, %v4603_v35 }
 0xdbe   :  { %4616 = vrcp.f32 %v3097_v38 }
 0xdbf   :  { %4618 = vrcp.f32 %v3095_v27  ;;  %v4984_v27 = vld [vmem:[#allocation2 + $0xa4] ss:$16 sps:$4 sm:$0xff]  }
 0xdc5   :  { %v4605_v57 = vpop.eup %4604 }
 0xdc6   :  { %v4607_v8 = vpop.eup %4606 }
 0xdc7   :  { %v4609_v63 = vpop.eup %4608  ;;  %v3115_v11 = vmul.f32 %v4607_v8, %v4605_v57 }
 0xdc8   :  { %v4611_v22 = vpop.eup %4610  ;;  %v3113_v14 = vmul.f32 %v4609_v63, %v7225_v28  ;;  %v4980_v63 = vld [vmem:[#allocation2 + $0xc4] ss:$16 sps:$4 sm:$0xff]  }
 0xdc9   :  { %v4613_v17 = vpop.eup %4612  ;;  %v3098_v33 = vadd.f32 1.0, %v4611_v22  ;;  %v4979_v22 = vld [vmem:[#allocation2 + $0xe8] ss:$16 sps:$4 sm:$0xff]  }
 0xdca   :  { %v4615_v43 = vpop.eup %4614  ;;  %v7725_v49 = vadd.f32 %v3115_v11, %v3113_v14  ;;  %v4981_v14 = vld [vmem:[#allocation2 + $0xcc] ss:$16 sps:$4 sm:$0xff]   ;;  %v4982_v11 = vld [vmem:[#allocation2 + $0xc0] ss:$16 sps:$4 sm:$0xff]  }
 0xdcb   :  { %v4617_v6 = vpop.eup %4616  ;;  %v3116_v56 = vmul.f32 %v4615_v43, %v4613_v17  ;;  %v4983_v17 = vld [vmem:[#allocation2 + $0xc8] ss:$16 sps:$4 sm:$0xff]   ;;  %v4985_v43 = vld [vmem:[#allocation2 + $0xac] ss:$16 sps:$4 sm:$0xff]  }
 0xdcc   :  { %v3114_v58 = vmul.f32 %v4617_v6, %v7229_v46  ;;  %4620 = vtanh.f32 %v7725_v49  ;;  %v4619_v28 = vpop.eup %4618  ;;  %v4978_v46 = vld [vmem:[#allocation2 + $0xe0] ss:$16 sps:$4 sm:$0xff]  }
 0xdcd   :  { %4622 = vrcp.f32 %v3098_v33  ;;  %v4986_v6 = vld [vmem:[#allocation2 + $0xa0] ss:$16 sps:$4 sm:$0xff]   ;;  %v4987_v33 = vld [vmem:[#allocation2 + $0xa8] ss:$16 sps:$4 sm:$0xff]  }
 0xdce   :  { %v7729_v53 = vadd.f32 %v3116_v56, %v3114_v58  ;;  %v4988_v58 = vld [vmem:[#allocation2 + $0x84] ss:$16 sps:$4 sm:$0xff]   ;;  %v4989_v56 = vld [vmem:[#allocation2 + $0x8c] ss:$16 sps:$4 sm:$0xff]  }
 0xdd0   :  { %4624 = vtanh.f32 %v7729_v53 }
 0xdd9   :  { %v4621_v16 = vpop.eup %4620 }
 0xdda   :  { %v4623_v39 = vpop.eup %4622  ;;  %v3121_v35 = vmul.f32 %v4621_v16, %v4619_v28  ;;  %v4990_v28 = vld [vmem:[#allocation2 + $0x80] ss:$16 sps:$4 sm:$0xff]   ;;  %v4991_v16 = vld [vmem:[#allocation2 + $0x88] ss:$16 sps:$4 sm:$0xff]  }
 0xddd   :  { %v4625_v38 = vpop.eup %4624 }
 0xdde   :  { %v3122_v57 = vmul.f32 %v4625_v38, %v4623_v39  ;;  %v4992_v39 = vld [vmem:[#allocation2 + $0x64] ss:$16 sps:$4 sm:$0xff]   ;;  %v4993_v38 = vld [vmem:[#allocation2 + $0x6c] ss:$16 sps:$4 sm:$0xff]  }
 0xde0   :  { %v7732_v8 = vpack.c.bf16 %v3122_v57, %v3121_v35  ;;  %v4994_v35 = vld [vmem:[#allocation2 + $0x60] ss:$16 sps:$4 sm:$0xff]   ;;  %v4995_v57 = vld [vmem:[#allocation2 + $0x68] ss:$16 sps:$4 sm:$0xff]  }
 0xde2   :  { %3157 = vmatmul.mubr.bf16.vlgmr.msra.gmra.mxu0 %v7732_v8  ;;  %3200 = vmatmul.mubr.bf16.vlgmr.msra.gmra.mxu1 %v7732_v8 }
 0xde3   :  { %3268 = vmatpush1.bf16.msra.mxu0 %v4978_v46  ;;  %3311 = vmatpush1.bf16.msra.mxu1 %v4979_v22  ;;  %v4996_v46 = vld [vmem:[#allocation2 + $0x44] ss:$16 sps:$4 sm:$0xff]   ;;  %v4997_v22 = vld [vmem:[#allocation2 + $0x4c] ss:$16 sps:$4 sm:$0xff]  }
 0xde4   :  { %3269 = vmatprep.subr.bf16.mxu0 %v4980_v63  ;;  %3312 = vmatprep.subr.bf16.mxu1 %v4981_v14  ;;  %v4998_v63 = vld [vmem:[#allocation2 + $0x40] ss:$16 sps:$4 sm:$0xff]   ;;  %v4999_v14 = vld [vmem:[#allocation2 + $0x48] ss:$16 sps:$4 sm:$0xff]  }
 0xde5   :  { %3299 = vmatprep.mubr.bf16.mxu0 %v8201_v45  ;;  %3342 = vmatprep.mubr.bf16.mxu1 %v8201_v45 }
 0xde7   :  { %3270 = vmatpush1.bf16.msra.mxu0 %v4982_v11  ;;  %3313 = vmatpush1.bf16.msra.mxu1 %v4983_v17  ;;  %v5000_v11 = vld [vmem:[#allocation2 + $0x24] ss:$16 sps:$4 sm:$0xff]   ;;  %v5001_v17 = vld [vmem:[#allocation2 + $0x2c] ss:$16 sps:$4 sm:$0xff]  }
 0xde8   :  { %3271 = vmatprep.subr.bf16.mxu0 %v4984_v27  ;;  %3314 = vmatprep.subr.bf16.mxu1 %v4985_v43  ;;  %v5002_v27 = vld [vmem:[#allocation2 + $0x20] ss:$16 sps:$4 sm:$0xff]   ;;  %v5003_v43 = vld [vmem:[#allocation2 + $0x28] ss:$16 sps:$4 sm:$0xff]  }
 0xdeb   :  { %3272 = vmatpush1.bf16.msra.mxu0 %v4986_v6  ;;  %3315 = vmatpush1.bf16.msra.mxu1 %v4987_v33  ;;  %v5004_v6 = vld [vmem:[#allocation2 + $0x4] ss:$16 sps:$4 sm:$0xff]   ;;  %v5005_v33 = vld [vmem:[#allocation2 + $0xc] ss:$16 sps:$4 sm:$0xff]  }
 0xdec   :  { %3273 = vmatprep.subr.bf16.mxu0 %v4988_v58  ;;  %3316 = vmatprep.subr.bf16.mxu1 %v4989_v56  ;;  %v5006_v58 = vld [vmem:[#allocation2] ss:$16 sps:$4 sm:$0xff]   ;;  %v5007_v56 = vld [vmem:[#allocation2 + $0x8] ss:$16 sps:$4 sm:$0xff]  }
 0xdef   :  { %3274 = vmatpush1.bf16.msra.mxu0 %v4990_v28  ;;  %3317 = vmatpush1.bf16.msra.mxu1 %v4991_v16  ;;  %v2964_v28 = vadd.f32 %v7684_v0, %v8291_v18 }
 0xdf0   :  { %3275 = vmatprep.subr.bf16.mxu0 %v4992_v39  ;;  %3318 = vmatprep.subr.bf16.mxu1 %v4993_v38  ;;  %v2965_v39 = vadd.f32 %v7686_v15, %v8292_v21 }
 0xdf3   :  { %3276 = vmatpush1.bf16.msra.mxu0 %v4994_v35  ;;  %3319 = vmatpush1.bf16.msra.mxu1 %v4995_v57  ;;  %v2968_v57 = vadd.f32 %v7690_v26, %v8291_v18 }
 0xdf4   :  { %3277 = vmatprep.subr.bf16.mxu0 %v4996_v46  ;;  %3320 = vmatprep.subr.bf16.mxu1 %v4997_v22 }
 0xdf7   :  { %3278 = vmatpush1.bf16.msra.mxu0 %v4998_v63  ;;  %3321 = vmatpush1.bf16.msra.mxu1 %v4999_v14 }
 0xdf8   :  { %3279 = vmatprep.subr.bf16.mxu0 %v5000_v11  ;;  %3322 = vmatprep.subr.bf16.mxu1 %v5001_v17 }
 0xdfb   :  { %3280 = vmatpush1.bf16.msra.mxu0 %v5002_v27  ;;  %3323 = vmatpush1.bf16.msra.mxu1 %v5003_v43  ;;  %v2966_v43 = vadd.f32 %v7688_v44, %v8293_v61 }
 0xdfc   :  { %3281 = vmatprep.subr.bf16.mxu0 %v5004_v6  ;;  %3324 = vmatprep.subr.bf16.mxu1 %v5005_v33 }
 0xdff   :  { %3282 = vmatpush1.bf16.msra.mxu0 %v5006_v58  ;;  %3325 = vmatpush1.bf16.msra.mxu1 %v5007_v56  ;;  %v2970_v58 = vadd.f32 %v7699_v25, %v8293_v61 }
 0xe00   :  { %3370 = vmatprep.subr.bf16.mxu0 %v7271_v5  ;;  %3413 = vmatprep.subr.bf16.mxu1 %v7277_v9  ;;  %v2969_v5 = vadd.f32 %v7694_v41, %v8292_v21  ;;  %v2967_v41 = vadd.f32 %v7692_v2, %v5615_v60 }
 0xea2   :  { %v3158_v16 = vpop.f32.mrf.mxu0  ;;  %v3201_v22 = vpop.f32.mrf.mxu1 }
 0xea3   :  { %v3210_v38 = vadd.f32 %v3158_v16, %v2964_v28  ;;  %v3212_v6 = vadd.f32 %v3201_v22, %v2966_v43 }
 0xea4   :  { %v3160_v35 = vpop.f32.mrf.mxu0  ;;  %v3203_v17 = vpop.f32.mrf.mxu1 }
 0xea5   :  { %v3982_v46 = vmul.f32 -1.442695, %v3210_v38  ;;  %v3211_v63 = vadd.f32 %v3160_v35, %v2965_v39  ;;  %v3984_v28 = vmul.f32 -1.442695, %v3212_v6  ;;  %v3213_v16 = vadd.f32 %v3203_v17, %v2967_v41 }
 0xea6   :  { %v3162_v14 = vpop.f32.mrf.mxu0  ;;  %v3205_v33 = vpop.f32.mrf.mxu1  ;;  %v2971_v35 = vadd.f32 %v7707_v42, %v5615_v60 }
 0xea7   :  { %4626 = vpow2.f32 %v3982_v46  ;;  %v3983_v9 = vmul.f32 -1.442695, %v3211_v63  ;;  %v3214_v11 = vadd.f32 %v3162_v14, %v2968_v57  ;;  %v3216_v56 = vadd.f32 %v3205_v33, %v2970_v58 }
 0xea8   :  { %v3164_v0 = vpop.f32.mrf.mxu0  ;;  %v3207_v39 = vpop.f32.mrf.mxu1 }
 0xea9   :  { %4628 = vpow2.f32 %v3983_v9  ;;  %v3985_v27 = vmul.f32 -1.442695, %v3214_v11  ;;  %v3215_v15 = vadd.f32 %v3164_v0, %v2969_v5  ;;  %v3987_v44 = vmul.f32 -1.442695, %v3216_v56 }
 0xeaa   :  { %v3217_v22 = vadd.f32 %v3207_v39, %v2971_v35 }
 0xeab   :  { %4630 = vpow2.f32 %v3985_v27  ;;  %v3986_v26 = vmul.f32 -1.442695, %v3215_v15 }
 0xead   :  { %4632 = vpow2.f32 %v3986_v26 }
 0xeae   :  { %4634 = vpow2.f32 %v3984_v28 }
 0xeaf   :  { %4636 = vtanh.f32 %v3213_v16 }
 0xeb4   :  { %v4627_v38 = vpop.eup %4626 }
 0xeb5   :  { %v3236_v57 = vadd.f32 1.0, %v4627_v38 }
 0xeb6   :  { %v4629_v46 = vpop.eup %4628 }
 0xeb7   :  { %4638 = vrcp.f32 %v3236_v57  ;;  %v3237_v63 = vadd.f32 1.0, %v4629_v46 }
 0xeb8   :  { %v4631_v25 = vpop.eup %4630  ;;  %4640 = vpow2.f32 %v3987_v44 }
 0xeb9   :  { %4642 = vrcp.f32 %v3237_v63  ;;  %v3239_v2 = vadd.f32 1.0, %v4631_v25  ;;  %v8604_v63 = vld [vmem:[#allocation35_spill] sm:$0xff]  ;;  %v8605_v25 = vld [vmem:[#allocation36_spill] sm:$0xff] }
 0xeba   :  { %v4633_v14 = vpop.eup %4632  ;;  %4644 = vtanh.f32 %v3217_v22  ;;  %v8603_v22 = vld [vmem:[#allocation34_spill] sm:$0xff] }
 0xebb   :  { %4646 = vrcp.f32 %v3239_v2  ;;  %v3240_v5 = vadd.f32 1.0, %v4633_v14  ;;  %v4635_v9 = vpop.eup %4634  ;;  %v8606_v2 = vld [vmem:[#allocation37_spill] sm:$0xff]  ;;  %v8607_v14 = vld [vmem:[#allocation38_spill] sm:$0xff] }
 0xebc   :  { %v4637_v11 = vpop.eup %4636  ;;  %v3238_v6 = vadd.f32 1.0, %v4635_v9  ;;  %v8609_v9 = vld [vmem:[#allocation40_spill] sm:$0xff] }
 0xebd   :  { %4648 = vrcp.f32 %v3240_v5  ;;  %v8608_v5 = vld [vmem:[#allocation39_spill] sm:$0xff] }
 0xebe   :  { %4650 = vrcp.f32 %v3238_v6 }
 0xec4   :  { %v4639_v42 = vpop.eup %4638 }
 0xec5   :  { %v4641_v0 = vpop.eup %4640  ;;  %v3258_v17 = vmul.f32 %v4639_v42, %v4637_v11 }
 0xec6   :  { %v4643_v27 = vpop.eup %4642  ;;  %v3241_v56 = vadd.f32 1.0, %v4641_v0 }
 0xec7   :  { %v4645_v15 = vpop.eup %4644  ;;  %v3256_v43 = vmul.f32 %v4643_v27, %v7297_v31 }
 0xec8   :  { %v4647_v26 = vpop.eup %4646 }
 0xec9   :  { %v7757_v33 = vadd.f32 %v3258_v17, %v3256_v43  ;;  %v3259_v58 = vmul.f32 %v4647_v26, %v4645_v15  ;;  %v3988_v43 = vld [vmem:[%s7949_s0 + $0x1c0] sm:$0xff] }
 0xeca   :  { %v4649_v41 = vpop.eup %4648 }
 0xecb   :  { %v3257_v28 = vmul.f32 %v4649_v41, %v7301_v1  ;;  %4652 = vtanh.f32 %v7757_v33  ;;  %v4651_v39 = vpop.eup %4650  ;;  %v8574_v1 = vld [vmem:[#allocation5_spill] sm:$0xff] }
 0xecc   :  { %4654 = vrcp.f32 %v3241_v56 }
 0xecd   :  { %v7761_v16 = vadd.f32 %v3259_v58, %v3257_v28  ;;  %v3989_v58 = vld [vmem:[%s7949_s0 + $0x1c8] sm:$0xff]  ;;  %v3992_v28 = vld [vmem:[%s7949_s0 + $0x1e0] sm:$0xff] }
 0xecf   :  { %4656 = vtanh.f32 %v7761_v16 }
 0xed8   :  { %v4653_v38 = vpop.eup %4652 }
 0xed9   :  { %v4655_v31 = vpop.eup %4654  ;;  %v3264_v44 = vmul.f32 %v4653_v38, %v4651_v39 }
 0xedc   :  { %v4657_v35 = vpop.eup %4656 }
 0xedd   :  { %v3265_v57 = vmul.f32 %v4657_v35, %v4655_v31 }
 0xedf   :  { %v3266_v46 = vpack.c.bf16 %v3265_v57, %v3264_v44  ;;  %v3993_v44 = vld [vmem:[%s7949_s0 + $0x1e8] sm:$0xff] }
 0xee1   :  { %3300 = vmatmul.mubr.bf16.vlgmr.msra.gmra.mxu0 %v3266_v46  ;;  %3343 = vmatmul.mubr.bf16.vlgmr.msra.gmra.mxu1 %v3266_v46 }
 0xee2   :  { %3371 = vmatpush1.bf16.msra.mxu0 %v7307_v19  ;;  %3414 = vmatpush1.bf16.msra.mxu1 %v7313_v12  ;;  %v8575_v19 = vld [vmem:[#allocation6_spill] sm:$0xff]  ;;  %v8576_v12 = vld [vmem:[#allocation7_spill] sm:$0xff] }
 0xee3   :  { %3372 = vmatprep.subr.bf16.mxu0 %v7319_v4  ;;  %3415 = vmatprep.subr.bf16.mxu1 %v7325_v24  ;;  %v8577_v4 = vld [vmem:[#allocation8_spill] sm:$0xff]  ;;  %v8578_v24 = vld [vmem:[#allocation9_spill] sm:$0xff] }
 0xee4   :  { %3402 = vmatprep.mubr.bf16.mxu0 %v8201_v45  ;;  %3445 = vmatprep.mubr.bf16.mxu1 %v8201_v45 }
 0xee6   :  { %3373 = vmatpush1.bf16.msra.mxu0 %v7333_v48  ;;  %3416 = vmatpush1.bf16.msra.mxu1 %v7339_v30  ;;  %v8579_v48 = vld [vmem:[#allocation10_spill] sm:$0xff]  ;;  %v8580_v30 = vld [vmem:[#allocation11_spill] sm:$0xff] }
 0xee7   :  { %3374 = vmatprep.subr.bf16.mxu0 %v7345_v3  ;;  %3417 = vmatprep.subr.bf16.mxu1 %v7351_v13  ;;  %v8581_v3 = vld [vmem:[#allocation12_spill] sm:$0xff]  ;;  %v8582_v13 = vld [vmem:[#allocation13_spill] sm:$0xff] }
 0xeea   :  { %3375 = vmatpush1.bf16.msra.mxu0 %v7357_v62  ;;  %3418 = vmatpush1.bf16.msra.mxu1 %v7363_v40  ;;  %v8583_v62 = vld [vmem:[#allocation14_spill] sm:$0xff]  ;;  %v8584_v40 = vld [vmem:[#allocation15_spill] sm:$0xff] }
 0xeeb   :  { %3376 = vmatprep.subr.bf16.mxu0 %v7369_v23  ;;  %3419 = vmatprep.subr.bf16.mxu1 %v7375_v51  ;;  %v8585_v23 = vld [vmem:[#allocation16_spill] sm:$0xff]  ;;  %v8586_v51 = vld [vmem:[#allocation17_spill] sm:$0xff] }
 0xeee   :  { %3377 = vmatpush1.bf16.msra.mxu0 %v7381_v59  ;;  %3420 = vmatpush1.bf16.msra.mxu1 %v7387_v34  ;;  %v8587_v59 = vld [vmem:[#allocation18_spill] sm:$0xff]  ;;  %v8588_v34 = vld [vmem:[#allocation19_spill] sm:$0xff] }
 0xeef   :  { %3378 = vmatprep.subr.bf16.mxu0 %v7393_v37  ;;  %3421 = vmatprep.subr.bf16.mxu1 %v7399_v29  ;;  %v8589_v37 = vld [vmem:[#allocation20_spill] sm:$0xff]  ;;  %v8590_v29 = vld [vmem:[#allocation21_spill] sm:$0xff] }
 0xef2   :  { %3379 = vmatpush1.bf16.msra.mxu0 %v7405_v52  ;;  %3422 = vmatpush1.bf16.msra.mxu1 %v7411_v50  ;;  %v8591_v52 = vld [vmem:[#allocation22_spill] sm:$0xff]  ;;  %v8592_v50 = vld [vmem:[#allocation23_spill] sm:$0xff] }
 0xef3   :  { %3380 = vmatprep.subr.bf16.mxu0 %v7417_v55  ;;  %3423 = vmatprep.subr.bf16.mxu1 %v7423_v32  ;;  %v8593_v55 = vld [vmem:[#allocation24_spill] sm:$0xff] }
 0xef4   :  { %v8595_v32 = vld [vmem:[#allocation28_spill] sm:$0xff] }
 0xef6   :  { %3381 = vmatpush1.bf16.msra.mxu0 %v7429_v36  ;;  %3424 = vmatpush1.bf16.msra.mxu1 %v7435_v54  ;;  %v8596_v36 = vld [vmem:[#allocation25_spill] sm:$0xff]  ;;  %v8597_v54 = vld [vmem:[#allocation26_spill] sm:$0xff] }
 0xef7   :  { %3382 = vmatprep.subr.bf16.mxu0 %v7441_v7  ;;  %3425 = vmatprep.subr.bf16.mxu1 %v7447_v47  ;;  %v8598_v7 = vld [vmem:[#allocation29_spill] sm:$0xff]  ;;  %v8599_v47 = vld [vmem:[#allocation30_spill] sm:$0xff] }
 0xefa   :  { %3383 = vmatpush1.bf16.msra.mxu0 %v7453_v10  ;;  %3426 = vmatpush1.bf16.msra.mxu1 %v7459_v20  ;;  %v8600_v10 = vld [vmem:[#allocation31_spill] sm:$0xff]  ;;  %v8601_v20 = vld [vmem:[#allocation32_spill] sm:$0xff] }
 0xefb   :  { %3384 = vmatprep.subr.bf16.mxu0 %v8574_v1  ;;  %3427 = vmatprep.subr.bf16.mxu1 %v8575_v19 }
 0xefe   :  { %3385 = vmatpush1.bf16.msra.mxu0 %v8576_v12  ;;  %3428 = vmatpush1.bf16.msra.mxu1 %v8577_v4 }
 0xeff   :  { %3513 = vmatprep.subr.bf16.mxu0 %v8578_v24  ;;  %3556 = vmatprep.subr.bf16.mxu1 %v8579_v48  ;;  %v3990_v24 = vld [vmem:[%s7949_s0 + $0x1d0] sm:$0xff] }
 0xf01   :  { %3403 = vmatmul.mubr.bf16.vlgmr.msra.gmra.mxu0 %v7732_v8  ;;  %3446 = vmatmul.mubr.bf16.vlgmr.msra.gmra.mxu1 %v7732_v8  ;;  %v8602_v8 = vld [vmem:[#allocation33_spill] sm:$0xff] }
 0xf02   :  { %3514 = vmatpush1.bf16.msra.mxu0 %v8580_v30  ;;  %3557 = vmatpush1.bf16.msra.mxu1 %v8581_v3 }
 0xf03   :  { %3515 = vmatprep.subr.bf16.mxu0 %v8582_v13  ;;  %3558 = vmatprep.subr.bf16.mxu1 %v8583_v62  ;;  %v3994_v13 = vld [vmem:[%s7949_s0 + $0x1f0] sm:$0xff] }
 0xf04   :  { %3545 = vmatprep.mubr.bf16.mxu0 %v8201_v45  ;;  %3588 = vmatprep.mubr.bf16.mxu1 %v8201_v45  ;;  %v8594_v45 = vld [vmem:[#allocation27_spill] sm:$0xff] }
 0xf06   :  { %3516 = vmatpush1.bf16.msra.mxu0 %v8584_v40  ;;  %3559 = vmatpush1.bf16.msra.mxu1 %v8585_v23  ;;  %v3991_v40 = vld [vmem:[%s7949_s0 + $0x1d8] sm:$0xff] }
 0xf07   :  { %3517 = vmatprep.subr.bf16.mxu0 %v8586_v51  ;;  %3560 = vmatprep.subr.bf16.mxu1 %v8587_v59 }
 0xf0a   :  { %3518 = vmatpush1.bf16.msra.mxu0 %v8588_v34  ;;  %3561 = vmatpush1.bf16.msra.mxu1 %v8589_v37 }
 0xf0b   :  { %3519 = vmatprep.subr.bf16.mxu0 %v8590_v29  ;;  %3562 = vmatprep.subr.bf16.mxu1 %v8591_v52  ;;  %v3995_v29 = vld [vmem:[%s7949_s0 + $0x1f8] sm:$0xff] }
 0xf0e   :  { %3520 = vmatpush1.bf16.msra.mxu0 %v8592_v50  ;;  %3563 = vmatpush1.bf16.msra.mxu1 %v8593_v55 }
 0xf0f   :  { %3521 = vmatprep.subr.bf16.mxu0 %v8594_v45  ;;  %3564 = vmatprep.subr.bf16.mxu1 %v8595_v32 }
 0xf12   :  { %3522 = vmatpush1.bf16.msra.mxu0 %v8596_v36  ;;  %3565 = vmatpush1.bf16.msra.mxu1 %v8597_v54 }
 0xf13   :  { %3523 = vmatprep.subr.bf16.mxu0 %v8598_v7  ;;  %3566 = vmatprep.subr.bf16.mxu1 %v8599_v47 }
 0xf16   :  { %3524 = vmatpush1.bf16.msra.mxu0 %v8600_v10  ;;  %3567 = vmatpush1.bf16.msra.mxu1 %v8601_v20 }
 0xf17   :  { %3525 = vmatprep.subr.bf16.mxu0 %v8602_v8  ;;  %3568 = vmatprep.subr.bf16.mxu1 %v8603_v22 }
 0xf1a   :  { %3526 = vmatpush1.bf16.msra.mxu0 %v8604_v63  ;;  %3569 = vmatpush1.bf16.msra.mxu1 %v8605_v25 }
 0xf1b   :  { %3527 = vmatprep.subr.bf16.mxu0 %v8606_v2  ;;  %3570 = vmatprep.subr.bf16.mxu1 %v8607_v14 }
 0xf1e   :  { %3528 = vmatpush1.bf16.msra.mxu0 %v8608_v5  ;;  %3571 = vmatpush1.bf16.msra.mxu1 %v8609_v9 }
 0xfa1   :  { %v7832_v11 = vpop.f32.mrf.mxu0  ;;  %v7836_v0 = vpop.f32.mrf.mxu1 }
 0xfa3   :  { %v7834_v42 = vpop.f32.mrf.mxu0  ;;  %v7840_v27 = vpop.f32.mrf.mxu1 }
 0xfa5   :  { %v7838_v17 = vpop.f32.mrf.mxu0  ;;  %v7847_v26 = vpop.f32.mrf.mxu1 }
 0xfa7   :  { %v7842_v15 = vpop.f32.mrf.mxu0  ;;  %v7855_v39 = vpop.f32.mrf.mxu1 }
 0xfc1   :  { %v3404_v6 = vpop.f32.mrf.mxu0  ;;  %v3447_v57 = vpop.f32.mrf.mxu1 }
 0xfc2   :  { %v3456_v41 = vadd.f32 %v3988_v43, %v3404_v6  ;;  %v3458_v3 = vadd.f32 %v3990_v24, %v3447_v57  ;;  %v3665_v24 = vld [vmem:[%s7954_s5 + $0x50] sm:$0xff] }
 0xfc3   :  { %v3406_v56 = vpop.f32.mrf.mxu0  ;;  %v3449_v48 = vpop.f32.mrf.mxu1 }
 0xfc4   :  { %v3996_v38 = vmul.f32 -1.442695, %v3456_v41  ;;  %v3457_v31 = vadd.f32 %v3989_v58, %v3406_v56  ;;  %v3998_v23 = vmul.f32 -1.442695, %v3458_v3  ;;  %v3459_v34 = vadd.f32 %v3991_v40, %v3449_v48  ;;  %v3664_v48 = vld [vmem:[%s7954_s5 + $0x48] sm:$0xff]  ;;  %v3662_v3 = vld [vmem:[%s7954_s5 + $0x38] sm:$0xff] }
 0xfc5   :  { %v3408_v35 = vpop.f32.mrf.mxu0  ;;  %v3451_v62 = vpop.f32.mrf.mxu1  ;;  %v3659_v40 = vld [vmem:[%s7954_s5 + $0x20] sm:$0xff] }
 0xfc6   :  { %4658 = vpow2.f32 %v3996_v38  ;;  %v3997_v46 = vmul.f32 -1.442695, %v3457_v31  ;;  %v3460_v1 = vadd.f32 %v3992_v28, %v3408_v35  ;;  %v3462_v51 = vadd.f32 %v3994_v13, %v3451_v62  ;;  %v3661_v13 = vld [vmem:[%s7954_s5 + $0x30] sm:$0xff]  ;;  %v3660_v62 = vld [vmem:[%s7954_s5 + $0x28] sm:$0xff] }
 0xfc7   :  { %v3410_v19 = vpop.f32.mrf.mxu0  ;;  %v3453_v52 = vpop.f32.mrf.mxu1 }
 0xfc8   :  { %4660 = vpow2.f32 %v3997_v46  ;;  %v3999_v12 = vmul.f32 -1.442695, %v3460_v1  ;;  %v3461_v4 = vadd.f32 %v3993_v44, %v3410_v19  ;;  %v4001_v55 = vmul.f32 -1.442695, %v3462_v51  ;;  %v3670_v1 = vld [vmem:[%s7954_s5 + $0x78] sm:$0xff]  ;;  %v3668_v19 = vld [vmem:[%s7954_s5 + $0x68] sm:$0xff] }
 0xfc9   :  { %v3463_v36 = vadd.f32 %v3995_v29, %v3453_v52  ;;  %4027 = vmatprep.subr.mxu0 %v3670_v1  ;;  %v3657_v51 = vld [vmem:[%s7954_s5 + $0x10] sm:$0xff]  ;;  %v3354_v52 = vadd.f32 %v7834_v42, %v8292_v21 }
 0xfca   :  { %4662 = vpow2.f32 %v3999_v12  ;;  %v4000_v30 = vmul.f32 -1.442695, %v3461_v4  ;;  %v3667_v12 = vld [vmem:[%s7954_s5 + $0x60] sm:$0xff]  ;;  %v3666_v4 = vld [vmem:[%s7954_s5 + $0x58] sm:$0xff] }
 0xfcc   :  { %4664 = vpow2.f32 %v4000_v30  ;;  %v3663_v30 = vld [vmem:[%s7954_s5 + $0x40] sm:$0xff] }
 0xfcd   :  { %4666 = vpow2.f32 %v3998_v23  ;;  %v3658_v23 = vld [vmem:[%s7954_s5 + $0x18] sm:$0xff] }
 0xfd3   :  { %v4659_v59 = vpop.eup %4658 }
 0xfd4   :  { %v3482_v37 = vadd.f32 1.0, %v4659_v59  ;;  %v3656_v59 = vld [vmem:[%s7954_s5 + $0x8] sm:$0xff] }
 0xfd5   :  { %v4661_v50 = vpop.eup %4660 }
 0xfd6   :  { %4668 = vrcp.f32 %v3482_v37  ;;  %v3483_v45 = vadd.f32 1.0, %v4661_v50  ;;  %v3353_v37 = vadd.f32 %v7832_v11, %v8291_v18 }
 0xfd7   :  { %v4663_v32 = vpop.eup %4662  ;;  %4670 = vtanh.f32 %v3459_v34  ;;  %v3655_v34 = vld [vmem:[%s7954_s5] sm:$0xff] }
 0xfd8   :  { %4672 = vrcp.f32 %v3483_v45  ;;  %v3485_v54 = vadd.f32 1.0, %v4663_v32  ;;  %v3357_v45 = vadd.f32 %v7838_v17, %v8291_v18 }
 0xfd9   :  { %v4665_v7 = vpop.eup %4664  ;;  %4674 = vpow2.f32 %v4001_v55 }
 0xfda   :  { %4676 = vrcp.f32 %v3485_v54  ;;  %v3486_v47 = vadd.f32 1.0, %v4665_v7  ;;  %v4667_v10 = vpop.eup %4666 }
 0xfdb   :  { %4678 = vtanh.f32 %v3463_v36  ;;  %v3484_v5 = vadd.f32 1.0, %v4667_v10 }
 0xfdc   :  { %4680 = vrcp.f32 %v3486_v47  ;;  %v3358_v47 = vadd.f32 %v7842_v15, %v8292_v21  ;;  %v3356_v21 = vadd.f32 %v7840_v27, %v5615_v60 }
 0xfdd   :  { %4682 = vrcp.f32 %v3484_v5 }
 0xfe3   :  { %v4669_v20 = vpop.eup %4668 }
 0xfe4   :  { %v4671_v8 = vpop.eup %4670 }
 0xfe5   :  { %v4673_v22 = vpop.eup %4672  ;;  %v3504_v2 = vmul.f32 %v4671_v8, %v4669_v20 }
 0xfe6   :  { %v4675_v63 = vpop.eup %4674  ;;  %v3502_v25 = vmul.f32 %v4673_v22, %v7725_v49 }
 0xfe7   :  { %v4677_v14 = vpop.eup %4676  ;;  %v3487_v58 = vadd.f32 1.0, %v4675_v63  ;;  %v3355_v63 = vadd.f32 %v7836_v0, %v8293_v61 }
 0xfe8   :  { %v4679_v9 = vpop.eup %4678  ;;  %v3506_v43 = vadd.f32 %v3504_v2, %v3502_v25  ;;  %v3359_v2 = vadd.f32 %v7847_v26, %v8293_v61 }
 0xfe9   :  { %v4681_v6 = vpop.eup %4680  ;;  %v3505_v56 = vmul.f32 %v4679_v9, %v4677_v14 }
 0xfea   :  { %v3503_v41 = vmul.f32 %v4681_v6, %v7729_v53  ;;  %4684 = vtanh.f32 %v3506_v43  ;;  %v4683_v38 = vpop.eup %4682  ;;  %v3669_v53 = vld [vmem:[%s7954_s5 + $0x70] sm:$0xff]  ;;  %v3360_v6 = vadd.f32 %v7855_v39, %v5615_v60 }
 0xfeb   :  { %4686 = vrcp.f32 %v3487_v58 }
 0xfec   :  { %v3507_v28 = vadd.f32 %v3505_v56, %v3503_v41 }
 0xfee   :  { %4688 = vtanh.f32 %v3507_v28 }
 0xff7   :  { %v4685_v31 = vpop.eup %4684 }
 0xff8   :  { %v4687_v35 = vpop.eup %4686  ;;  %v3510_v49 = vmul.f32 %v4685_v31, %v4683_v38 }
 0xffb   :  { %v4689_v44 = vpop.eup %4688 }
 0xffc   :  { %v3511_v57 = vmul.f32 %v4689_v44, %v4687_v35 }
 0xffe   :  { %v3512_v46 = vpack.c.bf16 %v3511_v57, %v3510_v49 }
0x1000   :  { %3546 = vmatmul.mubr.bf16.vlgmr.msra.gmra.mxu0 %v3512_v46  ;;  %3589 = vmatmul.mubr.bf16.vlgmr.msra.gmra.mxu1 %v3512_v46 }
0x1001   :  { %4028 = vmatpush3.msra.mxu0 %v3670_v1 }
0x1002   :  { %4029 = vmatprep.subr.mxu0 %v3669_v53 }
0x1003   :  { %4030 = vmatpush3.msra.mxu0 %v3669_v53 }
0x1004   :  { %4031 = vmatprep.subr.mxu0 %v3668_v19 }
0x1005   :  { %4032 = vmatpush3.msra.mxu0 %v3668_v19 }
0x1006   :  { %4033 = vmatprep.subr.mxu0 %v3667_v12 }
0x1007   :  { %4034 = vmatpush3.msra.mxu0 %v3667_v12 }
0x1008   :  { %4035 = vmatprep.subr.mxu0 %v3666_v4 }
0x1009   :  { %4036 = vmatpush3.msra.mxu0 %v3666_v4 }
0x100a   :  { %4037 = vmatprep.subr.mxu0 %v3665_v24 }
0x100b   :  { %4038 = vmatpush3.msra.mxu0 %v3665_v24 }
0x100c   :  { %4039 = vmatprep.subr.mxu0 %v3664_v48 }
0x100d   :  { %4040 = vmatpush3.msra.mxu0 %v3664_v48 }
0x100e   :  { %4041 = vmatprep.subr.mxu0 %v3663_v30 }
0x100f   :  { %4042 = vmatpush3.msra.mxu0 %v3663_v30 }
0x1010   :  { %4043 = vmatprep.subr.mxu0 %v3662_v3 }
0x1011   :  { %4044 = vmatpush3.msra.mxu0 %v3662_v3 }
0x1012   :  { %4045 = vmatprep.subr.mxu0 %v3661_v13 }
0x1013   :  { %4046 = vmatpush3.msra.mxu0 %v3661_v13 }
0x1014   :  { %4047 = vmatprep.subr.mxu0 %v3660_v62 }
0x1015   :  { %4048 = vmatpush3.msra.mxu0 %v3660_v62 }
0x1016   :  { %4049 = vmatprep.subr.mxu0 %v3659_v40 }
0x1017   :  { %4050 = vmatpush3.msra.mxu0 %v3659_v40 }
0x1018   :  { %4051 = vmatprep.subr.mxu0 %v3658_v23 }
0x1019   :  { %4052 = vmatpush3.msra.mxu0 %v3658_v23 }
0x101a   :  { %4053 = vmatprep.subr.mxu0 %v3657_v51 }
0x101b   :  { %4054 = vmatpush3.msra.mxu0 %v3657_v51 }
0x101c   :  { %4055 = vmatprep.subr.mxu0 %v3656_v59 }
0x101d   :  { %4056 = vmatpush3.msra.mxu0 %v3656_v59 }
0x101e   :  { %4057 = vmatprep.subr.mxu0 %v3655_v34 }
0x101f   :  { %4058 = vmatpush3.msra.mxu0 %v3655_v34 }
0x10c0   :  { %v3547_v29 = vpop.f32.mrf.mxu0  ;;  %v3590_v36 = vpop.f32.mrf.mxu1 }
0x10c1   :  { %v3599_v50 = vadd.f32 %v3547_v29, %v3353_v37  ;;  %v3601_v17 = vadd.f32 %v3590_v36, %v3355_v63 }
0x10c2   :  { %v3549_v55 = vpop.f32.mrf.mxu0  ;;  %v3592_v8 = vpop.f32.mrf.mxu1 }
0x10c3   :  { %v4002_v32 = vmul.f32 -1.442695, %v3599_v50  ;;  %v3600_v54 = vadd.f32 %v3549_v55, %v3354_v52  ;;  %v4004_v14 = vmul.f32 -1.442695, %v3601_v17  ;;  %v3602_v5 = vadd.f32 %v3592_v8, %v3356_v21 }
0x10c4   :  { %v3551_v7 = vpop.f32.mrf.mxu0  ;;  %v3594_v25 = vpop.f32.mrf.mxu1 }
0x10c5   :  { %4690 = vpow2.f32 %v4002_v32  ;;  %v4003_v10 = vmul.f32 -1.442695, %v3600_v54  ;;  %v3603_v20 = vadd.f32 %v3551_v7, %v3357_v45  ;;  %v3605_v15 = vadd.f32 %v3594_v25, %v3359_v2 }
0x10c6   :  { %v3553_v11 = vpop.f32.mrf.mxu0  ;;  %v3596_v9 = vpop.f32.mrf.mxu1 }
0x10c7   :  { %4692 = vpow2.f32 %v4003_v10  ;;  %v4005_v22 = vmul.f32 -1.442695, %v3603_v20  ;;  %v3604_v42 = vadd.f32 %v3553_v11, %v3358_v47  ;;  %v4007_v0 = vmul.f32 -1.442695, %v3605_v15 }
0x10c8   :  { %v3606_v56 = vadd.f32 %v3596_v9, %v3360_v6 }
0x10c9   :  { %4694 = vpow2.f32 %v4005_v22  ;;  %v4006_v18 = vmul.f32 -1.442695, %v3604_v42 }
0x10cb   :  { %4696 = vpow2.f32 %v4006_v18 }
0x10cc   :  { %4698 = vpow2.f32 %v4004_v14 }
0x10cd   :  { %4700 = vtanh.f32 %v3602_v5 }
0x10d2   :  { %v4691_v43 = vpop.eup %4690 }
0x10d3   :  { %v3625_v58 = vadd.f32 1.0, %v4691_v43 }
0x10d4   :  { %v4693_v41 = vpop.eup %4692 }
0x10d5   :  { %4702 = vrcp.f32 %v3625_v58  ;;  %v3626_v28 = vadd.f32 1.0, %v4693_v41 }
0x10d6   :  { %v4695_v61 = vpop.eup %4694  ;;  %4704 = vpow2.f32 %v4007_v0 }
0x10d7   :  { %4706 = vrcp.f32 %v3626_v28  ;;  %v3628_v27 = vadd.f32 1.0, %v4695_v61 }
0x10d8   :  { %v4697_v26 = vpop.eup %4696  ;;  %4708 = vtanh.f32 %v3606_v56 }
0x10d9   :  { %4710 = vrcp.f32 %v3628_v27  ;;  %v3629_v38 = vadd.f32 1.0, %v4697_v26  ;;  %v4699_v31 = vpop.eup %4698 }
0x10da   :  { %v4701_v35 = vpop.eup %4700  ;;  %v3627_v57 = vadd.f32 1.0, %v4699_v31 }
0x10db   :  { %4712 = vrcp.f32 %v3629_v38 }
0x10dc   :  { %4714 = vrcp.f32 %v3627_v57 }
0x10e2   :  { %v4703_v60 = vpop.eup %4702 }
0x10e3   :  { %v4705_v39 = vpop.eup %4704  ;;  %v3647_v44 = vmul.f32 %v4703_v60, %v4701_v35 }
0x10e4   :  { %v4707_v49 = vpop.eup %4706  ;;  %v3630_v24 = vadd.f32 1.0, %v4705_v39 }
0x10e5   :  { %v4709_v46 = vpop.eup %4708  ;;  %v3645_v1 = vmul.f32 %v4707_v49, %v7757_v33  ;;  %v4008_v33 = vld [vmem:[%s7955_s6] ss:$0 sm:$0xff] }
0x10e6   :  { %v4711_v53 = vpop.eup %4710 }
0x10e7   :  { %v3649_v19 = vadd.f32 %v3647_v44, %v3645_v1  ;;  %v3648_v12 = vmul.f32 %v4711_v53, %v4709_v46 }
0x10e8   :  { %v4713_v4 = vpop.eup %4712 }
0x10e9   :  { %4716 = vtanh.f32 %v3649_v19  ;;  %v3646_v48 = vmul.f32 %v4713_v4, %v7761_v16  ;;  %v4715_v3 = vpop.eup %4714 }
0x10ea   :  { %4718 = vrcp.f32 %v3630_v24 }
0x10eb   :  { %v3650_v30 = vadd.f32 %v3648_v12, %v3646_v48 }
0x10ed   :  { %4720 = vtanh.f32 %v3650_v30 }
0x10f6   :  { %v4717_v13 = vpop.eup %4716 }
0x10f7   :  { %v3653_v62 = vmul.f32 %v4717_v13, %v4715_v3  ;;  %v4719_v40 = vpop.eup %4718 }
0x10f9   :  { %4059 = vmatprep.mubr.f32.mxu0 %v3653_v62 }
0x10fa   :  { %v4721_v23 = vpop.eup %4720 }
0x10fb   :  { %v3654_v51 = vmul.f32 %v4721_v23, %v4719_v40 }
0x10fd   :  { %4060 = vmatmul.mubr.f32.vlgmr.msra.gmra.mxu0 %v3654_v51 }
0x11bd   :  { %v4061_v59 = vpop.f32.mrf.mxu0 }
0x11be   :  { %v3750_v34 = vadd.f32 %v4061_v59, %v4008_v33 }
0x11bf   :  { %v3744_v37 = vpop.f32.mrf.mxu0 }
0x11c0   :  { %3754 = vst [vmem:[%s7956_s7 + $0x8] sm:$0xff] %v3750_v34  ;;  %v3745_v16 = vadd.f32 %v4008_v33, %v3744_v37 }
0x11c2   :  { %3753 = vst [vmem:[%s7956_s7] sm:$0xff] %v3745_v16 }
0x11c3   :  { %3759 = vsyncpa [#allocation3], 1 }

</bundles_post_ra>
